<compile_context>
chip_gen: v5e
topology: v5e:2x2
jax: 0.10.0
libtpu: 0.0.40
codegen_flags: <defaults>
</compile_context>

<pallas_src>
import jax
import jax.numpy as jnp
from jax.experimental import pallas as pl
from jax.experimental.pallas import tpu as pltpu

KSIZE = 7
PAD = 3
_NACC = 4          # independent f32 accumulators (break the serial add chain)
_UNROLL_C_MAX = 8  # statically unroll the channel loop up to this many channels


def _spatial_attention_kernel(b_ref, w_ref, x_ref, out_ref, xpad_ref):
    # b_ref:    SMEM (1,)                      conv bias (f32)
    # w_ref:    SMEM (C*49,)                   conv weight, flat [c, kh, kw] order (f32)
    # x_ref:    VMEM (1, C, H, W)              one batch element (original dtype)
    # out_ref:  VMEM (1, C, TILE_H, W)
    # xpad_ref: VMEM (C, TILE_H+6, W+6) f32    zero-padded working tile (scratch)
    C = x_ref.shape[1]
    W = x_ref.shape[3]
    TILE_H = out_ref.shape[2]

    h_idx = pl.program_id(1)
    n_h = pl.num_programs(1)
    h0 = h_idx * TILE_H
    if TILE_H % 8 == 0:
        h0 = pl.multiple_of(h0, 8)      # aligned sublane start for the core copy

    # ---- targeted zero padding: only the strips that are never overwritten ----
    # Left / right PAD-column strips (all rows) -- needed every step.
    xpad_ref[:, :, 0:PAD] = jnp.zeros((C, TILE_H + 2 * PAD, PAD), jnp.float32)
    xpad_ref[:, :, PAD + W:] = jnp.zeros((C, TILE_H + 2 * PAD, PAD), jnp.float32)

    # Core rows of this H tile (always fully overwritten -> no zero fill needed).
    xpad_ref[:, PAD:PAD + TILE_H, PAD:PAD + W] = (
        x_ref[0, :, pl.ds(h0, TILE_H), :].astype(jnp.float32))

    # Top halo rows: copy from the previous tile's rows, zero at the image top edge.
    @pl.when(h_idx > 0)
    def _():
        xpad_ref[:, 0:PAD, PAD:PAD + W] = (
            x_ref[0, :, pl.ds(h0 - PAD, PAD), :].astype(jnp.float32))

    @pl.when(h_idx == 0)
    def _():
        xpad_ref[:, 0:PAD, PAD:PAD + W] = jnp.zeros((C, PAD, W), jnp.float32)

    # Bottom halo rows: copy from the next tile's rows, zero at the image bottom edge.
    @pl.when(h_idx < n_h - 1)
    def _():
        xpad_ref[:, PAD + TILE_H:, PAD:PAD + W] = (
            x_ref[0, :, pl.ds(h0 + TILE_H, PAD), :].astype(jnp.float32))

    @pl.when(h_idx == n_h - 1)
    def _():
        xpad_ref[:, PAD + TILE_H:, PAD:PAD + W] = jnp.zeros((C, PAD, W), jnp.float32)

    # ---- 7x7, C-input-channel conv producing the single-channel attention logits ----
    # Slabs are streamed from the scratch ref per (c, kh) (nothing big kept live in vregs),
    # weights are SMEM scalar reads, and taps round-robin into _NACC independent
    # accumulators so mul/add from different taps can co-issue on the 4 VALU slots.
    zero = jnp.zeros((TILE_H, W), jnp.float32)

    def channel_taps(c, accs):
        accs = list(accs)
        t = 0
        for kh in range(KSIZE):
            rows = xpad_ref[c, kh:kh + TILE_H, :]            # (TILE_H, W+6) f32 slab
            for kw in range(KSIZE):
                w_s = w_ref[(c * KSIZE + kh) * KSIZE + kw]   # SMEM scalar weight
                accs[t % _NACC] = accs[t % _NACC] + rows[:, kw:kw + W] * w_s
                t += 1
        return tuple(accs)

    if C <= _UNROLL_C_MAX:
        accs = (zero,) * _NACC
        for c in range(C):                                   # static unroll (small C)
            accs = channel_taps(c, accs)
    else:
        accs = jax.lax.fori_loop(0, C, channel_taps, (zero,) * _NACC)

    acc = (accs[0] + accs[1]) + (accs[2] + accs[3])
    attn = jax.nn.sigmoid(acc + b_ref[0])                    # (TILE_H, W)

    # Elementwise gate: read the (unpadded) tile straight from x_ref instead of keeping
    # the padded scratch live as a value.
    x_tile = x_ref[0, :, pl.ds(h0, TILE_H), :].astype(jnp.float32)
    out_ref[0] = (x_tile * attn[None, :, :]).astype(out_ref.dtype)


def _pick_tile_h(H):
    """Largest multiple-of-8 divisor of H that is <= 128; whole H for tiny/awkward H."""
    candidates = [t for t in range(8, min(H, 128) + 1, 8) if H % t == 0]
    if candidates:
        return max(candidates)
    return H


def _round_up(v, m):
    return ((v + m - 1) // m) * m


def spatial_attention(x_nchw, weight, bias):
    """x_nchw: (N, C, H, W); weight: (1, C, 7, 7) PyTorch OIHW layout; bias: (1,)."""
    N, C, H, W = x_nchw.shape
    TILE_H = _pick_tile_h(H)
    n_h = H // TILE_H

    w_flat = weight.reshape(-1).astype(jnp.float32)   # (C*49,), [c, kh, kw] order
    b = bias.reshape(-1).astype(jnp.float32)          # (1,)

    itemsize = jnp.dtype(x_nchw.dtype).itemsize

    # Scoped-VMEM budget from the actual (double-buffered) blocks + scratch (+ headroom).
    in_block = C * _round_up(H, 8) * _round_up(W, 128) * itemsize
    out_block = C * _round_up(TILE_H, 8) * _round_up(W, 128) * itemsize
    scratch = C * _round_up(TILE_H + 2 * PAD, 8) * _round_up(W + 2 * PAD, 128) * 4
    vmem_limit = int(min(max(2 * in_block + 2 * out_block + scratch + (2 << 20), 16 << 20),
                         64 << 20))

    cost = pl.CostEstimate(
        flops=int(2 * KSIZE * KSIZE * C * H * W * N + 2 * C * H * W * N),
        transcendentals=int(N * H * W),
        bytes_accessed=int(2 * N * C * H * W * itemsize + (w_flat.size + 1) * 4),
    )

    return pl.pallas_call(
        _spatial_attention_kernel,
        out_shape=jax.ShapeDtypeStruct((N, C, H, W), x_nchw.dtype),
        grid_spec=pltpu.PrefetchScalarGridSpec(
            num_scalar_prefetch=0,
            grid=(N, n_h),
            in_specs=[
                pl.BlockSpec(memory_space=pltpu.MemorySpace.SMEM),      # bias
                pl.BlockSpec(memory_space=pltpu.MemorySpace.SMEM),      # flat weight
                # Whole image of one batch element; block index is constant over the
                # (arbitrary) h axis -> one DMA per batch, resident across all H tiles.
                pl.BlockSpec((1, C, H, W), lambda n, h: (n, 0, 0, 0)),
            ],
            out_specs=pl.BlockSpec((1, C, TILE_H, W), lambda n, h: (n, 0, h, 0)),
            scratch_shapes=[
                pltpu.VMEM((C, TILE_H + 2 * PAD, W + 2 * PAD), jnp.float32),
            ],
        ),
        compiler_params=pltpu.CompilerParams(
            # Batch axis is core-sharded; inner H axis reuses the resident image block
            # (so the two v7x TensorCores never duplicate the whole-image DMA).
            dimension_semantics=("parallel", "arbitrary"),
            vmem_limit_bytes=vmem_limit,
        ),
        cost_estimate=cost,
    )(b, w_flat, x_nchw)


def _reference(x_nchw, weight, bias):
    # Pure-JAX reference (NCHW conv) for correctness checking.
    logits = jax.lax.conv_general_dilated(
        x_nchw.astype(jnp.float32), weight.astype(jnp.float32),
        window_strides=(1, 1), padding=((PAD, PAD), (PAD, PAD)),
        dimension_numbers=("NCHW", "OIHW", "NCHW"),
    ) + bias.reshape(1, 1, 1, 1).astype(jnp.float32)
    return (x_nchw.astype(jnp.float32) * jax.nn.sigmoid(logits)).astype(x_nchw.dtype)


if __name__ == "__main__":
    key = jax.random.PRNGKey(0)
    k_x, k_w, k_b = jax.random.split(key, 3)

    N, C, H, W = 2, 4, 16, 16
    x = jax.random.normal(k_x, (N, C, H, W), dtype=jnp.float32)

    # Deterministic synthetic parameters (shapes match nn.Conv2d(C, 1, 7, padding=3)).
    fan_in = C * KSIZE * KSIZE
    bound = 1.0 / jnp.sqrt(fan_in)
    weight = jax.random.uniform(k_w, (1, C, KSIZE, KSIZE), jnp.float32, -bound, bound)
    bias = jax.random.uniform(k_b, (1,), jnp.float32, -bound, bound)

    out = spatial_attention(x, weight, bias)
    out = jax.block_until_ready(out)

    ref = jax.block_until_ready(_reference(x, weight, bias))
    assert out.shape == (N, C, H, W)
    assert jnp.allclose(out, ref, atol=1e-5, rtol=1e-5)

    print("KERNEL_OK")
</pallas_src>

<mosaic_0001>
module attributes {stable_mosaic.version = 11 : i64} {
  func.func @_spatial_attention_kernel(%arg0: i32, %arg1: i32, %arg2: memref<1xf32, #tpu.memory_space<smem>>, %arg3: memref<196xf32, #tpu.memory_space<smem>>, %arg4: memref<1x4x16x16xf32, #tpu.memory_space<vmem>>, %arg5: memref<1x4x16x16xf32, #tpu.memory_space<vmem>>, %arg6: memref<4x22x22xf32, #tpu.memory_space<vmem>>) attributes {dimension_semantics = [#tpu.dimension_semantics<parallel>, #tpu.dimension_semantics<arbitrary>], iteration_bounds = array<i64: 2, 1>, scalar_prefetch = 0 : i64, scratch_operands = 1 : i64, tpu.core_type = #tpu.core_type<tc>, window_params = [{transform_indices = @transform_0, window_bounds = array<i64: 1>}, {transform_indices = @transform_1, window_bounds = array<i64: 196>}, {transform_indices = @transform_2, window_bounds = array<i64: 1, 4, 16, 16>}, {transform_indices = @transform_3, window_bounds = array<i64: 1, 4, 16, 16>}]} {
    %c16_i32 = arith.constant 16 : i32
    %0 = arith.muli %arg1, %c16_i32 : i32
    %1 = tpu.assume_multiple %0, 8 : i32
    %cst = arith.constant 0.000000e+00 : f32
    %2 = vector.broadcast %cst : f32 to vector<4x22x3xf32>
    %c0 = arith.constant 0 : index
    %c0_0 = arith.constant 0 : index
    %c0_1 = arith.constant 0 : index
    %3 = vector.load %arg6[%c0, %c0_0, %c0_1] : memref<4x22x22xf32, #tpu.memory_space<vmem>>, vector<4x22x3xf32>
    tpu.vector_store %arg6[%c0, %c0_0, %c0_1], %2 {strides = array<i32>} : memref<4x22x22xf32, #tpu.memory_space<vmem>>, vector<4x22x3xf32>,
    %cst_2 = arith.constant 0.000000e+00 : f32
    %4 = vector.broadcast %cst_2 : f32 to vector<4x22x3xf32>
    %c0_3 = arith.constant 0 : index
    %c0_4 = arith.constant 0 : index
    %c19 = arith.constant 19 : index
    %5 = vector.load %arg6[%c0_3, %c0_4, %c19] : memref<4x22x22xf32, #tpu.memory_space<vmem>>, vector<4x22x3xf32>
    tpu.vector_store %arg6[%c0_3, %c0_4, %c19], %4 {strides = array<i32>} : memref<4x22x22xf32, #tpu.memory_space<vmem>>, vector<4x22x3xf32>,
    %c0_5 = arith.constant 0 : index
    %c0_6 = arith.constant 0 : index
    %6 = arith.index_cast %1 : i32 to index
    %c0_7 = arith.constant 0 : index
    %7 = vector.load %arg4[%c0_5, %c0_6, %6, %c0_7] : memref<1x4x16x16xf32, #tpu.memory_space<vmem>>, vector<1x4x16x16xf32>
    %8 = vector.shape_cast %7 : vector<1x4x16x16xf32> to vector<4x16x16xf32>
    %c0_8 = arith.constant 0 : index
    %c3 = arith.constant 3 : index
    %c3_9 = arith.constant 3 : index
    %9 = vector.load %arg6[%c0_8, %c3, %c3_9] : memref<4x22x22xf32, #tpu.memory_space<vmem>>, vector<4x16x16xf32>
    tpu.vector_store %arg6[%c0_8, %c3, %c3_9], %8 {strides = array<i32>} : memref<4x22x22xf32, #tpu.memory_space<vmem>>, vector<4x16x16xf32>,
    %c0_i32 = arith.constant 0 : i32
    %10 = arith.cmpi sgt, %arg1, %c0_i32 : i32
    %11 = arith.extui %10 : i1 to i32
    %c0_i32_10 = arith.constant 0 : i32
    %12 = arith.cmpi ne, %11, %c0_i32_10 : i32
    scf.if %12 {
      %c3_i32 = arith.constant 3 : i32
      %1079 = arith.subi %1, %c3_i32 : i32
      %c0_114 = arith.constant 0 : index
      %c0_115 = arith.constant 0 : index
      %1080 = arith.index_cast %1079 : i32 to index
      %c0_116 = arith.constant 0 : index
      %1081 = vector.load %arg4[%c0_114, %c0_115, %1080, %c0_116] : memref<1x4x16x16xf32, #tpu.memory_space<vmem>>, vector<1x4x3x16xf32>
      %1082 = vector.shape_cast %1081 : vector<1x4x3x16xf32> to vector<4x3x16xf32>
      %c0_117 = arith.constant 0 : index
      %c0_118 = arith.constant 0 : index
      %c3_119 = arith.constant 3 : index
      %1083 = vector.load %arg6[%c0_117, %c0_118, %c3_119] : memref<4x22x22xf32, #tpu.memory_space<vmem>>, vector<4x3x16xf32>
      tpu.vector_store %arg6[%c0_117, %c0_118, %c3_119], %1082 {strides = array<i32>} : memref<4x22x22xf32, #tpu.memory_space<vmem>>, vector<4x3x16xf32>,
    } else {
    }
    %c0_i32_11 = arith.constant 0 : i32
    %13 = arith.cmpi eq, %arg1, %c0_i32_11 : i32
    %14 = arith.extui %13 : i1 to i32
    %c0_i32_12 = arith.constant 0 : i32
    %15 = arith.cmpi ne, %14, %c0_i32_12 : i32
    scf.if %15 {
      %cst_114 = arith.constant 0.000000e+00 : f32
      %1079 = vector.broadcast %cst_114 : f32 to vector<4x3x16xf32>
      %c0_115 = arith.constant 0 : index
      %c0_116 = arith.constant 0 : index
      %c3_117 = arith.constant 3 : index
      %1080 = vector.load %arg6[%c0_115, %c0_116, %c3_117] : memref<4x22x22xf32, #tpu.memory_space<vmem>>, vector<4x3x16xf32>
      tpu.vector_store %arg6[%c0_115, %c0_116, %c3_117], %1079 {strides = array<i32>} : memref<4x22x22xf32, #tpu.memory_space<vmem>>, vector<4x3x16xf32>,
    } else {
    }
    %c0_i32_13 = arith.constant 0 : i32
    %16 = arith.cmpi slt, %arg1, %c0_i32_13 : i32
    %17 = arith.extui %16 : i1 to i32
    %c0_i32_14 = arith.constant 0 : i32
    %18 = arith.cmpi ne, %17, %c0_i32_14 : i32
    scf.if %18 {
      %c16_i32_114 = arith.constant 16 : i32
      %1079 = arith.addi %1, %c16_i32_114 : i32
      %c0_115 = arith.constant 0 : index
      %c0_116 = arith.constant 0 : index
      %1080 = arith.index_cast %1079 : i32 to index
      %c0_117 = arith.constant 0 : index
      %1081 = vector.load %arg4[%c0_115, %c0_116, %1080, %c0_117] : memref<1x4x16x16xf32, #tpu.memory_space<vmem>>, vector<1x4x3x16xf32>
      %1082 = vector.shape_cast %1081 : vector<1x4x3x16xf32> to vector<4x3x16xf32>
      %c0_118 = arith.constant 0 : index
      %c19_119 = arith.constant 19 : index
      %c3_120 = arith.constant 3 : index
      %1083 = vector.load %arg6[%c0_118, %c19_119, %c3_120] : memref<4x22x22xf32, #tpu.memory_space<vmem>>, vector<4x3x16xf32>
      tpu.vector_store %arg6[%c0_118, %c19_119, %c3_120], %1082 {strides = array<i32>} : memref<4x22x22xf32, #tpu.memory_space<vmem>>, vector<4x3x16xf32>,
    } else {
    }
    %c0_i32_15 = arith.constant 0 : i32
    %19 = arith.cmpi eq, %arg1, %c0_i32_15 : i32
    %20 = arith.extui %19 : i1 to i32
    %c0_i32_16 = arith.constant 0 : i32
    %21 = arith.cmpi ne, %20, %c0_i32_16 : i32
    scf.if %21 {
      %cst_114 = arith.constant 0.000000e+00 : f32
      %1079 = vector.broadcast %cst_114 : f32 to vector<4x3x16xf32>
      %c0_115 = arith.constant 0 : index
      %c19_116 = arith.constant 19 : index
      %c3_117 = arith.constant 3 : index
      %1080 = vector.load %arg6[%c0_115, %c19_116, %c3_117] : memref<4x22x22xf32, #tpu.memory_space<vmem>>, vector<4x3x16xf32>
      tpu.vector_store %arg6[%c0_115, %c19_116, %c3_117], %1079 {strides = array<i32>} : memref<4x22x22xf32, #tpu.memory_space<vmem>>, vector<4x3x16xf32>,
    } else {
    }
    %cst_17 = arith.constant 0.000000e+00 : f32
    %22 = vector.broadcast %cst_17 : f32 to vector<16x16xf32>
    %c0_18 = arith.constant 0 : index
    %c0_19 = arith.constant 0 : index
    %c0_20 = arith.constant 0 : index
    %23 = vector.load %arg6[%c0_18, %c0_19, %c0_20] : memref<4x22x22xf32, #tpu.memory_space<vmem>>, vector<1x16x22xf32>
    %24 = vector.shape_cast %23 : vector<1x16x22xf32> to vector<16x22xf32>
    %c0_21 = arith.constant 0 : index
    %25 = memref.load %arg3[%c0_21] : memref<196xf32, #tpu.memory_space<smem>>
    %26 = vector.extract_strided_slice %24 {offsets = [0, 0], sizes = [16, 16], strides = [1, 1]} : vector<16x22xf32> to vector<16x16xf32>
    %27 = vector.broadcast %25 : f32 to vector<16x16xf32>
    %28 = arith.mulf %26, %27 : vector<16x16xf32>
    %29 = arith.addf %22, %28 : vector<16x16xf32>
    %c1 = arith.constant 1 : index
    %30 = memref.load %arg3[%c1] : memref<196xf32, #tpu.memory_space<smem>>
    %31 = vector.extract_strided_slice %24 {offsets = [0, 1], sizes = [16, 16], strides = [1, 1]} : vector<16x22xf32> to vector<16x16xf32>
    %32 = vector.broadcast %30 : f32 to vector<16x16xf32>
    %33 = arith.mulf %31, %32 : vector<16x16xf32>
    %34 = arith.addf %22, %33 : vector<16x16xf32>
    %c2 = arith.constant 2 : index
    %35 = memref.load %arg3[%c2] : memref<196xf32, #tpu.memory_space<smem>>
    %36 = vector.extract_strided_slice %24 {offsets = [0, 2], sizes = [16, 16], strides = [1, 1]} : vector<16x22xf32> to vector<16x16xf32>
    %37 = vector.broadcast %35 : f32 to vector<16x16xf32>
    %38 = arith.mulf %36, %37 : vector<16x16xf32>
    %39 = arith.addf %22, %38 : vector<16x16xf32>
    %c3_22 = arith.constant 3 : index
    %40 = memref.load %arg3[%c3_22] : memref<196xf32, #tpu.memory_space<smem>>
    %41 = vector.extract_strided_slice %24 {offsets = [0, 3], sizes = [16, 16], strides = [1, 1]} : vector<16x22xf32> to vector<16x16xf32>
    %42 = vector.broadcast %40 : f32 to vector<16x16xf32>
    %43 = arith.mulf %41, %42 : vector<16x16xf32>
    %44 = arith.addf %22, %43 : vector<16x16xf32>
    %c4 = arith.constant 4 : index
    %45 = memref.load %arg3[%c4] : memref<196xf32, #tpu.memory_space<smem>>
    %46 = vector.extract_strided_slice %24 {offsets = [0, 4], sizes = [16, 16], strides = [1, 1]} : vector<16x22xf32> to vector<16x16xf32>
    %47 = vector.broadcast %45 : f32 to vector<16x16xf32>
    %48 = arith.mulf %46, %47 : vector<16x16xf32>
    %49 = arith.addf %29, %48 : vector<16x16xf32>
    %c5 = arith.constant 5 : index
    %50 = memref.load %arg3[%c5] : memref<196xf32, #tpu.memory_space<smem>>
    %51 = vector.extract_strided_slice %24 {offsets = [0, 5], sizes = [16, 16], strides = [1, 1]} : vector<16x22xf32> to vector<16x16xf32>
    %52 = vector.broadcast %50 : f32 to vector<16x16xf32>
    %53 = arith.mulf %51, %52 : vector<16x16xf32>
    %54 = arith.addf %34, %53 : vector<16x16xf32>
    %c6 = arith.constant 6 : index
    %55 = memref.load %arg3[%c6] : memref<196xf32, #tpu.memory_space<smem>>
    %56 = vector.extract_strided_slice %24 {offsets = [0, 6], sizes = [16, 16], strides = [1, 1]} : vector<16x22xf32> to vector<16x16xf32>
    %57 = vector.broadcast %55 : f32 to vector<16x16xf32>
    %58 = arith.mulf %56, %57 : vector<16x16xf32>
    %59 = arith.addf %39, %58 : vector<16x16xf32>
    %c0_23 = arith.constant 0 : index
    %c1_24 = arith.constant 1 : index
    %c0_25 = arith.constant 0 : index
    %60 = vector.load %arg6[%c0_23, %c1_24, %c0_25] : memref<4x22x22xf32, #tpu.memory_space<vmem>>, vector<1x16x22xf32>
    %61 = vector.shape_cast %60 : vector<1x16x22xf32> to vector<16x22xf32>
    %c7 = arith.constant 7 : index
    %62 = memref.load %arg3[%c7] : memref<196xf32, #tpu.memory_space<smem>>
    %63 = vector.extract_strided_slice %61 {offsets = [0, 0], sizes = [16, 16], strides = [1, 1]} : vector<16x22xf32> to vector<16x16xf32>
    %64 = vector.broadcast %62 : f32 to vector<16x16xf32>
    %65 = arith.mulf %63, %64 : vector<16x16xf32>
    %66 = arith.addf %44, %65 : vector<16x16xf32>
    %c8 = arith.constant 8 : index
    %67 = memref.load %arg3[%c8] : memref<196xf32, #tpu.memory_space<smem>>
    %68 = vector.extract_strided_slice %61 {offsets = [0, 1], sizes = [16, 16], strides = [1, 1]} : vector<16x22xf32> to vector<16x16xf32>
    %69 = vector.broadcast %67 : f32 to vector<16x16xf32>
    %70 = arith.mulf %68, %69 : vector<16x16xf32>
    %71 = arith.addf %49, %70 : vector<16x16xf32>
    %c9 = arith.constant 9 : index
    %72 = memref.load %arg3[%c9] : memref<196xf32, #tpu.memory_space<smem>>
    %73 = vector.extract_strided_slice %61 {offsets = [0, 2], sizes = [16, 16], strides = [1, 1]} : vector<16x22xf32> to vector<16x16xf32>
    %74 = vector.broadcast %72 : f32 to vector<16x16xf32>
    %75 = arith.mulf %73, %74 : vector<16x16xf32>
    %76 = arith.addf %54, %75 : vector<16x16xf32>
    %c10 = arith.constant 10 : index
    %77 = memref.load %arg3[%c10] : memref<196xf32, #tpu.memory_space<smem>>
    %78 = vector.extract_strided_slice %61 {offsets = [0, 3], sizes = [16, 16], strides = [1, 1]} : vector<16x22xf32> to vector<16x16xf32>
    %79 = vector.broadcast %77 : f32 to vector<16x16xf32>
    %80 = arith.mulf %78, %79 : vector<16x16xf32>
    %81 = arith.addf %59, %80 : vector<16x16xf32>
    %c11 = arith.constant 11 : index
    %82 = memref.load %arg3[%c11] : memref<196xf32, #tpu.memory_space<smem>>
    %83 = vector.extract_strided_slice %61 {offsets = [0, 4], sizes = [16, 16], strides = [1, 1]} : vector<16x22xf32> to vector<16x16xf32>
    %84 = vector.broadcast %82 : f32 to vector<16x16xf32>
    %85 = arith.mulf %83, %84 : vector<16x16xf32>
    %86 = arith.addf %66, %85 : vector<16x16xf32>
    %c12 = arith.constant 12 : index
    %87 = memref.load %arg3[%c12] : memref<196xf32, #tpu.memory_space<smem>>
    %88 = vector.extract_strided_slice %61 {offsets = [0, 5], sizes = [16, 16], strides = [1, 1]} : vector<16x22xf32> to vector<16x16xf32>
    %89 = vector.broadcast %87 : f32 to vector<16x16xf32>
    %90 = arith.mulf %88, %89 : vector<16x16xf32>
    %91 = arith.addf %71, %90 : vector<16x16xf32>
    %c13 = arith.constant 13 : index
    %92 = memref.load %arg3[%c13] : memref<196xf32, #tpu.memory_space<smem>>
    %93 = vector.extract_strided_slice %61 {offsets = [0, 6], sizes = [16, 16], strides = [1, 1]} : vector<16x22xf32> to vector<16x16xf32>
    %94 = vector.broadcast %92 : f32 to vector<16x16xf32>
    %95 = arith.mulf %93, %94 : vector<16x16xf32>
    %96 = arith.addf %76, %95 : vector<16x16xf32>
    %c0_26 = arith.constant 0 : index
    %c2_27 = arith.constant 2 : index
    %c0_28 = arith.constant 0 : index
    %97 = vector.load %arg6[%c0_26, %c2_27, %c0_28] : memref<4x22x22xf32, #tpu.memory_space<vmem>>, vector<1x16x22xf32>
    %98 = vector.shape_cast %97 : vector<1x16x22xf32> to vector<16x22xf32>
    %c14 = arith.constant 14 : index
    %99 = memref.load %arg3[%c14] : memref<196xf32, #tpu.memory_space<smem>>
    %100 = vector.extract_strided_slice %98 {offsets = [0, 0], sizes = [16, 16], strides = [1, 1]} : vector<16x22xf32> to vector<16x16xf32>
    %101 = vector.broadcast %99 : f32 to vector<16x16xf32>
    %102 = arith.mulf %100, %101 : vector<16x16xf32>
    %103 = arith.addf %81, %102 : vector<16x16xf32>
    %c15 = arith.constant 15 : index
    %104 = memref.load %arg3[%c15] : memref<196xf32, #tpu.memory_space<smem>>
    %105 = vector.extract_strided_slice %98 {offsets = [0, 1], sizes = [16, 16], strides = [1, 1]} : vector<16x22xf32> to vector<16x16xf32>
    %106 = vector.broadcast %104 : f32 to vector<16x16xf32>
    %107 = arith.mulf %105, %106 : vector<16x16xf32>
    %108 = arith.addf %86, %107 : vector<16x16xf32>
    %c16 = arith.constant 16 : index
    %109 = memref.load %arg3[%c16] : memref<196xf32, #tpu.memory_space<smem>>
    %110 = vector.extract_strided_slice %98 {offsets = [0, 2], sizes = [16, 16], strides = [1, 1]} : vector<16x22xf32> to vector<16x16xf32>
    %111 = vector.broadcast %109 : f32 to vector<16x16xf32>
    %112 = arith.mulf %110, %111 : vector<16x16xf32>
    %113 = arith.addf %91, %112 : vector<16x16xf32>
    %c17 = arith.constant 17 : index
    %114 = memref.load %arg3[%c17] : memref<196xf32, #tpu.memory_space<smem>>
    %115 = vector.extract_strided_slice %98 {offsets = [0, 3], sizes = [16, 16], strides = [1, 1]} : vector<16x22xf32> to vector<16x16xf32>
    %116 = vector.broadcast %114 : f32 to vector<16x16xf32>
    %117 = arith.mulf %115, %116 : vector<16x16xf32>
    %118 = arith.addf %96, %117 : vector<16x16xf32>
    %c18 = arith.constant 18 : index
    %119 = memref.load %arg3[%c18] : memref<196xf32, #tpu.memory_space<smem>>
    %120 = vector.extract_strided_slice %98 {offsets = [0, 4], sizes = [16, 16], strides = [1, 1]} : vector<16x22xf32> to vector<16x16xf32>
    %121 = vector.broadcast %119 : f32 to vector<16x16xf32>
    %122 = arith.mulf %120, %121 : vector<16x16xf32>
    %123 = arith.addf %103, %122 : vector<16x16xf32>
    %c19_29 = arith.constant 19 : index
    %124 = memref.load %arg3[%c19_29] : memref<196xf32, #tpu.memory_space<smem>>
    %125 = vector.extract_strided_slice %98 {offsets = [0, 5], sizes = [16, 16], strides = [1, 1]} : vector<16x22xf32> to vector<16x16xf32>
    %126 = vector.broadcast %124 : f32 to vector<16x16xf32>
    %127 = arith.mulf %125, %126 : vector<16x16xf32>
    %128 = arith.addf %108, %127 : vector<16x16xf32>
    %c20 = arith.constant 20 : index
    %129 = memref.load %arg3[%c20] : memref<196xf32, #tpu.memory_space<smem>>
    %130 = vector.extract_strided_slice %98 {offsets = [0, 6], sizes = [16, 16], strides = [1, 1]} : vector<16x22xf32> to vector<16x16xf32>
    %131 = vector.broadcast %129 : f32 to vector<16x16xf32>
    %132 = arith.mulf %130, %131 : vector<16x16xf32>
    %133 = arith.addf %113, %132 : vector<16x16xf32>
    %c0_30 = arith.constant 0 : index
    %c3_31 = arith.constant 3 : index
    %c0_32 = arith.constant 0 : index
    %134 = vector.load %arg6[%c0_30, %c3_31, %c0_32] : memref<4x22x22xf32, #tpu.memory_space<vmem>>, vector<1x16x22xf32>
    %135 = vector.shape_cast %134 : vector<1x16x22xf32> to vector<16x22xf32>
    %c21 = arith.constant 21 : index
    %136 = memref.load %arg3[%c21] : memref<196xf32, #tpu.memory_space<smem>>
    %137 = vector.extract_strided_slice %135 {offsets = [0, 0], sizes = [16, 16], strides = [1, 1]} : vector<16x22xf32> to vector<16x16xf32>
    %138 = vector.broadcast %136 : f32 to vector<16x16xf32>
    %139 = arith.mulf %137, %138 : vector<16x16xf32>
    %140 = arith.addf %118, %139 : vector<16x16xf32>
    %c22 = arith.constant 22 : index
    %141 = memref.load %arg3[%c22] : memref<196xf32, #tpu.memory_space<smem>>
    %142 = vector.extract_strided_slice %135 {offsets = [0, 1], sizes = [16, 16], strides = [1, 1]} : vector<16x22xf32> to vector<16x16xf32>
    %143 = vector.broadcast %141 : f32 to vector<16x16xf32>
    %144 = arith.mulf %142, %143 : vector<16x16xf32>
    %145 = arith.addf %123, %144 : vector<16x16xf32>
    %c23 = arith.constant 23 : index
    %146 = memref.load %arg3[%c23] : memref<196xf32, #tpu.memory_space<smem>>
    %147 = vector.extract_strided_slice %135 {offsets = [0, 2], sizes = [16, 16], strides = [1, 1]} : vector<16x22xf32> to vector<16x16xf32>
    %148 = vector.broadcast %146 : f32 to vector<16x16xf32>
    %149 = arith.mulf %147, %148 : vector<16x16xf32>
    %150 = arith.addf %128, %149 : vector<16x16xf32>
    %c24 = arith.constant 24 : index
    %151 = memref.load %arg3[%c24] : memref<196xf32, #tpu.memory_space<smem>>
    %152 = vector.extract_strided_slice %135 {offsets = [0, 3], sizes = [16, 16], strides = [1, 1]} : vector<16x22xf32> to vector<16x16xf32>
    %153 = vector.broadcast %151 : f32 to vector<16x16xf32>
    %154 = arith.mulf %152, %153 : vector<16x16xf32>
    %155 = arith.addf %133, %154 : vector<16x16xf32>
    %c25 = arith.constant 25 : index
    %156 = memref.load %arg3[%c25] : memref<196xf32, #tpu.memory_space<smem>>
    %157 = vector.extract_strided_slice %135 {offsets = [0, 4], sizes = [16, 16], strides = [1, 1]} : vector<16x22xf32> to vector<16x16xf32>
    %158 = vector.broadcast %156 : f32 to vector<16x16xf32>
    %159 = arith.mulf %157, %158 : vector<16x16xf32>
    %160 = arith.addf %140, %159 : vector<16x16xf32>
    %c26 = arith.constant 26 : index
    %161 = memref.load %arg3[%c26] : memref<196xf32, #tpu.memory_space<smem>>
    %162 = vector.extract_strided_slice %135 {offsets = [0, 5], sizes = [16, 16], strides = [1, 1]} : vector<16x22xf32> to vector<16x16xf32>
    %163 = vector.broadcast %161 : f32 to vector<16x16xf32>
    %164 = arith.mulf %162, %163 : vector<16x16xf32>
    %165 = arith.addf %145, %164 : vector<16x16xf32>
    %c27 = arith.constant 27 : index
    %166 = memref.load %arg3[%c27] : memref<196xf32, #tpu.memory_space<smem>>
    %167 = vector.extract_strided_slice %135 {offsets = [0, 6], sizes = [16, 16], strides = [1, 1]} : vector<16x22xf32> to vector<16x16xf32>
    %168 = vector.broadcast %166 : f32 to vector<16x16xf32>
    %169 = arith.mulf %167, %168 : vector<16x16xf32>
    %170 = arith.addf %150, %169 : vector<16x16xf32>
    %c0_33 = arith.constant 0 : index
    %c4_34 = arith.constant 4 : index
    %c0_35 = arith.constant 0 : index
    %171 = vector.load %arg6[%c0_33, %c4_34, %c0_35] : memref<4x22x22xf32, #tpu.memory_space<vmem>>, vector<1x16x22xf32>
    %172 = vector.shape_cast %171 : vector<1x16x22xf32> to vector<16x22xf32>
    %c28 = arith.constant 28 : index
    %173 = memref.load %arg3[%c28] : memref<196xf32, #tpu.memory_space<smem>>
    %174 = vector.extract_strided_slice %172 {offsets = [0, 0], sizes = [16, 16], strides = [1, 1]} : vector<16x22xf32> to vector<16x16xf32>
    %175 = vector.broadcast %173 : f32 to vector<16x16xf32>
    %176 = arith.mulf %174, %175 : vector<16x16xf32>
    %177 = arith.addf %155, %176 : vector<16x16xf32>
    %c29 = arith.constant 29 : index
    %178 = memref.load %arg3[%c29] : memref<196xf32, #tpu.memory_space<smem>>
    %179 = vector.extract_strided_slice %172 {offsets = [0, 1], sizes = [16, 16], strides = [1, 1]} : vector<16x22xf32> to vector<16x16xf32>
    %180 = vector.broadcast %178 : f32 to vector<16x16xf32>
    %181 = arith.mulf %179, %180 : vector<16x16xf32>
    %182 = arith.addf %160, %181 : vector<16x16xf32>
    %c30 = arith.constant 30 : index
    %183 = memref.load %arg3[%c30] : memref<196xf32, #tpu.memory_space<smem>>
    %184 = vector.extract_strided_slice %172 {offsets = [0, 2], sizes = [16, 16], strides = [1, 1]} : vector<16x22xf32> to vector<16x16xf32>
    %185 = vector.broadcast %183 : f32 to vector<16x16xf32>
    %186 = arith.mulf %184, %185 : vector<16x16xf32>
    %187 = arith.addf %165, %186 : vector<16x16xf32>
    %c31 = arith.constant 31 : index
    %188 = memref.load %arg3[%c31] : memref<196xf32, #tpu.memory_space<smem>>
    %189 = vector.extract_strided_slice %172 {offsets = [0, 3], sizes = [16, 16], strides = [1, 1]} : vector<16x22xf32> to vector<16x16xf32>
    %190 = vector.broadcast %188 : f32 to vector<16x16xf32>
    %191 = arith.mulf %189, %190 : vector<16x16xf32>
    %192 = arith.addf %170, %191 : vector<16x16xf32>
    %c32 = arith.constant 32 : index
    %193 = memref.load %arg3[%c32] : memref<196xf32, #tpu.memory_space<smem>>
    %194 = vector.extract_strided_slice %172 {offsets = [0, 4], sizes = [16, 16], strides = [1, 1]} : vector<16x22xf32> to vector<16x16xf32>
    %195 = vector.broadcast %193 : f32 to vector<16x16xf32>
    %196 = arith.mulf %194, %195 : vector<16x16xf32>
    %197 = arith.addf %177, %196 : vector<16x16xf32>
    %c33 = arith.constant 33 : index
    %198 = memref.load %arg3[%c33] : memref<196xf32, #tpu.memory_space<smem>>
    %199 = vector.extract_strided_slice %172 {offsets = [0, 5], sizes = [16, 16], strides = [1, 1]} : vector<16x22xf32> to vector<16x16xf32>
    %200 = vector.broadcast %198 : f32 to vector<16x16xf32>
    %201 = arith.mulf %199, %200 : vector<16x16xf32>
    %202 = arith.addf %182, %201 : vector<16x16xf32>
    %c34 = arith.constant 34 : index
    %203 = memref.load %arg3[%c34] : memref<196xf32, #tpu.memory_space<smem>>
    %204 = vector.extract_strided_slice %172 {offsets = [0, 6], sizes = [16, 16], strides = [1, 1]} : vector<16x22xf32> to vector<16x16xf32>
    %205 = vector.broadcast %203 : f32 to vector<16x16xf32>
    %206 = arith.mulf %204, %205 : vector<16x16xf32>
    %207 = arith.addf %187, %206 : vector<16x16xf32>
    %c0_36 = arith.constant 0 : index
    %c5_37 = arith.constant 5 : index
    %c0_38 = arith.constant 0 : index
    %208 = vector.load %arg6[%c0_36, %c5_37, %c0_38] : memref<4x22x22xf32, #tpu.memory_space<vmem>>, vector<1x16x22xf32>
    %209 = vector.shape_cast %208 : vector<1x16x22xf32> to vector<16x22xf32>
    %c35 = arith.constant 35 : index
    %210 = memref.load %arg3[%c35] : memref<196xf32, #tpu.memory_space<smem>>
    %211 = vector.extract_strided_slice %209 {offsets = [0, 0], sizes = [16, 16], strides = [1, 1]} : vector<16x22xf32> to vector<16x16xf32>
    %212 = vector.broadcast %210 : f32 to vector<16x16xf32>
    %213 = arith.mulf %211, %212 : vector<16x16xf32>
    %214 = arith.addf %192, %213 : vector<16x16xf32>
    %c36 = arith.constant 36 : index
    %215 = memref.load %arg3[%c36] : memref<196xf32, #tpu.memory_space<smem>>
    %216 = vector.extract_strided_slice %209 {offsets = [0, 1], sizes = [16, 16], strides = [1, 1]} : vector<16x22xf32> to vector<16x16xf32>
    %217 = vector.broadcast %215 : f32 to vector<16x16xf32>
    %218 = arith.mulf %216, %217 : vector<16x16xf32>
    %219 = arith.addf %197, %218 : vector<16x16xf32>
    %c37 = arith.constant 37 : index
    %220 = memref.load %arg3[%c37] : memref<196xf32, #tpu.memory_space<smem>>
    %221 = vector.extract_strided_slice %209 {offsets = [0, 2], sizes = [16, 16], strides = [1, 1]} : vector<16x22xf32> to vector<16x16xf32>
    %222 = vector.broadcast %220 : f32 to vector<16x16xf32>
    %223 = arith.mulf %221, %222 : vector<16x16xf32>
    %224 = arith.addf %202, %223 : vector<16x16xf32>
    %c38 = arith.constant 38 : index
    %225 = memref.load %arg3[%c38] : memref<196xf32, #tpu.memory_space<smem>>
    %226 = vector.extract_strided_slice %209 {offsets = [0, 3], sizes = [16, 16], strides = [1, 1]} : vector<16x22xf32> to vector<16x16xf32>
    %227 = vector.broadcast %225 : f32 to vector<16x16xf32>
    %228 = arith.mulf %226, %227 : vector<16x16xf32>
    %229 = arith.addf %207, %228 : vector<16x16xf32>
    %c39 = arith.constant 39 : index
    %230 = memref.load %arg3[%c39] : memref<196xf32, #tpu.memory_space<smem>>
    %231 = vector.extract_strided_slice %209 {offsets = [0, 4], sizes = [16, 16], strides = [1, 1]} : vector<16x22xf32> to vector<16x16xf32>
    %232 = vector.broadcast %230 : f32 to vector<16x16xf32>
    %233 = arith.mulf %231, %232 : vector<16x16xf32>
    %234 = arith.addf %214, %233 : vector<16x16xf32>
    %c40 = arith.constant 40 : index
    %235 = memref.load %arg3[%c40] : memref<196xf32, #tpu.memory_space<smem>>
    %236 = vector.extract_strided_slice %209 {offsets = [0, 5], sizes = [16, 16], strides = [1, 1]} : vector<16x22xf32> to vector<16x16xf32>
    %237 = vector.broadcast %235 : f32 to vector<16x16xf32>
    %238 = arith.mulf %236, %237 : vector<16x16xf32>
    %239 = arith.addf %219, %238 : vector<16x16xf32>
    %c41 = arith.constant 41 : index
    %240 = memref.load %arg3[%c41] : memref<196xf32, #tpu.memory_space<smem>>
    %241 = vector.extract_strided_slice %209 {offsets = [0, 6], sizes = [16, 16], strides = [1, 1]} : vector<16x22xf32> to vector<16x16xf32>
    %242 = vector.broadcast %240 : f32 to vector<16x16xf32>
    %243 = arith.mulf %241, %242 : vector<16x16xf32>
    %244 = arith.addf %224, %243 : vector<16x16xf32>
    %c0_39 = arith.constant 0 : index
    %c6_40 = arith.constant 6 : index
    %c0_41 = arith.constant 0 : index
    %245 = vector.load %arg6[%c0_39, %c6_40, %c0_41] : memref<4x22x22xf32, #tpu.memory_space<vmem>>, vector<1x16x22xf32>
    %246 = vector.shape_cast %245 : vector<1x16x22xf32> to vector<16x22xf32>
    %c42 = arith.constant 42 : index
    %247 = memref.load %arg3[%c42] : memref<196xf32, #tpu.memory_space<smem>>
    %248 = vector.extract_strided_slice %246 {offsets = [0, 0], sizes = [16, 16], strides = [1, 1]} : vector<16x22xf32> to vector<16x16xf32>
    %249 = vector.broadcast %247 : f32 to vector<16x16xf32>
    %250 = arith.mulf %248, %249 : vector<16x16xf32>
    %251 = arith.addf %229, %250 : vector<16x16xf32>
    %c43 = arith.constant 43 : index
    %252 = memref.load %arg3[%c43] : memref<196xf32, #tpu.memory_space<smem>>
    %253 = vector.extract_strided_slice %246 {offsets = [0, 1], sizes = [16, 16], strides = [1, 1]} : vector<16x22xf32> to vector<16x16xf32>
    %254 = vector.broadcast %252 : f32 to vector<16x16xf32>
    %255 = arith.mulf %253, %254 : vector<16x16xf32>
    %256 = arith.addf %234, %255 : vector<16x16xf32>
    %c44 = arith.constant 44 : index
    %257 = memref.load %arg3[%c44] : memref<196xf32, #tpu.memory_space<smem>>
    %258 = vector.extract_strided_slice %246 {offsets = [0, 2], sizes = [16, 16], strides = [1, 1]} : vector<16x22xf32> to vector<16x16xf32>
    %259 = vector.broadcast %257 : f32 to vector<16x16xf32>
    %260 = arith.mulf %258, %259 : vector<16x16xf32>
    %261 = arith.addf %239, %260 : vector<16x16xf32>
    %c45 = arith.constant 45 : index
    %262 = memref.load %arg3[%c45] : memref<196xf32, #tpu.memory_space<smem>>
    %263 = vector.extract_strided_slice %246 {offsets = [0, 3], sizes = [16, 16], strides = [1, 1]} : vector<16x22xf32> to vector<16x16xf32>
    %264 = vector.broadcast %262 : f32 to vector<16x16xf32>
    %265 = arith.mulf %263, %264 : vector<16x16xf32>
    %266 = arith.addf %244, %265 : vector<16x16xf32>
    %c46 = arith.constant 46 : index
    %267 = memref.load %arg3[%c46] : memref<196xf32, #tpu.memory_space<smem>>
    %268 = vector.extract_strided_slice %246 {offsets = [0, 4], sizes = [16, 16], strides = [1, 1]} : vector<16x22xf32> to vector<16x16xf32>
    %269 = vector.broadcast %267 : f32 to vector<16x16xf32>
    %270 = arith.mulf %268, %269 : vector<16x16xf32>
    %271 = arith.addf %251, %270 : vector<16x16xf32>
    %c47 = arith.constant 47 : index
    %272 = memref.load %arg3[%c47] : memref<196xf32, #tpu.memory_space<smem>>
    %273 = vector.extract_strided_slice %246 {offsets = [0, 5], sizes = [16, 16], strides = [1, 1]} : vector<16x22xf32> to vector<16x16xf32>
    %274 = vector.broadcast %272 : f32 to vector<16x16xf32>
    %275 = arith.mulf %273, %274 : vector<16x16xf32>
    %276 = arith.addf %256, %275 : vector<16x16xf32>
    %c48 = arith.constant 48 : index
    %277 = memref.load %arg3[%c48] : memref<196xf32, #tpu.memory_space<smem>>
    %278 = vector.extract_strided_slice %246 {offsets = [0, 6], sizes = [16, 16], strides = [1, 1]} : vector<16x22xf32> to vector<16x16xf32>
    %279 = vector.broadcast %277 : f32 to vector<16x16xf32>
    %280 = arith.mulf %278, %279 : vector<16x16xf32>
    %281 = arith.addf %261, %280 : vector<16x16xf32>
    %c1_42 = arith.constant 1 : index
    %c0_43 = arith.constant 0 : index
    %c0_44 = arith.constant 0 : index
    %282 = vector.load %arg6[%c1_42, %c0_43, %c0_44] : memref<4x22x22xf32, #tpu.memory_space<vmem>>, vector<1x16x22xf32>
    %283 = vector.shape_cast %282 : vector<1x16x22xf32> to vector<16x22xf32>
    %c49 = arith.constant 49 : index
    %284 = memref.load %arg3[%c49] : memref<196xf32, #tpu.memory_space<smem>>
    %285 = vector.extract_strided_slice %283 {offsets = [0, 0], sizes = [16, 16], strides = [1, 1]} : vector<16x22xf32> to vector<16x16xf32>
    %286 = vector.broadcast %284 : f32 to vector<16x16xf32>
    %287 = arith.mulf %285, %286 : vector<16x16xf32>
    %288 = arith.addf %281, %287 : vector<16x16xf32>
    %c50 = arith.constant 50 : index
    %289 = memref.load %arg3[%c50] : memref<196xf32, #tpu.memory_space<smem>>
    %290 = vector.extract_strided_slice %283 {offsets = [0, 1], sizes = [16, 16], strides = [1, 1]} : vector<16x22xf32> to vector<16x16xf32>
    %291 = vector.broadcast %289 : f32 to vector<16x16xf32>
    %292 = arith.mulf %290, %291 : vector<16x16xf32>
    %293 = arith.addf %266, %292 : vector<16x16xf32>
    %c51 = arith.constant 51 : index
    %294 = memref.load %arg3[%c51] : memref<196xf32, #tpu.memory_space<smem>>
    %295 = vector.extract_strided_slice %283 {offsets = [0, 2], sizes = [16, 16], strides = [1, 1]} : vector<16x22xf32> to vector<16x16xf32>
    %296 = vector.broadcast %294 : f32 to vector<16x16xf32>
    %297 = arith.mulf %295, %296 : vector<16x16xf32>
    %298 = arith.addf %271, %297 : vector<16x16xf32>
    %c52 = arith.constant 52 : index
    %299 = memref.load %arg3[%c52] : memref<196xf32, #tpu.memory_space<smem>>
    %300 = vector.extract_strided_slice %283 {offsets = [0, 3], sizes = [16, 16], strides = [1, 1]} : vector<16x22xf32> to vector<16x16xf32>
    %301 = vector.broadcast %299 : f32 to vector<16x16xf32>
    %302 = arith.mulf %300, %301 : vector<16x16xf32>
    %303 = arith.addf %276, %302 : vector<16x16xf32>
    %c53 = arith.constant 53 : index
    %304 = memref.load %arg3[%c53] : memref<196xf32, #tpu.memory_space<smem>>
    %305 = vector.extract_strided_slice %283 {offsets = [0, 4], sizes = [16, 16], strides = [1, 1]} : vector<16x22xf32> to vector<16x16xf32>
    %306 = vector.broadcast %304 : f32 to vector<16x16xf32>
    %307 = arith.mulf %305, %306 : vector<16x16xf32>
    %308 = arith.addf %288, %307 : vector<16x16xf32>
    %c54 = arith.constant 54 : index
    %309 = memref.load %arg3[%c54] : memref<196xf32, #tpu.memory_space<smem>>
    %310 = vector.extract_strided_slice %283 {offsets = [0, 5], sizes = [16, 16], strides = [1, 1]} : vector<16x22xf32> to vector<16x16xf32>
    %311 = vector.broadcast %309 : f32 to vector<16x16xf32>
    %312 = arith.mulf %310, %311 : vector<16x16xf32>
    %313 = arith.addf %293, %312 : vector<16x16xf32>
    %c55 = arith.constant 55 : index
    %314 = memref.load %arg3[%c55] : memref<196xf32, #tpu.memory_space<smem>>
    %315 = vector.extract_strided_slice %283 {offsets = [0, 6], sizes = [16, 16], strides = [1, 1]} : vector<16x22xf32> to vector<16x16xf32>
    %316 = vector.broadcast %314 : f32 to vector<16x16xf32>
    %317 = arith.mulf %315, %316 : vector<16x16xf32>
    %318 = arith.addf %298, %317 : vector<16x16xf32>
    %c1_45 = arith.constant 1 : index
    %c1_46 = arith.constant 1 : index
    %c0_47 = arith.constant 0 : index
    %319 = vector.load %arg6[%c1_45, %c1_46, %c0_47] : memref<4x22x22xf32, #tpu.memory_space<vmem>>, vector<1x16x22xf32>
    %320 = vector.shape_cast %319 : vector<1x16x22xf32> to vector<16x22xf32>
    %c56 = arith.constant 56 : index
    %321 = memref.load %arg3[%c56] : memref<196xf32, #tpu.memory_space<smem>>
    %322 = vector.extract_strided_slice %320 {offsets = [0, 0], sizes = [16, 16], strides = [1, 1]} : vector<16x22xf32> to vector<16x16xf32>
    %323 = vector.broadcast %321 : f32 to vector<16x16xf32>
    %324 = arith.mulf %322, %323 : vector<16x16xf32>
    %325 = arith.addf %303, %324 : vector<16x16xf32>
    %c57 = arith.constant 57 : index
    %326 = memref.load %arg3[%c57] : memref<196xf32, #tpu.memory_space<smem>>
    %327 = vector.extract_strided_slice %320 {offsets = [0, 1], sizes = [16, 16], strides = [1, 1]} : vector<16x22xf32> to vector<16x16xf32>
    %328 = vector.broadcast %326 : f32 to vector<16x16xf32>
    %329 = arith.mulf %327, %328 : vector<16x16xf32>
    %330 = arith.addf %308, %329 : vector<16x16xf32>
    %c58 = arith.constant 58 : index
    %331 = memref.load %arg3[%c58] : memref<196xf32, #tpu.memory_space<smem>>
    %332 = vector.extract_strided_slice %320 {offsets = [0, 2], sizes = [16, 16], strides = [1, 1]} : vector<16x22xf32> to vector<16x16xf32>
    %333 = vector.broadcast %331 : f32 to vector<16x16xf32>
    %334 = arith.mulf %332, %333 : vector<16x16xf32>
    %335 = arith.addf %313, %334 : vector<16x16xf32>
    %c59 = arith.constant 59 : index
    %336 = memref.load %arg3[%c59] : memref<196xf32, #tpu.memory_space<smem>>
    %337 = vector.extract_strided_slice %320 {offsets = [0, 3], sizes = [16, 16], strides = [1, 1]} : vector<16x22xf32> to vector<16x16xf32>
    %338 = vector.broadcast %336 : f32 to vector<16x16xf32>
    %339 = arith.mulf %337, %338 : vector<16x16xf32>
    %340 = arith.addf %318, %339 : vector<16x16xf32>
    %c60 = arith.constant 60 : index
    %341 = memref.load %arg3[%c60] : memref<196xf32, #tpu.memory_space<smem>>
    %342 = vector.extract_strided_slice %320 {offsets = [0, 4], sizes = [16, 16], strides = [1, 1]} : vector<16x22xf32> to vector<16x16xf32>
    %343 = vector.broadcast %341 : f32 to vector<16x16xf32>
    %344 = arith.mulf %342, %343 : vector<16x16xf32>
    %345 = arith.addf %325, %344 : vector<16x16xf32>
    %c61 = arith.constant 61 : index
    %346 = memref.load %arg3[%c61] : memref<196xf32, #tpu.memory_space<smem>>
    %347 = vector.extract_strided_slice %320 {offsets = [0, 5], sizes = [16, 16], strides = [1, 1]} : vector<16x22xf32> to vector<16x16xf32>
    %348 = vector.broadcast %346 : f32 to vector<16x16xf32>
    %349 = arith.mulf %347, %348 : vector<16x16xf32>
    %350 = arith.addf %330, %349 : vector<16x16xf32>
    %c62 = arith.constant 62 : index
    %351 = memref.load %arg3[%c62] : memref<196xf32, #tpu.memory_space<smem>>
    %352 = vector.extract_strided_slice %320 {offsets = [0, 6], sizes = [16, 16], strides = [1, 1]} : vector<16x22xf32> to vector<16x16xf32>
    %353 = vector.broadcast %351 : f32 to vector<16x16xf32>
    %354 = arith.mulf %352, %353 : vector<16x16xf32>
    %355 = arith.addf %335, %354 : vector<16x16xf32>
    %c1_48 = arith.constant 1 : index
    %c2_49 = arith.constant 2 : index
    %c0_50 = arith.constant 0 : index
    %356 = vector.load %arg6[%c1_48, %c2_49, %c0_50] : memref<4x22x22xf32, #tpu.memory_space<vmem>>, vector<1x16x22xf32>
    %357 = vector.shape_cast %356 : vector<1x16x22xf32> to vector<16x22xf32>
    %c63 = arith.constant 63 : index
    %358 = memref.load %arg3[%c63] : memref<196xf32, #tpu.memory_space<smem>>
    %359 = vector.extract_strided_slice %357 {offsets = [0, 0], sizes = [16, 16], strides = [1, 1]} : vector<16x22xf32> to vector<16x16xf32>
    %360 = vector.broadcast %358 : f32 to vector<16x16xf32>
    %361 = arith.mulf %359, %360 : vector<16x16xf32>
    %362 = arith.addf %340, %361 : vector<16x16xf32>
    %c64 = arith.constant 64 : index
    %363 = memref.load %arg3[%c64] : memref<196xf32, #tpu.memory_space<smem>>
    %364 = vector.extract_strided_slice %357 {offsets = [0, 1], sizes = [16, 16], strides = [1, 1]} : vector<16x22xf32> to vector<16x16xf32>
    %365 = vector.broadcast %363 : f32 to vector<16x16xf32>
    %366 = arith.mulf %364, %365 : vector<16x16xf32>
    %367 = arith.addf %345, %366 : vector<16x16xf32>
    %c65 = arith.constant 65 : index
    %368 = memref.load %arg3[%c65] : memref<196xf32, #tpu.memory_space<smem>>
    %369 = vector.extract_strided_slice %357 {offsets = [0, 2], sizes = [16, 16], strides = [1, 1]} : vector<16x22xf32> to vector<16x16xf32>
    %370 = vector.broadcast %368 : f32 to vector<16x16xf32>
    %371 = arith.mulf %369, %370 : vector<16x16xf32>
    %372 = arith.addf %350, %371 : vector<16x16xf32>
    %c66 = arith.constant 66 : index
    %373 = memref.load %arg3[%c66] : memref<196xf32, #tpu.memory_space<smem>>
    %374 = vector.extract_strided_slice %357 {offsets = [0, 3], sizes = [16, 16], strides = [1, 1]} : vector<16x22xf32> to vector<16x16xf32>
    %375 = vector.broadcast %373 : f32 to vector<16x16xf32>
    %376 = arith.mulf %374, %375 : vector<16x16xf32>
    %377 = arith.addf %355, %376 : vector<16x16xf32>
    %c67 = arith.constant 67 : index
    %378 = memref.load %arg3[%c67] : memref<196xf32, #tpu.memory_space<smem>>
    %379 = vector.extract_strided_slice %357 {offsets = [0, 4], sizes = [16, 16], strides = [1, 1]} : vector<16x22xf32> to vector<16x16xf32>
    %380 = vector.broadcast %378 : f32 to vector<16x16xf32>
    %381 = arith.mulf %379, %380 : vector<16x16xf32>
    %382 = arith.addf %362, %381 : vector<16x16xf32>
    %c68 = arith.constant 68 : index
    %383 = memref.load %arg3[%c68] : memref<196xf32, #tpu.memory_space<smem>>
    %384 = vector.extract_strided_slice %357 {offsets = [0, 5], sizes = [16, 16], strides = [1, 1]} : vector<16x22xf32> to vector<16x16xf32>
    %385 = vector.broadcast %383 : f32 to vector<16x16xf32>
    %386 = arith.mulf %384, %385 : vector<16x16xf32>
    %387 = arith.addf %367, %386 : vector<16x16xf32>
    %c69 = arith.constant 69 : index
    %388 = memref.load %arg3[%c69] : memref<196xf32, #tpu.memory_space<smem>>
    %389 = vector.extract_strided_slice %357 {offsets = [0, 6], sizes = [16, 16], strides = [1, 1]} : vector<16x22xf32> to vector<16x16xf32>
    %390 = vector.broadcast %388 : f32 to vector<16x16xf32>
    %391 = arith.mulf %389, %390 : vector<16x16xf32>
    %392 = arith.addf %372, %391 : vector<16x16xf32>
    %c1_51 = arith.constant 1 : index
    %c3_52 = arith.constant 3 : index
    %c0_53 = arith.constant 0 : index
    %393 = vector.load %arg6[%c1_51, %c3_52, %c0_53] : memref<4x22x22xf32, #tpu.memory_space<vmem>>, vector<1x16x22xf32>
    %394 = vector.shape_cast %393 : vector<1x16x22xf32> to vector<16x22xf32>
    %c70 = arith.constant 70 : index
    %395 = memref.load %arg3[%c70] : memref<196xf32, #tpu.memory_space<smem>>
    %396 = vector.extract_strided_slice %394 {offsets = [0, 0], sizes = [16, 16], strides = [1, 1]} : vector<16x22xf32> to vector<16x16xf32>
    %397 = vector.broadcast %395 : f32 to vector<16x16xf32>
    %398 = arith.mulf %396, %397 : vector<16x16xf32>
    %399 = arith.addf %377, %398 : vector<16x16xf32>
    %c71 = arith.constant 71 : index
    %400 = memref.load %arg3[%c71] : memref<196xf32, #tpu.memory_space<smem>>
    %401 = vector.extract_strided_slice %394 {offsets = [0, 1], sizes = [16, 16], strides = [1, 1]} : vector<16x22xf32> to vector<16x16xf32>
    %402 = vector.broadcast %400 : f32 to vector<16x16xf32>
    %403 = arith.mulf %401, %402 : vector<16x16xf32>
    %404 = arith.addf %382, %403 : vector<16x16xf32>
    %c72 = arith.constant 72 : index
    %405 = memref.load %arg3[%c72] : memref<196xf32, #tpu.memory_space<smem>>
    %406 = vector.extract_strided_slice %394 {offsets = [0, 2], sizes = [16, 16], strides = [1, 1]} : vector<16x22xf32> to vector<16x16xf32>
    %407 = vector.broadcast %405 : f32 to vector<16x16xf32>
    %408 = arith.mulf %406, %407 : vector<16x16xf32>
    %409 = arith.addf %387, %408 : vector<16x16xf32>
    %c73 = arith.constant 73 : index
    %410 = memref.load %arg3[%c73] : memref<196xf32, #tpu.memory_space<smem>>
    %411 = vector.extract_strided_slice %394 {offsets = [0, 3], sizes = [16, 16], strides = [1, 1]} : vector<16x22xf32> to vector<16x16xf32>
    %412 = vector.broadcast %410 : f32 to vector<16x16xf32>
    %413 = arith.mulf %411, %412 : vector<16x16xf32>
    %414 = arith.addf %392, %413 : vector<16x16xf32>
    %c74 = arith.constant 74 : index
    %415 = memref.load %arg3[%c74] : memref<196xf32, #tpu.memory_space<smem>>
    %416 = vector.extract_strided_slice %394 {offsets = [0, 4], sizes = [16, 16], strides = [1, 1]} : vector<16x22xf32> to vector<16x16xf32>
    %417 = vector.broadcast %415 : f32 to vector<16x16xf32>
    %418 = arith.mulf %416, %417 : vector<16x16xf32>
    %419 = arith.addf %399, %418 : vector<16x16xf32>
    %c75 = arith.constant 75 : index
    %420 = memref.load %arg3[%c75] : memref<196xf32, #tpu.memory_space<smem>>
    %421 = vector.extract_strided_slice %394 {offsets = [0, 5], sizes = [16, 16], strides = [1, 1]} : vector<16x22xf32> to vector<16x16xf32>
    %422 = vector.broadcast %420 : f32 to vector<16x16xf32>
    %423 = arith.mulf %421, %422 : vector<16x16xf32>
    %424 = arith.addf %404, %423 : vector<16x16xf32>
    %c76 = arith.constant 76 : index
    %425 = memref.load %arg3[%c76] : memref<196xf32, #tpu.memory_space<smem>>
    %426 = vector.extract_strided_slice %394 {offsets = [0, 6], sizes = [16, 16], strides = [1, 1]} : vector<16x22xf32> to vector<16x16xf32>
    %427 = vector.broadcast %425 : f32 to vector<16x16xf32>
    %428 = arith.mulf %426, %427 : vector<16x16xf32>
    %429 = arith.addf %409, %428 : vector<16x16xf32>
    %c1_54 = arith.constant 1 : index
    %c4_55 = arith.constant 4 : index
    %c0_56 = arith.constant 0 : index
    %430 = vector.load %arg6[%c1_54, %c4_55, %c0_56] : memref<4x22x22xf32, #tpu.memory_space<vmem>>, vector<1x16x22xf32>
    %431 = vector.shape_cast %430 : vector<1x16x22xf32> to vector<16x22xf32>
    %c77 = arith.constant 77 : index
    %432 = memref.load %arg3[%c77] : memref<196xf32, #tpu.memory_space<smem>>
    %433 = vector.extract_strided_slice %431 {offsets = [0, 0], sizes = [16, 16], strides = [1, 1]} : vector<16x22xf32> to vector<16x16xf32>
    %434 = vector.broadcast %432 : f32 to vector<16x16xf32>
    %435 = arith.mulf %433, %434 : vector<16x16xf32>
    %436 = arith.addf %414, %435 : vector<16x16xf32>
    %c78 = arith.constant 78 : index
    %437 = memref.load %arg3[%c78] : memref<196xf32, #tpu.memory_space<smem>>
    %438 = vector.extract_strided_slice %431 {offsets = [0, 1], sizes = [16, 16], strides = [1, 1]} : vector<16x22xf32> to vector<16x16xf32>
    %439 = vector.broadcast %437 : f32 to vector<16x16xf32>
    %440 = arith.mulf %438, %439 : vector<16x16xf32>
    %441 = arith.addf %419, %440 : vector<16x16xf32>
    %c79 = arith.constant 79 : index
    %442 = memref.load %arg3[%c79] : memref<196xf32, #tpu.memory_space<smem>>
    %443 = vector.extract_strided_slice %431 {offsets = [0, 2], sizes = [16, 16], strides = [1, 1]} : vector<16x22xf32> to vector<16x16xf32>
    %444 = vector.broadcast %442 : f32 to vector<16x16xf32>
    %445 = arith.mulf %443, %444 : vector<16x16xf32>
    %446 = arith.addf %424, %445 : vector<16x16xf32>
    %c80 = arith.constant 80 : index
    %447 = memref.load %arg3[%c80] : memref<196xf32, #tpu.memory_space<smem>>
    %448 = vector.extract_strided_slice %431 {offsets = [0, 3], sizes = [16, 16], strides = [1, 1]} : vector<16x22xf32> to vector<16x16xf32>
    %449 = vector.broadcast %447 : f32 to vector<16x16xf32>
    %450 = arith.mulf %448, %449 : vector<16x16xf32>
    %451 = arith.addf %429, %450 : vector<16x16xf32>
    %c81 = arith.constant 81 : index
    %452 = memref.load %arg3[%c81] : memref<196xf32, #tpu.memory_space<smem>>
    %453 = vector.extract_strided_slice %431 {offsets = [0, 4], sizes = [16, 16], strides = [1, 1]} : vector<16x22xf32> to vector<16x16xf32>
    %454 = vector.broadcast %452 : f32 to vector<16x16xf32>
    %455 = arith.mulf %453, %454 : vector<16x16xf32>
    %456 = arith.addf %436, %455 : vector<16x16xf32>
    %c82 = arith.constant 82 : index
    %457 = memref.load %arg3[%c82] : memref<196xf32, #tpu.memory_space<smem>>
    %458 = vector.extract_strided_slice %431 {offsets = [0, 5], sizes = [16, 16], strides = [1, 1]} : vector<16x22xf32> to vector<16x16xf32>
    %459 = vector.broadcast %457 : f32 to vector<16x16xf32>
    %460 = arith.mulf %458, %459 : vector<16x16xf32>
    %461 = arith.addf %441, %460 : vector<16x16xf32>
    %c83 = arith.constant 83 : index
    %462 = memref.load %arg3[%c83] : memref<196xf32, #tpu.memory_space<smem>>
    %463 = vector.extract_strided_slice %431 {offsets = [0, 6], sizes = [16, 16], strides = [1, 1]} : vector<16x22xf32> to vector<16x16xf32>
    %464 = vector.broadcast %462 : f32 to vector<16x16xf32>
    %465 = arith.mulf %463, %464 : vector<16x16xf32>
    %466 = arith.addf %446, %465 : vector<16x16xf32>
    %c1_57 = arith.constant 1 : index
    %c5_58 = arith.constant 5 : index
    %c0_59 = arith.constant 0 : index
    %467 = vector.load %arg6[%c1_57, %c5_58, %c0_59] : memref<4x22x22xf32, #tpu.memory_space<vmem>>, vector<1x16x22xf32>
    %468 = vector.shape_cast %467 : vector<1x16x22xf32> to vector<16x22xf32>
    %c84 = arith.constant 84 : index
    %469 = memref.load %arg3[%c84] : memref<196xf32, #tpu.memory_space<smem>>
    %470 = vector.extract_strided_slice %468 {offsets = [0, 0], sizes = [16, 16], strides = [1, 1]} : vector<16x22xf32> to vector<16x16xf32>
    %471 = vector.broadcast %469 : f32 to vector<16x16xf32>
    %472 = arith.mulf %470, %471 : vector<16x16xf32>
    %473 = arith.addf %451, %472 : vector<16x16xf32>
    %c85 = arith.constant 85 : index
    %474 = memref.load %arg3[%c85] : memref<196xf32, #tpu.memory_space<smem>>
    %475 = vector.extract_strided_slice %468 {offsets = [0, 1], sizes = [16, 16], strides = [1, 1]} : vector<16x22xf32> to vector<16x16xf32>
    %476 = vector.broadcast %474 : f32 to vector<16x16xf32>
    %477 = arith.mulf %475, %476 : vector<16x16xf32>
    %478 = arith.addf %456, %477 : vector<16x16xf32>
    %c86 = arith.constant 86 : index
    %479 = memref.load %arg3[%c86] : memref<196xf32, #tpu.memory_space<smem>>
    %480 = vector.extract_strided_slice %468 {offsets = [0, 2], sizes = [16, 16], strides = [1, 1]} : vector<16x22xf32> to vector<16x16xf32>
    %481 = vector.broadcast %479 : f32 to vector<16x16xf32>
    %482 = arith.mulf %480, %481 : vector<16x16xf32>
    %483 = arith.addf %461, %482 : vector<16x16xf32>
    %c87 = arith.constant 87 : index
    %484 = memref.load %arg3[%c87] : memref<196xf32, #tpu.memory_space<smem>>
    %485 = vector.extract_strided_slice %468 {offsets = [0, 3], sizes = [16, 16], strides = [1, 1]} : vector<16x22xf32> to vector<16x16xf32>
    %486 = vector.broadcast %484 : f32 to vector<16x16xf32>
    %487 = arith.mulf %485, %486 : vector<16x16xf32>
    %488 = arith.addf %466, %487 : vector<16x16xf32>
    %c88 = arith.constant 88 : index
    %489 = memref.load %arg3[%c88] : memref<196xf32, #tpu.memory_space<smem>>
    %490 = vector.extract_strided_slice %468 {offsets = [0, 4], sizes = [16, 16], strides = [1, 1]} : vector<16x22xf32> to vector<16x16xf32>
    %491 = vector.broadcast %489 : f32 to vector<16x16xf32>
    %492 = arith.mulf %490, %491 : vector<16x16xf32>
    %493 = arith.addf %473, %492 : vector<16x16xf32>
    %c89 = arith.constant 89 : index
    %494 = memref.load %arg3[%c89] : memref<196xf32, #tpu.memory_space<smem>>
    %495 = vector.extract_strided_slice %468 {offsets = [0, 5], sizes = [16, 16], strides = [1, 1]} : vector<16x22xf32> to vector<16x16xf32>
    %496 = vector.broadcast %494 : f32 to vector<16x16xf32>
    %497 = arith.mulf %495, %496 : vector<16x16xf32>
    %498 = arith.addf %478, %497 : vector<16x16xf32>
    %c90 = arith.constant 90 : index
    %499 = memref.load %arg3[%c90] : memref<196xf32, #tpu.memory_space<smem>>
    %500 = vector.extract_strided_slice %468 {offsets = [0, 6], sizes = [16, 16], strides = [1, 1]} : vector<16x22xf32> to vector<16x16xf32>
    %501 = vector.broadcast %499 : f32 to vector<16x16xf32>
    %502 = arith.mulf %500, %501 : vector<16x16xf32>
    %503 = arith.addf %483, %502 : vector<16x16xf32>
    %c1_60 = arith.constant 1 : index
    %c6_61 = arith.constant 6 : index
    %c0_62 = arith.constant 0 : index
    %504 = vector.load %arg6[%c1_60, %c6_61, %c0_62] : memref<4x22x22xf32, #tpu.memory_space<vmem>>, vector<1x16x22xf32>
    %505 = vector.shape_cast %504 : vector<1x16x22xf32> to vector<16x22xf32>
    %c91 = arith.constant 91 : index
    %506 = memref.load %arg3[%c91] : memref<196xf32, #tpu.memory_space<smem>>
    %507 = vector.extract_strided_slice %505 {offsets = [0, 0], sizes = [16, 16], strides = [1, 1]} : vector<16x22xf32> to vector<16x16xf32>
    %508 = vector.broadcast %506 : f32 to vector<16x16xf32>
    %509 = arith.mulf %507, %508 : vector<16x16xf32>
    %510 = arith.addf %488, %509 : vector<16x16xf32>
    %c92 = arith.constant 92 : index
    %511 = memref.load %arg3[%c92] : memref<196xf32, #tpu.memory_space<smem>>
    %512 = vector.extract_strided_slice %505 {offsets = [0, 1], sizes = [16, 16], strides = [1, 1]} : vector<16x22xf32> to vector<16x16xf32>
    %513 = vector.broadcast %511 : f32 to vector<16x16xf32>
    %514 = arith.mulf %512, %513 : vector<16x16xf32>
    %515 = arith.addf %493, %514 : vector<16x16xf32>
    %c93 = arith.constant 93 : index
    %516 = memref.load %arg3[%c93] : memref<196xf32, #tpu.memory_space<smem>>
    %517 = vector.extract_strided_slice %505 {offsets = [0, 2], sizes = [16, 16], strides = [1, 1]} : vector<16x22xf32> to vector<16x16xf32>
    %518 = vector.broadcast %516 : f32 to vector<16x16xf32>
    %519 = arith.mulf %517, %518 : vector<16x16xf32>
    %520 = arith.addf %498, %519 : vector<16x16xf32>
    %c94 = arith.constant 94 : index
    %521 = memref.load %arg3[%c94] : memref<196xf32, #tpu.memory_space<smem>>
    %522 = vector.extract_strided_slice %505 {offsets = [0, 3], sizes = [16, 16], strides = [1, 1]} : vector<16x22xf32> to vector<16x16xf32>
    %523 = vector.broadcast %521 : f32 to vector<16x16xf32>
    %524 = arith.mulf %522, %523 : vector<16x16xf32>
    %525 = arith.addf %503, %524 : vector<16x16xf32>
    %c95 = arith.constant 95 : index
    %526 = memref.load %arg3[%c95] : memref<196xf32, #tpu.memory_space<smem>>
    %527 = vector.extract_strided_slice %505 {offsets = [0, 4], sizes = [16, 16], strides = [1, 1]} : vector<16x22xf32> to vector<16x16xf32>
    %528 = vector.broadcast %526 : f32 to vector<16x16xf32>
    %529 = arith.mulf %527, %528 : vector<16x16xf32>
    %530 = arith.addf %510, %529 : vector<16x16xf32>
    %c96 = arith.constant 96 : index
    %531 = memref.load %arg3[%c96] : memref<196xf32, #tpu.memory_space<smem>>
    %532 = vector.extract_strided_slice %505 {offsets = [0, 5], sizes = [16, 16], strides = [1, 1]} : vector<16x22xf32> to vector<16x16xf32>
    %533 = vector.broadcast %531 : f32 to vector<16x16xf32>
    %534 = arith.mulf %532, %533 : vector<16x16xf32>
    %535 = arith.addf %515, %534 : vector<16x16xf32>
    %c97 = arith.constant 97 : index
    %536 = memref.load %arg3[%c97] : memref<196xf32, #tpu.memory_space<smem>>
    %537 = vector.extract_strided_slice %505 {offsets = [0, 6], sizes = [16, 16], strides = [1, 1]} : vector<16x22xf32> to vector<16x16xf32>
    %538 = vector.broadcast %536 : f32 to vector<16x16xf32>
    %539 = arith.mulf %537, %538 : vector<16x16xf32>
    %540 = arith.addf %520, %539 : vector<16x16xf32>
    %c2_63 = arith.constant 2 : index
    %c0_64 = arith.constant 0 : index
    %c0_65 = arith.constant 0 : index
    %541 = vector.load %arg6[%c2_63, %c0_64, %c0_65] : memref<4x22x22xf32, #tpu.memory_space<vmem>>, vector<1x16x22xf32>
    %542 = vector.shape_cast %541 : vector<1x16x22xf32> to vector<16x22xf32>
    %c98 = arith.constant 98 : index
    %543 = memref.load %arg3[%c98] : memref<196xf32, #tpu.memory_space<smem>>
    %544 = vector.extract_strided_slice %542 {offsets = [0, 0], sizes = [16, 16], strides = [1, 1]} : vector<16x22xf32> to vector<16x16xf32>
    %545 = vector.broadcast %543 : f32 to vector<16x16xf32>
    %546 = arith.mulf %544, %545 : vector<16x16xf32>
    %547 = arith.addf %540, %546 : vector<16x16xf32>
    %c99 = arith.constant 99 : index
    %548 = memref.load %arg3[%c99] : memref<196xf32, #tpu.memory_space<smem>>
    %549 = vector.extract_strided_slice %542 {offsets = [0, 1], sizes = [16, 16], strides = [1, 1]} : vector<16x22xf32> to vector<16x16xf32>
    %550 = vector.broadcast %548 : f32 to vector<16x16xf32>
    %551 = arith.mulf %549, %550 : vector<16x16xf32>
    %552 = arith.addf %525, %551 : vector<16x16xf32>
    %c100 = arith.constant 100 : index
    %553 = memref.load %arg3[%c100] : memref<196xf32, #tpu.memory_space<smem>>
    %554 = vector.extract_strided_slice %542 {offsets = [0, 2], sizes = [16, 16], strides = [1, 1]} : vector<16x22xf32> to vector<16x16xf32>
    %555 = vector.broadcast %553 : f32 to vector<16x16xf32>
    %556 = arith.mulf %554, %555 : vector<16x16xf32>
    %557 = arith.addf %530, %556 : vector<16x16xf32>
    %c101 = arith.constant 101 : index
    %558 = memref.load %arg3[%c101] : memref<196xf32, #tpu.memory_space<smem>>
    %559 = vector.extract_strided_slice %542 {offsets = [0, 3], sizes = [16, 16], strides = [1, 1]} : vector<16x22xf32> to vector<16x16xf32>
    %560 = vector.broadcast %558 : f32 to vector<16x16xf32>
    %561 = arith.mulf %559, %560 : vector<16x16xf32>
    %562 = arith.addf %535, %561 : vector<16x16xf32>
    %c102 = arith.constant 102 : index
    %563 = memref.load %arg3[%c102] : memref<196xf32, #tpu.memory_space<smem>>
    %564 = vector.extract_strided_slice %542 {offsets = [0, 4], sizes = [16, 16], strides = [1, 1]} : vector<16x22xf32> to vector<16x16xf32>
    %565 = vector.broadcast %563 : f32 to vector<16x16xf32>
    %566 = arith.mulf %564, %565 : vector<16x16xf32>
    %567 = arith.addf %547, %566 : vector<16x16xf32>
    %c103 = arith.constant 103 : index
    %568 = memref.load %arg3[%c103] : memref<196xf32, #tpu.memory_space<smem>>
    %569 = vector.extract_strided_slice %542 {offsets = [0, 5], sizes = [16, 16], strides = [1, 1]} : vector<16x22xf32> to vector<16x16xf32>
    %570 = vector.broadcast %568 : f32 to vector<16x16xf32>
    %571 = arith.mulf %569, %570 : vector<16x16xf32>
    %572 = arith.addf %552, %571 : vector<16x16xf32>
    %c104 = arith.constant 104 : index
    %573 = memref.load %arg3[%c104] : memref<196xf32, #tpu.memory_space<smem>>
    %574 = vector.extract_strided_slice %542 {offsets = [0, 6], sizes = [16, 16], strides = [1, 1]} : vector<16x22xf32> to vector<16x16xf32>
    %575 = vector.broadcast %573 : f32 to vector<16x16xf32>
    %576 = arith.mulf %574, %575 : vector<16x16xf32>
    %577 = arith.addf %557, %576 : vector<16x16xf32>
    %c2_66 = arith.constant 2 : index
    %c1_67 = arith.constant 1 : index
    %c0_68 = arith.constant 0 : index
    %578 = vector.load %arg6[%c2_66, %c1_67, %c0_68] : memref<4x22x22xf32, #tpu.memory_space<vmem>>, vector<1x16x22xf32>
    %579 = vector.shape_cast %578 : vector<1x16x22xf32> to vector<16x22xf32>
    %c105 = arith.constant 105 : index
    %580 = memref.load %arg3[%c105] : memref<196xf32, #tpu.memory_space<smem>>
    %581 = vector.extract_strided_slice %579 {offsets = [0, 0], sizes = [16, 16], strides = [1, 1]} : vector<16x22xf32> to vector<16x16xf32>
    %582 = vector.broadcast %580 : f32 to vector<16x16xf32>
    %583 = arith.mulf %581, %582 : vector<16x16xf32>
    %584 = arith.addf %562, %583 : vector<16x16xf32>
    %c106 = arith.constant 106 : index
    %585 = memref.load %arg3[%c106] : memref<196xf32, #tpu.memory_space<smem>>
    %586 = vector.extract_strided_slice %579 {offsets = [0, 1], sizes = [16, 16], strides = [1, 1]} : vector<16x22xf32> to vector<16x16xf32>
    %587 = vector.broadcast %585 : f32 to vector<16x16xf32>
    %588 = arith.mulf %586, %587 : vector<16x16xf32>
    %589 = arith.addf %567, %588 : vector<16x16xf32>
    %c107 = arith.constant 107 : index
    %590 = memref.load %arg3[%c107] : memref<196xf32, #tpu.memory_space<smem>>
    %591 = vector.extract_strided_slice %579 {offsets = [0, 2], sizes = [16, 16], strides = [1, 1]} : vector<16x22xf32> to vector<16x16xf32>
    %592 = vector.broadcast %590 : f32 to vector<16x16xf32>
    %593 = arith.mulf %591, %592 : vector<16x16xf32>
    %594 = arith.addf %572, %593 : vector<16x16xf32>
    %c108 = arith.constant 108 : index
    %595 = memref.load %arg3[%c108] : memref<196xf32, #tpu.memory_space<smem>>
    %596 = vector.extract_strided_slice %579 {offsets = [0, 3], sizes = [16, 16], strides = [1, 1]} : vector<16x22xf32> to vector<16x16xf32>
    %597 = vector.broadcast %595 : f32 to vector<16x16xf32>
    %598 = arith.mulf %596, %597 : vector<16x16xf32>
    %599 = arith.addf %577, %598 : vector<16x16xf32>
    %c109 = arith.constant 109 : index
    %600 = memref.load %arg3[%c109] : memref<196xf32, #tpu.memory_space<smem>>
    %601 = vector.extract_strided_slice %579 {offsets = [0, 4], sizes = [16, 16], strides = [1, 1]} : vector<16x22xf32> to vector<16x16xf32>
    %602 = vector.broadcast %600 : f32 to vector<16x16xf32>
    %603 = arith.mulf %601, %602 : vector<16x16xf32>
    %604 = arith.addf %584, %603 : vector<16x16xf32>
    %c110 = arith.constant 110 : index
    %605 = memref.load %arg3[%c110] : memref<196xf32, #tpu.memory_space<smem>>
    %606 = vector.extract_strided_slice %579 {offsets = [0, 5], sizes = [16, 16], strides = [1, 1]} : vector<16x22xf32> to vector<16x16xf32>
    %607 = vector.broadcast %605 : f32 to vector<16x16xf32>
    %608 = arith.mulf %606, %607 : vector<16x16xf32>
    %609 = arith.addf %589, %608 : vector<16x16xf32>
    %c111 = arith.constant 111 : index
    %610 = memref.load %arg3[%c111] : memref<196xf32, #tpu.memory_space<smem>>
    %611 = vector.extract_strided_slice %579 {offsets = [0, 6], sizes = [16, 16], strides = [1, 1]} : vector<16x22xf32> to vector<16x16xf32>
    %612 = vector.broadcast %610 : f32 to vector<16x16xf32>
    %613 = arith.mulf %611, %612 : vector<16x16xf32>
    %614 = arith.addf %594, %613 : vector<16x16xf32>
    %c2_69 = arith.constant 2 : index
    %c2_70 = arith.constant 2 : index
    %c0_71 = arith.constant 0 : index
    %615 = vector.load %arg6[%c2_69, %c2_70, %c0_71] : memref<4x22x22xf32, #tpu.memory_space<vmem>>, vector<1x16x22xf32>
    %616 = vector.shape_cast %615 : vector<1x16x22xf32> to vector<16x22xf32>
    %c112 = arith.constant 112 : index
    %617 = memref.load %arg3[%c112] : memref<196xf32, #tpu.memory_space<smem>>
    %618 = vector.extract_strided_slice %616 {offsets = [0, 0], sizes = [16, 16], strides = [1, 1]} : vector<16x22xf32> to vector<16x16xf32>
    %619 = vector.broadcast %617 : f32 to vector<16x16xf32>
    %620 = arith.mulf %618, %619 : vector<16x16xf32>
    %621 = arith.addf %599, %620 : vector<16x16xf32>
    %c113 = arith.constant 113 : index
    %622 = memref.load %arg3[%c113] : memref<196xf32, #tpu.memory_space<smem>>
    %623 = vector.extract_strided_slice %616 {offsets = [0, 1], sizes = [16, 16], strides = [1, 1]} : vector<16x22xf32> to vector<16x16xf32>
    %624 = vector.broadcast %622 : f32 to vector<16x16xf32>
    %625 = arith.mulf %623, %624 : vector<16x16xf32>
    %626 = arith.addf %604, %625 : vector<16x16xf32>
    %c114 = arith.constant 114 : index
    %627 = memref.load %arg3[%c114] : memref<196xf32, #tpu.memory_space<smem>>
    %628 = vector.extract_strided_slice %616 {offsets = [0, 2], sizes = [16, 16], strides = [1, 1]} : vector<16x22xf32> to vector<16x16xf32>
    %629 = vector.broadcast %627 : f32 to vector<16x16xf32>
    %630 = arith.mulf %628, %629 : vector<16x16xf32>
    %631 = arith.addf %609, %630 : vector<16x16xf32>
    %c115 = arith.constant 115 : index
    %632 = memref.load %arg3[%c115] : memref<196xf32, #tpu.memory_space<smem>>
    %633 = vector.extract_strided_slice %616 {offsets = [0, 3], sizes = [16, 16], strides = [1, 1]} : vector<16x22xf32> to vector<16x16xf32>
    %634 = vector.broadcast %632 : f32 to vector<16x16xf32>
    %635 = arith.mulf %633, %634 : vector<16x16xf32>
    %636 = arith.addf %614, %635 : vector<16x16xf32>
    %c116 = arith.constant 116 : index
    %637 = memref.load %arg3[%c116] : memref<196xf32, #tpu.memory_space<smem>>
    %638 = vector.extract_strided_slice %616 {offsets = [0, 4], sizes = [16, 16], strides = [1, 1]} : vector<16x22xf32> to vector<16x16xf32>
    %639 = vector.broadcast %637 : f32 to vector<16x16xf32>
    %640 = arith.mulf %638, %639 : vector<16x16xf32>
    %641 = arith.addf %621, %640 : vector<16x16xf32>
    %c117 = arith.constant 117 : index
    %642 = memref.load %arg3[%c117] : memref<196xf32, #tpu.memory_space<smem>>
    %643 = vector.extract_strided_slice %616 {offsets = [0, 5], sizes = [16, 16], strides = [1, 1]} : vector<16x22xf32> to vector<16x16xf32>
    %644 = vector.broadcast %642 : f32 to vector<16x16xf32>
    %645 = arith.mulf %643, %644 : vector<16x16xf32>
    %646 = arith.addf %626, %645 : vector<16x16xf32>
    %c118 = arith.constant 118 : index
    %647 = memref.load %arg3[%c118] : memref<196xf32, #tpu.memory_space<smem>>
    %648 = vector.extract_strided_slice %616 {offsets = [0, 6], sizes = [16, 16], strides = [1, 1]} : vector<16x22xf32> to vector<16x16xf32>
    %649 = vector.broadcast %647 : f32 to vector<16x16xf32>
    %650 = arith.mulf %648, %649 : vector<16x16xf32>
    %651 = arith.addf %631, %650 : vector<16x16xf32>
    %c2_72 = arith.constant 2 : index
    %c3_73 = arith.constant 3 : index
    %c0_74 = arith.constant 0 : index
    %652 = vector.load %arg6[%c2_72, %c3_73, %c0_74] : memref<4x22x22xf32, #tpu.memory_space<vmem>>, vector<1x16x22xf32>
    %653 = vector.shape_cast %652 : vector<1x16x22xf32> to vector<16x22xf32>
    %c119 = arith.constant 119 : index
    %654 = memref.load %arg3[%c119] : memref<196xf32, #tpu.memory_space<smem>>
    %655 = vector.extract_strided_slice %653 {offsets = [0, 0], sizes = [16, 16], strides = [1, 1]} : vector<16x22xf32> to vector<16x16xf32>
    %656 = vector.broadcast %654 : f32 to vector<16x16xf32>
    %657 = arith.mulf %655, %656 : vector<16x16xf32>
    %658 = arith.addf %636, %657 : vector<16x16xf32>
    %c120 = arith.constant 120 : index
    %659 = memref.load %arg3[%c120] : memref<196xf32, #tpu.memory_space<smem>>
    %660 = vector.extract_strided_slice %653 {offsets = [0, 1], sizes = [16, 16], strides = [1, 1]} : vector<16x22xf32> to vector<16x16xf32>
    %661 = vector.broadcast %659 : f32 to vector<16x16xf32>
    %662 = arith.mulf %660, %661 : vector<16x16xf32>
    %663 = arith.addf %641, %662 : vector<16x16xf32>
    %c121 = arith.constant 121 : index
    %664 = memref.load %arg3[%c121] : memref<196xf32, #tpu.memory_space<smem>>
    %665 = vector.extract_strided_slice %653 {offsets = [0, 2], sizes = [16, 16], strides = [1, 1]} : vector<16x22xf32> to vector<16x16xf32>
    %666 = vector.broadcast %664 : f32 to vector<16x16xf32>
    %667 = arith.mulf %665, %666 : vector<16x16xf32>
    %668 = arith.addf %646, %667 : vector<16x16xf32>
    %c122 = arith.constant 122 : index
    %669 = memref.load %arg3[%c122] : memref<196xf32, #tpu.memory_space<smem>>
    %670 = vector.extract_strided_slice %653 {offsets = [0, 3], sizes = [16, 16], strides = [1, 1]} : vector<16x22xf32> to vector<16x16xf32>
    %671 = vector.broadcast %669 : f32 to vector<16x16xf32>
    %672 = arith.mulf %670, %671 : vector<16x16xf32>
    %673 = arith.addf %651, %672 : vector<16x16xf32>
    %c123 = arith.constant 123 : index
    %674 = memref.load %arg3[%c123] : memref<196xf32, #tpu.memory_space<smem>>
    %675 = vector.extract_strided_slice %653 {offsets = [0, 4], sizes = [16, 16], strides = [1, 1]} : vector<16x22xf32> to vector<16x16xf32>
    %676 = vector.broadcast %674 : f32 to vector<16x16xf32>
    %677 = arith.mulf %675, %676 : vector<16x16xf32>
    %678 = arith.addf %658, %677 : vector<16x16xf32>
    %c124 = arith.constant 124 : index
    %679 = memref.load %arg3[%c124] : memref<196xf32, #tpu.memory_space<smem>>
    %680 = vector.extract_strided_slice %653 {offsets = [0, 5], sizes = [16, 16], strides = [1, 1]} : vector<16x22xf32> to vector<16x16xf32>
    %681 = vector.broadcast %679 : f32 to vector<16x16xf32>
    %682 = arith.mulf %680, %681 : vector<16x16xf32>
    %683 = arith.addf %663, %682 : vector<16x16xf32>
    %c125 = arith.constant 125 : index
    %684 = memref.load %arg3[%c125] : memref<196xf32, #tpu.memory_space<smem>>
    %685 = vector.extract_strided_slice %653 {offsets = [0, 6], sizes = [16, 16], strides = [1, 1]} : vector<16x22xf32> to vector<16x16xf32>
    %686 = vector.broadcast %684 : f32 to vector<16x16xf32>
    %687 = arith.mulf %685, %686 : vector<16x16xf32>
    %688 = arith.addf %668, %687 : vector<16x16xf32>
    %c2_75 = arith.constant 2 : index
    %c4_76 = arith.constant 4 : index
    %c0_77 = arith.constant 0 : index
    %689 = vector.load %arg6[%c2_75, %c4_76, %c0_77] : memref<4x22x22xf32, #tpu.memory_space<vmem>>, vector<1x16x22xf32>
    %690 = vector.shape_cast %689 : vector<1x16x22xf32> to vector<16x22xf32>
    %c126 = arith.constant 126 : index
    %691 = memref.load %arg3[%c126] : memref<196xf32, #tpu.memory_space<smem>>
    %692 = vector.extract_strided_slice %690 {offsets = [0, 0], sizes = [16, 16], strides = [1, 1]} : vector<16x22xf32> to vector<16x16xf32>
    %693 = vector.broadcast %691 : f32 to vector<16x16xf32>
    %694 = arith.mulf %692, %693 : vector<16x16xf32>
    %695 = arith.addf %673, %694 : vector<16x16xf32>
    %c127 = arith.constant 127 : index
    %696 = memref.load %arg3[%c127] : memref<196xf32, #tpu.memory_space<smem>>
    %697 = vector.extract_strided_slice %690 {offsets = [0, 1], sizes = [16, 16], strides = [1, 1]} : vector<16x22xf32> to vector<16x16xf32>
    %698 = vector.broadcast %696 : f32 to vector<16x16xf32>
    %699 = arith.mulf %697, %698 : vector<16x16xf32>
    %700 = arith.addf %678, %699 : vector<16x16xf32>
    %c128 = arith.constant 128 : index
    %701 = memref.load %arg3[%c128] : memref<196xf32, #tpu.memory_space<smem>>
    %702 = vector.extract_strided_slice %690 {offsets = [0, 2], sizes = [16, 16], strides = [1, 1]} : vector<16x22xf32> to vector<16x16xf32>
    %703 = vector.broadcast %701 : f32 to vector<16x16xf32>
    %704 = arith.mulf %702, %703 : vector<16x16xf32>
    %705 = arith.addf %683, %704 : vector<16x16xf32>
    %c129 = arith.constant 129 : index
    %706 = memref.load %arg3[%c129] : memref<196xf32, #tpu.memory_space<smem>>
    %707 = vector.extract_strided_slice %690 {offsets = [0, 3], sizes = [16, 16], strides = [1, 1]} : vector<16x22xf32> to vector<16x16xf32>
    %708 = vector.broadcast %706 : f32 to vector<16x16xf32>
    %709 = arith.mulf %707, %708 : vector<16x16xf32>
    %710 = arith.addf %688, %709 : vector<16x16xf32>
    %c130 = arith.constant 130 : index
    %711 = memref.load %arg3[%c130] : memref<196xf32, #tpu.memory_space<smem>>
    %712 = vector.extract_strided_slice %690 {offsets = [0, 4], sizes = [16, 16], strides = [1, 1]} : vector<16x22xf32> to vector<16x16xf32>
    %713 = vector.broadcast %711 : f32 to vector<16x16xf32>
    %714 = arith.mulf %712, %713 : vector<16x16xf32>
    %715 = arith.addf %695, %714 : vector<16x16xf32>
    %c131 = arith.constant 131 : index
    %716 = memref.load %arg3[%c131] : memref<196xf32, #tpu.memory_space<smem>>
    %717 = vector.extract_strided_slice %690 {offsets = [0, 5], sizes = [16, 16], strides = [1, 1]} : vector<16x22xf32> to vector<16x16xf32>
    %718 = vector.broadcast %716 : f32 to vector<16x16xf32>
    %719 = arith.mulf %717, %718 : vector<16x16xf32>
    %720 = arith.addf %700, %719 : vector<16x16xf32>
    %c132 = arith.constant 132 : index
    %721 = memref.load %arg3[%c132] : memref<196xf32, #tpu.memory_space<smem>>
    %722 = vector.extract_strided_slice %690 {offsets = [0, 6], sizes = [16, 16], strides = [1, 1]} : vector<16x22xf32> to vector<16x16xf32>
    %723 = vector.broadcast %721 : f32 to vector<16x16xf32>
    %724 = arith.mulf %722, %723 : vector<16x16xf32>
    %725 = arith.addf %705, %724 : vector<16x16xf32>
    %c2_78 = arith.constant 2 : index
    %c5_79 = arith.constant 5 : index
    %c0_80 = arith.constant 0 : index
    %726 = vector.load %arg6[%c2_78, %c5_79, %c0_80] : memref<4x22x22xf32, #tpu.memory_space<vmem>>, vector<1x16x22xf32>
    %727 = vector.shape_cast %726 : vector<1x16x22xf32> to vector<16x22xf32>
    %c133 = arith.constant 133 : index
    %728 = memref.load %arg3[%c133] : memref<196xf32, #tpu.memory_space<smem>>
    %729 = vector.extract_strided_slice %727 {offsets = [0, 0], sizes = [16, 16], strides = [1, 1]} : vector<16x22xf32> to vector<16x16xf32>
    %730 = vector.broadcast %728 : f32 to vector<16x16xf32>
    %731 = arith.mulf %729, %730 : vector<16x16xf32>
    %732 = arith.addf %710, %731 : vector<16x16xf32>
    %c134 = arith.constant 134 : index
    %733 = memref.load %arg3[%c134] : memref<196xf32, #tpu.memory_space<smem>>
    %734 = vector.extract_strided_slice %727 {offsets = [0, 1], sizes = [16, 16], strides = [1, 1]} : vector<16x22xf32> to vector<16x16xf32>
    %735 = vector.broadcast %733 : f32 to vector<16x16xf32>
    %736 = arith.mulf %734, %735 : vector<16x16xf32>
    %737 = arith.addf %715, %736 : vector<16x16xf32>
    %c135 = arith.constant 135 : index
    %738 = memref.load %arg3[%c135] : memref<196xf32, #tpu.memory_space<smem>>
    %739 = vector.extract_strided_slice %727 {offsets = [0, 2], sizes = [16, 16], strides = [1, 1]} : vector<16x22xf32> to vector<16x16xf32>
    %740 = vector.broadcast %738 : f32 to vector<16x16xf32>
    %741 = arith.mulf %739, %740 : vector<16x16xf32>
    %742 = arith.addf %720, %741 : vector<16x16xf32>
    %c136 = arith.constant 136 : index
    %743 = memref.load %arg3[%c136] : memref<196xf32, #tpu.memory_space<smem>>
    %744 = vector.extract_strided_slice %727 {offsets = [0, 3], sizes = [16, 16], strides = [1, 1]} : vector<16x22xf32> to vector<16x16xf32>
    %745 = vector.broadcast %743 : f32 to vector<16x16xf32>
    %746 = arith.mulf %744, %745 : vector<16x16xf32>
    %747 = arith.addf %725, %746 : vector<16x16xf32>
    %c137 = arith.constant 137 : index
    %748 = memref.load %arg3[%c137] : memref<196xf32, #tpu.memory_space<smem>>
    %749 = vector.extract_strided_slice %727 {offsets = [0, 4], sizes = [16, 16], strides = [1, 1]} : vector<16x22xf32> to vector<16x16xf32>
    %750 = vector.broadcast %748 : f32 to vector<16x16xf32>
    %751 = arith.mulf %749, %750 : vector<16x16xf32>
    %752 = arith.addf %732, %751 : vector<16x16xf32>
    %c138 = arith.constant 138 : index
    %753 = memref.load %arg3[%c138] : memref<196xf32, #tpu.memory_space<smem>>
    %754 = vector.extract_strided_slice %727 {offsets = [0, 5], sizes = [16, 16], strides = [1, 1]} : vector<16x22xf32> to vector<16x16xf32>
    %755 = vector.broadcast %753 : f32 to vector<16x16xf32>
    %756 = arith.mulf %754, %755 : vector<16x16xf32>
    %757 = arith.addf %737, %756 : vector<16x16xf32>
    %c139 = arith.constant 139 : index
    %758 = memref.load %arg3[%c139] : memref<196xf32, #tpu.memory_space<smem>>
    %759 = vector.extract_strided_slice %727 {offsets = [0, 6], sizes = [16, 16], strides = [1, 1]} : vector<16x22xf32> to vector<16x16xf32>
    %760 = vector.broadcast %758 : f32 to vector<16x16xf32>
    %761 = arith.mulf %759, %760 : vector<16x16xf32>
    %762 = arith.addf %742, %761 : vector<16x16xf32>
    %c2_81 = arith.constant 2 : index
    %c6_82 = arith.constant 6 : index
    %c0_83 = arith.constant 0 : index
    %763 = vector.load %arg6[%c2_81, %c6_82, %c0_83] : memref<4x22x22xf32, #tpu.memory_space<vmem>>, vector<1x16x22xf32>
    %764 = vector.shape_cast %763 : vector<1x16x22xf32> to vector<16x22xf32>
    %c140 = arith.constant 140 : index
    %765 = memref.load %arg3[%c140] : memref<196xf32, #tpu.memory_space<smem>>
    %766 = vector.extract_strided_slice %764 {offsets = [0, 0], sizes = [16, 16], strides = [1, 1]} : vector<16x22xf32> to vector<16x16xf32>
    %767 = vector.broadcast %765 : f32 to vector<16x16xf32>
    %768 = arith.mulf %766, %767 : vector<16x16xf32>
    %769 = arith.addf %747, %768 : vector<16x16xf32>
    %c141 = arith.constant 141 : index
    %770 = memref.load %arg3[%c141] : memref<196xf32, #tpu.memory_space<smem>>
    %771 = vector.extract_strided_slice %764 {offsets = [0, 1], sizes = [16, 16], strides = [1, 1]} : vector<16x22xf32> to vector<16x16xf32>
    %772 = vector.broadcast %770 : f32 to vector<16x16xf32>
    %773 = arith.mulf %771, %772 : vector<16x16xf32>
    %774 = arith.addf %752, %773 : vector<16x16xf32>
    %c142 = arith.constant 142 : index
    %775 = memref.load %arg3[%c142] : memref<196xf32, #tpu.memory_space<smem>>
    %776 = vector.extract_strided_slice %764 {offsets = [0, 2], sizes = [16, 16], strides = [1, 1]} : vector<16x22xf32> to vector<16x16xf32>
    %777 = vector.broadcast %775 : f32 to vector<16x16xf32>
    %778 = arith.mulf %776, %777 : vector<16x16xf32>
    %779 = arith.addf %757, %778 : vector<16x16xf32>
    %c143 = arith.constant 143 : index
    %780 = memref.load %arg3[%c143] : memref<196xf32, #tpu.memory_space<smem>>
    %781 = vector.extract_strided_slice %764 {offsets = [0, 3], sizes = [16, 16], strides = [1, 1]} : vector<16x22xf32> to vector<16x16xf32>
    %782 = vector.broadcast %780 : f32 to vector<16x16xf32>
    %783 = arith.mulf %781, %782 : vector<16x16xf32>
    %784 = arith.addf %762, %783 : vector<16x16xf32>
    %c144 = arith.constant 144 : index
    %785 = memref.load %arg3[%c144] : memref<196xf32, #tpu.memory_space<smem>>
    %786 = vector.extract_strided_slice %764 {offsets = [0, 4], sizes = [16, 16], strides = [1, 1]} : vector<16x22xf32> to vector<16x16xf32>
    %787 = vector.broadcast %785 : f32 to vector<16x16xf32>
    %788 = arith.mulf %786, %787 : vector<16x16xf32>
    %789 = arith.addf %769, %788 : vector<16x16xf32>
    %c145 = arith.constant 145 : index
    %790 = memref.load %arg3[%c145] : memref<196xf32, #tpu.memory_space<smem>>
    %791 = vector.extract_strided_slice %764 {offsets = [0, 5], sizes = [16, 16], strides = [1, 1]} : vector<16x22xf32> to vector<16x16xf32>
    %792 = vector.broadcast %790 : f32 to vector<16x16xf32>
    %793 = arith.mulf %791, %792 : vector<16x16xf32>
    %794 = arith.addf %774, %793 : vector<16x16xf32>
    %c146 = arith.constant 146 : index
    %795 = memref.load %arg3[%c146] : memref<196xf32, #tpu.memory_space<smem>>
    %796 = vector.extract_strided_slice %764 {offsets = [0, 6], sizes = [16, 16], strides = [1, 1]} : vector<16x22xf32> to vector<16x16xf32>
    %797 = vector.broadcast %795 : f32 to vector<16x16xf32>
    %798 = arith.mulf %796, %797 : vector<16x16xf32>
    %799 = arith.addf %779, %798 : vector<16x16xf32>
    %c3_84 = arith.constant 3 : index
    %c0_85 = arith.constant 0 : index
    %c0_86 = arith.constant 0 : index
    %800 = vector.load %arg6[%c3_84, %c0_85, %c0_86] : memref<4x22x22xf32, #tpu.memory_space<vmem>>, vector<1x16x22xf32>
    %801 = vector.shape_cast %800 : vector<1x16x22xf32> to vector<16x22xf32>
    %c147 = arith.constant 147 : index
    %802 = memref.load %arg3[%c147] : memref<196xf32, #tpu.memory_space<smem>>
    %803 = vector.extract_strided_slice %801 {offsets = [0, 0], sizes = [16, 16], strides = [1, 1]} : vector<16x22xf32> to vector<16x16xf32>
    %804 = vector.broadcast %802 : f32 to vector<16x16xf32>
    %805 = arith.mulf %803, %804 : vector<16x16xf32>
    %806 = arith.addf %799, %805 : vector<16x16xf32>
    %c148 = arith.constant 148 : index
    %807 = memref.load %arg3[%c148] : memref<196xf32, #tpu.memory_space<smem>>
    %808 = vector.extract_strided_slice %801 {offsets = [0, 1], sizes = [16, 16], strides = [1, 1]} : vector<16x22xf32> to vector<16x16xf32>
    %809 = vector.broadcast %807 : f32 to vector<16x16xf32>
    %810 = arith.mulf %808, %809 : vector<16x16xf32>
    %811 = arith.addf %784, %810 : vector<16x16xf32>
    %c149 = arith.constant 149 : index
    %812 = memref.load %arg3[%c149] : memref<196xf32, #tpu.memory_space<smem>>
    %813 = vector.extract_strided_slice %801 {offsets = [0, 2], sizes = [16, 16], strides = [1, 1]} : vector<16x22xf32> to vector<16x16xf32>
    %814 = vector.broadcast %812 : f32 to vector<16x16xf32>
    %815 = arith.mulf %813, %814 : vector<16x16xf32>
    %816 = arith.addf %789, %815 : vector<16x16xf32>
    %c150 = arith.constant 150 : index
    %817 = memref.load %arg3[%c150] : memref<196xf32, #tpu.memory_space<smem>>
    %818 = vector.extract_strided_slice %801 {offsets = [0, 3], sizes = [16, 16], strides = [1, 1]} : vector<16x22xf32> to vector<16x16xf32>
    %819 = vector.broadcast %817 : f32 to vector<16x16xf32>
    %820 = arith.mulf %818, %819 : vector<16x16xf32>
    %821 = arith.addf %794, %820 : vector<16x16xf32>
    %c151 = arith.constant 151 : index
    %822 = memref.load %arg3[%c151] : memref<196xf32, #tpu.memory_space<smem>>
    %823 = vector.extract_strided_slice %801 {offsets = [0, 4], sizes = [16, 16], strides = [1, 1]} : vector<16x22xf32> to vector<16x16xf32>
    %824 = vector.broadcast %822 : f32 to vector<16x16xf32>
    %825 = arith.mulf %823, %824 : vector<16x16xf32>
    %826 = arith.addf %806, %825 : vector<16x16xf32>
    %c152 = arith.constant 152 : index
    %827 = memref.load %arg3[%c152] : memref<196xf32, #tpu.memory_space<smem>>
    %828 = vector.extract_strided_slice %801 {offsets = [0, 5], sizes = [16, 16], strides = [1, 1]} : vector<16x22xf32> to vector<16x16xf32>
    %829 = vector.broadcast %827 : f32 to vector<16x16xf32>
    %830 = arith.mulf %828, %829 : vector<16x16xf32>
    %831 = arith.addf %811, %830 : vector<16x16xf32>
    %c153 = arith.constant 153 : index
    %832 = memref.load %arg3[%c153] : memref<196xf32, #tpu.memory_space<smem>>
    %833 = vector.extract_strided_slice %801 {offsets = [0, 6], sizes = [16, 16], strides = [1, 1]} : vector<16x22xf32> to vector<16x16xf32>
    %834 = vector.broadcast %832 : f32 to vector<16x16xf32>
    %835 = arith.mulf %833, %834 : vector<16x16xf32>
    %836 = arith.addf %816, %835 : vector<16x16xf32>
    %c3_87 = arith.constant 3 : index
    %c1_88 = arith.constant 1 : index
    %c0_89 = arith.constant 0 : index
    %837 = vector.load %arg6[%c3_87, %c1_88, %c0_89] : memref<4x22x22xf32, #tpu.memory_space<vmem>>, vector<1x16x22xf32>
    %838 = vector.shape_cast %837 : vector<1x16x22xf32> to vector<16x22xf32>
    %c154 = arith.constant 154 : index
    %839 = memref.load %arg3[%c154] : memref<196xf32, #tpu.memory_space<smem>>
    %840 = vector.extract_strided_slice %838 {offsets = [0, 0], sizes = [16, 16], strides = [1, 1]} : vector<16x22xf32> to vector<16x16xf32>
    %841 = vector.broadcast %839 : f32 to vector<16x16xf32>
    %842 = arith.mulf %840, %841 : vector<16x16xf32>
    %843 = arith.addf %821, %842 : vector<16x16xf32>
    %c155 = arith.constant 155 : index
    %844 = memref.load %arg3[%c155] : memref<196xf32, #tpu.memory_space<smem>>
    %845 = vector.extract_strided_slice %838 {offsets = [0, 1], sizes = [16, 16], strides = [1, 1]} : vector<16x22xf32> to vector<16x16xf32>
    %846 = vector.broadcast %844 : f32 to vector<16x16xf32>
    %847 = arith.mulf %845, %846 : vector<16x16xf32>
    %848 = arith.addf %826, %847 : vector<16x16xf32>
    %c156 = arith.constant 156 : index
    %849 = memref.load %arg3[%c156] : memref<196xf32, #tpu.memory_space<smem>>
    %850 = vector.extract_strided_slice %838 {offsets = [0, 2], sizes = [16, 16], strides = [1, 1]} : vector<16x22xf32> to vector<16x16xf32>
    %851 = vector.broadcast %849 : f32 to vector<16x16xf32>
    %852 = arith.mulf %850, %851 : vector<16x16xf32>
    %853 = arith.addf %831, %852 : vector<16x16xf32>
    %c157 = arith.constant 157 : index
    %854 = memref.load %arg3[%c157] : memref<196xf32, #tpu.memory_space<smem>>
    %855 = vector.extract_strided_slice %838 {offsets = [0, 3], sizes = [16, 16], strides = [1, 1]} : vector<16x22xf32> to vector<16x16xf32>
    %856 = vector.broadcast %854 : f32 to vector<16x16xf32>
    %857 = arith.mulf %855, %856 : vector<16x16xf32>
    %858 = arith.addf %836, %857 : vector<16x16xf32>
    %c158 = arith.constant 158 : index
    %859 = memref.load %arg3[%c158] : memref<196xf32, #tpu.memory_space<smem>>
    %860 = vector.extract_strided_slice %838 {offsets = [0, 4], sizes = [16, 16], strides = [1, 1]} : vector<16x22xf32> to vector<16x16xf32>
    %861 = vector.broadcast %859 : f32 to vector<16x16xf32>
    %862 = arith.mulf %860, %861 : vector<16x16xf32>
    %863 = arith.addf %843, %862 : vector<16x16xf32>
    %c159 = arith.constant 159 : index
    %864 = memref.load %arg3[%c159] : memref<196xf32, #tpu.memory_space<smem>>
    %865 = vector.extract_strided_slice %838 {offsets = [0, 5], sizes = [16, 16], strides = [1, 1]} : vector<16x22xf32> to vector<16x16xf32>
    %866 = vector.broadcast %864 : f32 to vector<16x16xf32>
    %867 = arith.mulf %865, %866 : vector<16x16xf32>
    %868 = arith.addf %848, %867 : vector<16x16xf32>
    %c160 = arith.constant 160 : index
    %869 = memref.load %arg3[%c160] : memref<196xf32, #tpu.memory_space<smem>>
    %870 = vector.extract_strided_slice %838 {offsets = [0, 6], sizes = [16, 16], strides = [1, 1]} : vector<16x22xf32> to vector<16x16xf32>
    %871 = vector.broadcast %869 : f32 to vector<16x16xf32>
    %872 = arith.mulf %870, %871 : vector<16x16xf32>
    %873 = arith.addf %853, %872 : vector<16x16xf32>
    %c3_90 = arith.constant 3 : index
    %c2_91 = arith.constant 2 : index
    %c0_92 = arith.constant 0 : index
    %874 = vector.load %arg6[%c3_90, %c2_91, %c0_92] : memref<4x22x22xf32, #tpu.memory_space<vmem>>, vector<1x16x22xf32>
    %875 = vector.shape_cast %874 : vector<1x16x22xf32> to vector<16x22xf32>
    %c161 = arith.constant 161 : index
    %876 = memref.load %arg3[%c161] : memref<196xf32, #tpu.memory_space<smem>>
    %877 = vector.extract_strided_slice %875 {offsets = [0, 0], sizes = [16, 16], strides = [1, 1]} : vector<16x22xf32> to vector<16x16xf32>
    %878 = vector.broadcast %876 : f32 to vector<16x16xf32>
    %879 = arith.mulf %877, %878 : vector<16x16xf32>
    %880 = arith.addf %858, %879 : vector<16x16xf32>
    %c162 = arith.constant 162 : index
    %881 = memref.load %arg3[%c162] : memref<196xf32, #tpu.memory_space<smem>>
    %882 = vector.extract_strided_slice %875 {offsets = [0, 1], sizes = [16, 16], strides = [1, 1]} : vector<16x22xf32> to vector<16x16xf32>
    %883 = vector.broadcast %881 : f32 to vector<16x16xf32>
    %884 = arith.mulf %882, %883 : vector<16x16xf32>
    %885 = arith.addf %863, %884 : vector<16x16xf32>
    %c163 = arith.constant 163 : index
    %886 = memref.load %arg3[%c163] : memref<196xf32, #tpu.memory_space<smem>>
    %887 = vector.extract_strided_slice %875 {offsets = [0, 2], sizes = [16, 16], strides = [1, 1]} : vector<16x22xf32> to vector<16x16xf32>
    %888 = vector.broadcast %886 : f32 to vector<16x16xf32>
    %889 = arith.mulf %887, %888 : vector<16x16xf32>
    %890 = arith.addf %868, %889 : vector<16x16xf32>
    %c164 = arith.constant 164 : index
    %891 = memref.load %arg3[%c164] : memref<196xf32, #tpu.memory_space<smem>>
    %892 = vector.extract_strided_slice %875 {offsets = [0, 3], sizes = [16, 16], strides = [1, 1]} : vector<16x22xf32> to vector<16x16xf32>
    %893 = vector.broadcast %891 : f32 to vector<16x16xf32>
    %894 = arith.mulf %892, %893 : vector<16x16xf32>
    %895 = arith.addf %873, %894 : vector<16x16xf32>
    %c165 = arith.constant 165 : index
    %896 = memref.load %arg3[%c165] : memref<196xf32, #tpu.memory_space<smem>>
    %897 = vector.extract_strided_slice %875 {offsets = [0, 4], sizes = [16, 16], strides = [1, 1]} : vector<16x22xf32> to vector<16x16xf32>
    %898 = vector.broadcast %896 : f32 to vector<16x16xf32>
    %899 = arith.mulf %897, %898 : vector<16x16xf32>
    %900 = arith.addf %880, %899 : vector<16x16xf32>
    %c166 = arith.constant 166 : index
    %901 = memref.load %arg3[%c166] : memref<196xf32, #tpu.memory_space<smem>>
    %902 = vector.extract_strided_slice %875 {offsets = [0, 5], sizes = [16, 16], strides = [1, 1]} : vector<16x22xf32> to vector<16x16xf32>
    %903 = vector.broadcast %901 : f32 to vector<16x16xf32>
    %904 = arith.mulf %902, %903 : vector<16x16xf32>
    %905 = arith.addf %885, %904 : vector<16x16xf32>
    %c167 = arith.constant 167 : index
    %906 = memref.load %arg3[%c167] : memref<196xf32, #tpu.memory_space<smem>>
    %907 = vector.extract_strided_slice %875 {offsets = [0, 6], sizes = [16, 16], strides = [1, 1]} : vector<16x22xf32> to vector<16x16xf32>
    %908 = vector.broadcast %906 : f32 to vector<16x16xf32>
    %909 = arith.mulf %907, %908 : vector<16x16xf32>
    %910 = arith.addf %890, %909 : vector<16x16xf32>
    %c3_93 = arith.constant 3 : index
    %c3_94 = arith.constant 3 : index
    %c0_95 = arith.constant 0 : index
    %911 = vector.load %arg6[%c3_93, %c3_94, %c0_95] : memref<4x22x22xf32, #tpu.memory_space<vmem>>, vector<1x16x22xf32>
    %912 = vector.shape_cast %911 : vector<1x16x22xf32> to vector<16x22xf32>
    %c168 = arith.constant 168 : index
    %913 = memref.load %arg3[%c168] : memref<196xf32, #tpu.memory_space<smem>>
    %914 = vector.extract_strided_slice %912 {offsets = [0, 0], sizes = [16, 16], strides = [1, 1]} : vector<16x22xf32> to vector<16x16xf32>
    %915 = vector.broadcast %913 : f32 to vector<16x16xf32>
    %916 = arith.mulf %914, %915 : vector<16x16xf32>
    %917 = arith.addf %895, %916 : vector<16x16xf32>
    %c169 = arith.constant 169 : index
    %918 = memref.load %arg3[%c169] : memref<196xf32, #tpu.memory_space<smem>>
    %919 = vector.extract_strided_slice %912 {offsets = [0, 1], sizes = [16, 16], strides = [1, 1]} : vector<16x22xf32> to vector<16x16xf32>
    %920 = vector.broadcast %918 : f32 to vector<16x16xf32>
    %921 = arith.mulf %919, %920 : vector<16x16xf32>
    %922 = arith.addf %900, %921 : vector<16x16xf32>
    %c170 = arith.constant 170 : index
    %923 = memref.load %arg3[%c170] : memref<196xf32, #tpu.memory_space<smem>>
    %924 = vector.extract_strided_slice %912 {offsets = [0, 2], sizes = [16, 16], strides = [1, 1]} : vector<16x22xf32> to vector<16x16xf32>
    %925 = vector.broadcast %923 : f32 to vector<16x16xf32>
    %926 = arith.mulf %924, %925 : vector<16x16xf32>
    %927 = arith.addf %905, %926 : vector<16x16xf32>
    %c171 = arith.constant 171 : index
    %928 = memref.load %arg3[%c171] : memref<196xf32, #tpu.memory_space<smem>>
    %929 = vector.extract_strided_slice %912 {offsets = [0, 3], sizes = [16, 16], strides = [1, 1]} : vector<16x22xf32> to vector<16x16xf32>
    %930 = vector.broadcast %928 : f32 to vector<16x16xf32>
    %931 = arith.mulf %929, %930 : vector<16x16xf32>
    %932 = arith.addf %910, %931 : vector<16x16xf32>
    %c172 = arith.constant 172 : index
    %933 = memref.load %arg3[%c172] : memref<196xf32, #tpu.memory_space<smem>>
    %934 = vector.extract_strided_slice %912 {offsets = [0, 4], sizes = [16, 16], strides = [1, 1]} : vector<16x22xf32> to vector<16x16xf32>
    %935 = vector.broadcast %933 : f32 to vector<16x16xf32>
    %936 = arith.mulf %934, %935 : vector<16x16xf32>
    %937 = arith.addf %917, %936 : vector<16x16xf32>
    %c173 = arith.constant 173 : index
    %938 = memref.load %arg3[%c173] : memref<196xf32, #tpu.memory_space<smem>>
    %939 = vector.extract_strided_slice %912 {offsets = [0, 5], sizes = [16, 16], strides = [1, 1]} : vector<16x22xf32> to vector<16x16xf32>
    %940 = vector.broadcast %938 : f32 to vector<16x16xf32>
    %941 = arith.mulf %939, %940 : vector<16x16xf32>
    %942 = arith.addf %922, %941 : vector<16x16xf32>
    %c174 = arith.constant 174 : index
    %943 = memref.load %arg3[%c174] : memref<196xf32, #tpu.memory_space<smem>>
    %944 = vector.extract_strided_slice %912 {offsets = [0, 6], sizes = [16, 16], strides = [1, 1]} : vector<16x22xf32> to vector<16x16xf32>
    %945 = vector.broadcast %943 : f32 to vector<16x16xf32>
    %946 = arith.mulf %944, %945 : vector<16x16xf32>
    %947 = arith.addf %927, %946 : vector<16x16xf32>
    %c3_96 = arith.constant 3 : index
    %c4_97 = arith.constant 4 : index
    %c0_98 = arith.constant 0 : index
    %948 = vector.load %arg6[%c3_96, %c4_97, %c0_98] : memref<4x22x22xf32, #tpu.memory_space<vmem>>, vector<1x16x22xf32>
    %949 = vector.shape_cast %948 : vector<1x16x22xf32> to vector<16x22xf32>
    %c175 = arith.constant 175 : index
    %950 = memref.load %arg3[%c175] : memref<196xf32, #tpu.memory_space<smem>>
    %951 = vector.extract_strided_slice %949 {offsets = [0, 0], sizes = [16, 16], strides = [1, 1]} : vector<16x22xf32> to vector<16x16xf32>
    %952 = vector.broadcast %950 : f32 to vector<16x16xf32>
    %953 = arith.mulf %951, %952 : vector<16x16xf32>
    %954 = arith.addf %932, %953 : vector<16x16xf32>
    %c176 = arith.constant 176 : index
    %955 = memref.load %arg3[%c176] : memref<196xf32, #tpu.memory_space<smem>>
    %956 = vector.extract_strided_slice %949 {offsets = [0, 1], sizes = [16, 16], strides = [1, 1]} : vector<16x22xf32> to vector<16x16xf32>
    %957 = vector.broadcast %955 : f32 to vector<16x16xf32>
    %958 = arith.mulf %956, %957 : vector<16x16xf32>
    %959 = arith.addf %937, %958 : vector<16x16xf32>
    %c177 = arith.constant 177 : index
    %960 = memref.load %arg3[%c177] : memref<196xf32, #tpu.memory_space<smem>>
    %961 = vector.extract_strided_slice %949 {offsets = [0, 2], sizes = [16, 16], strides = [1, 1]} : vector<16x22xf32> to vector<16x16xf32>
    %962 = vector.broadcast %960 : f32 to vector<16x16xf32>
    %963 = arith.mulf %961, %962 : vector<16x16xf32>
    %964 = arith.addf %942, %963 : vector<16x16xf32>
    %c178 = arith.constant 178 : index
    %965 = memref.load %arg3[%c178] : memref<196xf32, #tpu.memory_space<smem>>
    %966 = vector.extract_strided_slice %949 {offsets = [0, 3], sizes = [16, 16], strides = [1, 1]} : vector<16x22xf32> to vector<16x16xf32>
    %967 = vector.broadcast %965 : f32 to vector<16x16xf32>
    %968 = arith.mulf %966, %967 : vector<16x16xf32>
    %969 = arith.addf %947, %968 : vector<16x16xf32>
    %c179 = arith.constant 179 : index
    %970 = memref.load %arg3[%c179] : memref<196xf32, #tpu.memory_space<smem>>
    %971 = vector.extract_strided_slice %949 {offsets = [0, 4], sizes = [16, 16], strides = [1, 1]} : vector<16x22xf32> to vector<16x16xf32>
    %972 = vector.broadcast %970 : f32 to vector<16x16xf32>
    %973 = arith.mulf %971, %972 : vector<16x16xf32>
    %974 = arith.addf %954, %973 : vector<16x16xf32>
    %c180 = arith.constant 180 : index
    %975 = memref.load %arg3[%c180] : memref<196xf32, #tpu.memory_space<smem>>
    %976 = vector.extract_strided_slice %949 {offsets = [0, 5], sizes = [16, 16], strides = [1, 1]} : vector<16x22xf32> to vector<16x16xf32>
    %977 = vector.broadcast %975 : f32 to vector<16x16xf32>
    %978 = arith.mulf %976, %977 : vector<16x16xf32>
    %979 = arith.addf %959, %978 : vector<16x16xf32>
    %c181 = arith.constant 181 : index
    %980 = memref.load %arg3[%c181] : memref<196xf32, #tpu.memory_space<smem>>
    %981 = vector.extract_strided_slice %949 {offsets = [0, 6], sizes = [16, 16], strides = [1, 1]} : vector<16x22xf32> to vector<16x16xf32>
    %982 = vector.broadcast %980 : f32 to vector<16x16xf32>
    %983 = arith.mulf %981, %982 : vector<16x16xf32>
    %984 = arith.addf %964, %983 : vector<16x16xf32>
    %c3_99 = arith.constant 3 : index
    %c5_100 = arith.constant 5 : index
    %c0_101 = arith.constant 0 : index
    %985 = vector.load %arg6[%c3_99, %c5_100, %c0_101] : memref<4x22x22xf32, #tpu.memory_space<vmem>>, vector<1x16x22xf32>
    %986 = vector.shape_cast %985 : vector<1x16x22xf32> to vector<16x22xf32>
    %c182 = arith.constant 182 : index
    %987 = memref.load %arg3[%c182] : memref<196xf32, #tpu.memory_space<smem>>
    %988 = vector.extract_strided_slice %986 {offsets = [0, 0], sizes = [16, 16], strides = [1, 1]} : vector<16x22xf32> to vector<16x16xf32>
    %989 = vector.broadcast %987 : f32 to vector<16x16xf32>
    %990 = arith.mulf %988, %989 : vector<16x16xf32>
    %991 = arith.addf %969, %990 : vector<16x16xf32>
    %c183 = arith.constant 183 : index
    %992 = memref.load %arg3[%c183] : memref<196xf32, #tpu.memory_space<smem>>
    %993 = vector.extract_strided_slice %986 {offsets = [0, 1], sizes = [16, 16], strides = [1, 1]} : vector<16x22xf32> to vector<16x16xf32>
    %994 = vector.broadcast %992 : f32 to vector<16x16xf32>
    %995 = arith.mulf %993, %994 : vector<16x16xf32>
    %996 = arith.addf %974, %995 : vector<16x16xf32>
    %c184 = arith.constant 184 : index
    %997 = memref.load %arg3[%c184] : memref<196xf32, #tpu.memory_space<smem>>
    %998 = vector.extract_strided_slice %986 {offsets = [0, 2], sizes = [16, 16], strides = [1, 1]} : vector<16x22xf32> to vector<16x16xf32>
    %999 = vector.broadcast %997 : f32 to vector<16x16xf32>
    %1000 = arith.mulf %998, %999 : vector<16x16xf32>
    %1001 = arith.addf %979, %1000 : vector<16x16xf32>
    %c185 = arith.constant 185 : index
    %1002 = memref.load %arg3[%c185] : memref<196xf32, #tpu.memory_space<smem>>
    %1003 = vector.extract_strided_slice %986 {offsets = [0, 3], sizes = [16, 16], strides = [1, 1]} : vector<16x22xf32> to vector<16x16xf32>
    %1004 = vector.broadcast %1002 : f32 to vector<16x16xf32>
    %1005 = arith.mulf %1003, %1004 : vector<16x16xf32>
    %1006 = arith.addf %984, %1005 : vector<16x16xf32>
    %c186 = arith.constant 186 : index
    %1007 = memref.load %arg3[%c186] : memref<196xf32, #tpu.memory_space<smem>>
    %1008 = vector.extract_strided_slice %986 {offsets = [0, 4], sizes = [16, 16], strides = [1, 1]} : vector<16x22xf32> to vector<16x16xf32>
    %1009 = vector.broadcast %1007 : f32 to vector<16x16xf32>
    %1010 = arith.mulf %1008, %1009 : vector<16x16xf32>
    %1011 = arith.addf %991, %1010 : vector<16x16xf32>
    %c187 = arith.constant 187 : index
    %1012 = memref.load %arg3[%c187] : memref<196xf32, #tpu.memory_space<smem>>
    %1013 = vector.extract_strided_slice %986 {offsets = [0, 5], sizes = [16, 16], strides = [1, 1]} : vector<16x22xf32> to vector<16x16xf32>
    %1014 = vector.broadcast %1012 : f32 to vector<16x16xf32>
    %1015 = arith.mulf %1013, %1014 : vector<16x16xf32>
    %1016 = arith.addf %996, %1015 : vector<16x16xf32>
    %c188 = arith.constant 188 : index
    %1017 = memref.load %arg3[%c188] : memref<196xf32, #tpu.memory_space<smem>>
    %1018 = vector.extract_strided_slice %986 {offsets = [0, 6], sizes = [16, 16], strides = [1, 1]} : vector<16x22xf32> to vector<16x16xf32>
    %1019 = vector.broadcast %1017 : f32 to vector<16x16xf32>
    %1020 = arith.mulf %1018, %1019 : vector<16x16xf32>
    %1021 = arith.addf %1001, %1020 : vector<16x16xf32>
    %c3_102 = arith.constant 3 : index
    %c6_103 = arith.constant 6 : index
    %c0_104 = arith.constant 0 : index
    %1022 = vector.load %arg6[%c3_102, %c6_103, %c0_104] : memref<4x22x22xf32, #tpu.memory_space<vmem>>, vector<1x16x22xf32>
    %1023 = vector.shape_cast %1022 : vector<1x16x22xf32> to vector<16x22xf32>
    %c189 = arith.constant 189 : index
    %1024 = memref.load %arg3[%c189] : memref<196xf32, #tpu.memory_space<smem>>
    %1025 = vector.extract_strided_slice %1023 {offsets = [0, 0], sizes = [16, 16], strides = [1, 1]} : vector<16x22xf32> to vector<16x16xf32>
    %1026 = vector.broadcast %1024 : f32 to vector<16x16xf32>
    %1027 = arith.mulf %1025, %1026 : vector<16x16xf32>
    %1028 = arith.addf %1006, %1027 : vector<16x16xf32>
    %c190 = arith.constant 190 : index
    %1029 = memref.load %arg3[%c190] : memref<196xf32, #tpu.memory_space<smem>>
    %1030 = vector.extract_strided_slice %1023 {offsets = [0, 1], sizes = [16, 16], strides = [1, 1]} : vector<16x22xf32> to vector<16x16xf32>
    %1031 = vector.broadcast %1029 : f32 to vector<16x16xf32>
    %1032 = arith.mulf %1030, %1031 : vector<16x16xf32>
    %1033 = arith.addf %1011, %1032 : vector<16x16xf32>
    %c191 = arith.constant 191 : index
    %1034 = memref.load %arg3[%c191] : memref<196xf32, #tpu.memory_space<smem>>
    %1035 = vector.extract_strided_slice %1023 {offsets = [0, 2], sizes = [16, 16], strides = [1, 1]} : vector<16x22xf32> to vector<16x16xf32>
    %1036 = vector.broadcast %1034 : f32 to vector<16x16xf32>
    %1037 = arith.mulf %1035, %1036 : vector<16x16xf32>
    %1038 = arith.addf %1016, %1037 : vector<16x16xf32>
    %c192 = arith.constant 192 : index
    %1039 = memref.load %arg3[%c192] : memref<196xf32, #tpu.memory_space<smem>>
    %1040 = vector.extract_strided_slice %1023 {offsets = [0, 3], sizes = [16, 16], strides = [1, 1]} : vector<16x22xf32> to vector<16x16xf32>
    %1041 = vector.broadcast %1039 : f32 to vector<16x16xf32>
    %1042 = arith.mulf %1040, %1041 : vector<16x16xf32>
    %1043 = arith.addf %1021, %1042 : vector<16x16xf32>
    %c193 = arith.constant 193 : index
    %1044 = memref.load %arg3[%c193] : memref<196xf32, #tpu.memory_space<smem>>
    %1045 = vector.extract_strided_slice %1023 {offsets = [0, 4], sizes = [16, 16], strides = [1, 1]} : vector<16x22xf32> to vector<16x16xf32>
    %1046 = vector.broadcast %1044 : f32 to vector<16x16xf32>
    %1047 = arith.mulf %1045, %1046 : vector<16x16xf32>
    %1048 = arith.addf %1028, %1047 : vector<16x16xf32>
    %c194 = arith.constant 194 : index
    %1049 = memref.load %arg3[%c194] : memref<196xf32, #tpu.memory_space<smem>>
    %1050 = vector.extract_strided_slice %1023 {offsets = [0, 5], sizes = [16, 16], strides = [1, 1]} : vector<16x22xf32> to vector<16x16xf32>
    %1051 = vector.broadcast %1049 : f32 to vector<16x16xf32>
    %1052 = arith.mulf %1050, %1051 : vector<16x16xf32>
    %1053 = arith.addf %1033, %1052 : vector<16x16xf32>
    %c195 = arith.constant 195 : index
    %1054 = memref.load %arg3[%c195] : memref<196xf32, #tpu.memory_space<smem>>
    %1055 = vector.extract_strided_slice %1023 {offsets = [0, 6], sizes = [16, 16], strides = [1, 1]} : vector<16x22xf32> to vector<16x16xf32>
    %1056 = vector.broadcast %1054 : f32 to vector<16x16xf32>
    %1057 = arith.mulf %1055, %1056 : vector<16x16xf32>
    %1058 = arith.addf %1038, %1057 : vector<16x16xf32>
    %1059 = arith.addf %1058, %1043 : vector<16x16xf32>
    %1060 = arith.addf %1048, %1053 : vector<16x16xf32>
    %1061 = arith.addf %1059, %1060 : vector<16x16xf32>
    %c0_105 = arith.constant 0 : index
    %1062 = memref.load %arg2[%c0_105] : memref<1xf32, #tpu.memory_space<smem>>
    %1063 = vector.broadcast %1062 : f32 to vector<16x16xf32>
    %1064 = arith.addf %1061, %1063 : vector<16x16xf32>
    %1065 = arith.negf %1064 : vector<16x16xf32>
    %1066 = math.exp %1065 : vector<16x16xf32>
    %cst_106 = arith.constant 1.000000e+00 : f32
    %1067 = vector.broadcast %cst_106 : f32 to vector<16x16xf32>
    %1068 = arith.addf %1067, %1066 : vector<16x16xf32>
    %1069 = arith.divf %1067, %1068 : vector<16x16xf32>
    %c0_107 = arith.constant 0 : index
    %c0_108 = arith.constant 0 : index
    %1070 = arith.index_cast %1 : i32 to index
    %c0_109 = arith.constant 0 : index
    %1071 = vector.load %arg4[%c0_107, %c0_108, %1070, %c0_109] : memref<1x4x16x16xf32, #tpu.memory_space<vmem>>, vector<1x4x16x16xf32>
    %1072 = vector.shape_cast %1071 : vector<1x4x16x16xf32> to vector<4x16x16xf32>
    %1073 = vector.shape_cast %1069 : vector<16x16xf32> to vector<1x16x16xf32>
    %1074 = vector.broadcast %1073 : vector<1x16x16xf32> to vector<4x16x16xf32>
    %1075 = arith.mulf %1072, %1074 : vector<4x16x16xf32>
    %c0_110 = arith.constant 0 : index
    %c0_111 = arith.constant 0 : index
    %c0_112 = arith.constant 0 : index
    %c0_113 = arith.constant 0 : index
    %1076 = vector.load %arg5[%c0_110, %c0_111, %c0_112, %c0_113] : memref<1x4x16x16xf32, #tpu.memory_space<vmem>>, vector<1x4x16x16xf32>
    %1077 = vector.shape_cast %1076 : vector<1x4x16x16xf32> to vector<4x16x16xf32>
    %1078 = vector.shape_cast %1075 : vector<4x16x16xf32> to vector<1x4x16x16xf32>
    tpu.vector_store %arg5[%c0_110, %c0_111, %c0_112, %c0_113], %1078 {strides = array<i32>} : memref<1x4x16x16xf32, #tpu.memory_space<vmem>>, vector<1x4x16x16xf32>,
    return
  }
  func.func @transform_0(%arg0: i32, %arg1: i32) -> i32 {
    %c0_i32 = arith.constant 0 : i32
    %c0_i32_0 = arith.constant 0 : i32
    return %c0_i32 : i32
  }
  func.func @transform_1(%arg0: i32, %arg1: i32) -> i32 {
    %c0_i32 = arith.constant 0 : i32
    %c0_i32_0 = arith.constant 0 : i32
    return %c0_i32 : i32
  }
  func.func @transform_2(%arg0: i32, %arg1: i32) -> (i32, i32, i32, i32) {
    %c0_i32 = arith.constant 0 : i32
    %c0_i32_0 = arith.constant 0 : i32
    %c0_i32_1 = arith.constant 0 : i32
    %c0_i32_2 = arith.constant 0 : i32
    return %arg0, %c0_i32, %c0_i32_0, %c0_i32_1 : i32, i32, i32, i32
  }
  func.func @transform_3(%arg0: i32, %arg1: i32) -> (i32, i32, i32, i32) {
    %c0_i32 = arith.constant 0 : i32
    %c0_i32_0 = arith.constant 0 : i32
    %c0_i32_1 = arith.constant 0 : i32
    return %arg0, %c0_i32, %arg1, %c0_i32_0 : i32, i32, i32, i32
  }
}

</mosaic_0001>

<bundles_post_ra>
// kernel: tpu_custom_call.1
= control target key start
LH: loop header
LB: loop body
LE: loop exit
PB: predicated region body
PF: predicated region fallthrough
CT: control target
= control target key end

     0   :  { %s5560_s0 = inlined_call_operand.<no memory space> [shape: f32[1], index: 0, kind: input, shape index: {}]   ;;  %s5561_s1 = inlined_call_operand.vmem [shape: f32[196], index: 1, kind: input, shape index: {}]   ;;  %s5562_s2 = inlined_call_operand.hbm [shape: f32[2,4,16,16], index: 2, kind: input, shape index: {}]   ;;  %s5563_s3 = inlined_call_operand.hbm [shape: f32[2,4,16,16], index: 3, kind: output, shape index: {}]  }
   0x1   :  { %8 = sst [smem:[#allocation3]] %s5560_s0 }
   0x2   :  { %9 = vsyncpa [#allocation7], 0 }
   0x3   :  { %10 = vsyncpa [#allocation5], 0 }
   0x4   :  { %12 = vsyncpa [#allocation5 + $0x1], 0 }
   0x5   :  { %13 = vsyncpa [#allocation6], 0 }
   0x6   :  { %15 = vsyncpa [#allocation6 + $0x1], 0  ;;  %s3634_s14 = smov 0   ;;  %s3636_s15 = smov 0  }
   0x7   :  { %s3638_s16 = smov 0   ;;  %s3640_s17 = smov 0  }
   0x8   :  { %s3642_s18 = smov 0   ;;  %s3644_s19 = smov 0  }
   0x9 LB: > { %s3143_s0 = sadd.s32 4294967295, %s3594_s19   ;;  %s3144_s20 = sadd.s32 4294967294, %s3594_s19   ;;  %s3594_s19 = sphi %s3644_s19, %s21_s19   ;;  %s3590_s18 = sphi %s3642_s18, %s5583_s18   ;;  %s3586_s17 = sphi %s3640_s17, %s5582_s17   ;;  %s3582_s16 = sphi %s3638_s16, %s5581_s16   ;;  %s3578_s15 = sphi %s3636_s15, %s5580_s15   ;;  %s3574_s14 = sphi %s3634_s14, %s5579_s14  }
   0xa   : > { %s82_s21 = sadd.s32 1, %s3582_s16  ;;  %p89_p0 = scmp.ne.s32.totalorder %s3582_s16, %s3578_s15 }
   0xb   : > { %p90_p1 = scmp.eq.s32.totalorder %s3594_s19, 0  ;;  %p95_p2 = scmp.ne.s32.totalorder %s3578_s15, %s3574_s14 }
   0xc   : > { %p3672_p3 = scmp.eq.s32.totalorder %s3143_s0, 0  ;;  %p121_p4 = scmp.eq.s32.totalorder %s3143_s0, 1 }
   0xd   : > { %p3676_p5 = por %p90_p1, %p89_p0  ;;  %p127_p6 = scmp.eq.s32.totalorder %s3144_s20, 1 }
   0xe   : > { %p3682_p7 = por %p3672_p3, %p95_p2  ;;  %p3686_p8 = por %p121_p4, %p89_p0 }
   0xf   : > { %p3690_p9 = por %p127_p6, %p95_p2  ;;  %p3145_p10 = scmp.ge.s32.totalorder %s3594_s19, 1 }
  0x10   : > { %p134_p11 = scmp.lt.s32.totalorder %s3594_s19, 3  ;;  %s149_s29 = sshll.u32 %s5561_s1, 4  ;;  %s150_s29 = int_to_ptr.vmem [resolvable:$true] %s149_s29 }
  0x11   : > { %p3147_p13 = scmp.ge.s32.totalorder %s3594_s19, 2  ;;  %p3388_p0 = scmp.lt.s32.totalorder %s3594_s19, 2 }
  0x12   : > { %p3699_p12 = pnand %p3145_p10, %p134_p11  ;;  %s33_s5 = sadd.s32 1, %s3590_s18 }
  0x13   : > { %p3709_p2 = pnand %p3388_p0, %p3676_p5  ;;  %p35_p6 = scmp.ge.s32.totalorder %s33_s5, 2 }
  0x14   : > { %p3375_p1 = pneg %p3699_p12  ;;  %s160_s6 = sand.u32 1, %s3582_s16  }
  0x15   : > { %s3596_s7 = smov [#allocation4]   ;;  %s5585_s5 = smov (%p35_p6, %s33_s5), 0 }
  0x16   : > { %p3376_p4 = pnand %p3375_p1, %p3672_p3  ;;  %s3148_s8 = sshll.u32 %s160_s6, 6 }
  0x17   : > { %s79_s9 = ssub.s32 %s3590_s18, %s5585_s5  ;;  %s3365_s10 = sshll.u32 %s3590_s18, 6 }
  0x18   : > { %3378 = dma.vmem_to_smem (!%p3376_p4), %s150_s29, 32, %s3596_s7, [#allocation7]  }
  0x19   : > { %p80_p10 = scmp.eq.s32.totalorder %s79_s9, 0  ;;  %s169_s13 = scalar_lea.hbm %s5562_s2, %s3365_s10 }
  0x1a   : > { %s164_s0 = scalar_lea.vmem [#allocation8], %s3148_s8  ;;  %s170_s27 = sshll.u32 %s169_s13, 4  ;;  %s171_s27 = int_to_ptr.hbm [resolvable:$true] %s170_s27 }
  0x1b   : > { %s172_s20 = sshll.u32 %s164_s0, 4  ;;  %s161_s28 = scalar_lea.sflag [#allocation5], %s160_s6  ;;  %s173_s20 = int_to_ptr.vmem [resolvable:$true] %s172_s20 }
  0x1c   : > { %s3728_s23 = scalar_select %p80_p10, %s3582_s16, %s82_s21  }
  0x1d   : > { %s3597_s29 = smov 128   ;;  %s3598_s7 = smov 8  }
  0x1e   : > { %3382 = dma.hbm_to_vmem [thread:$0]  (!%p3709_p2), %s171_s27, 1024, %s173_s20, %s161_s28, %s3597_s29, %s3597_s29, %s3598_s7  }
  0x1f   : > { %184 = sbr.rel (%p3699_p12) target bundleno = 1312 (0x520), region = 32 }
  0x24   : > { %3561 = dma.done.wait (%p3672_p3), [#allocation7], 32  }
  0x25   : > { %3563 = vsyncadd (%p3672_p3), [#allocation7], 4294967264  ;;  %s3739_s21 = sand.u32 1, %s3578_s15  }
  0x26   : > { %s5564_s6 = sshll.u32 %s3739_s21, 6  ;;  %s192_s8 = scalar_lea.sflag [#allocation5], %s3739_s21 }
  0x27   : > { %s3745_s4 = scalar_lea.vmem [#allocation8], %s5564_s6 }
  0x28   : > { %3565 = dma.done.wait (%p3682_p7), %s192_s8, 1024  }
  0x29   : > { %3567 = vsyncadd (%p3682_p7), %s192_s8, 4294966272 }
  0x2a   : > { %201 = sfence }
  0x2b   : > { %v251_v0 = vld [vmem:[%s3745_s4] sm:$0xff]  ;;  %v253_v1 = vld [vmem:[%s3745_s4 + $0x10] sm:$0xff]  ;;  %s3599_s22 = smov 3   ;;  %v252_v3 = vld [vmem:[%s3745_s4 + $0x8] sm:$0xff]  ;;  %vm222_vm0 = vcmask 23552   ;;  %v3600_v5 = vmov 0.0  }
  0x2c   : > { %267 = vrot.lane.b32.xlu0 %v251_v0, %s3599_s22  ;;  %271 = vrot.lane.b32.xlu1 %v253_v1, %s3599_s22  ;;  %v255_v2 = vld [vmem:[%s3745_s4 + $0x20] sm:$0xff]  ;;  %v254_v4 = vld [vmem:[%s3745_s4 + $0x18] sm:$0xff]  ;;  %223 = vst.msk [vmem:[#allocation2] sm:$0xff] %vm222_vm0, %v3600_v5  ;;  %vm236_vm1 = vcmask 179352   ;;  %vm335_vm2 = vcmask 149528   ;;  %vm225_vm3 = vcmask 21504  }
  0x2d   : > { %275 = vrot.lane.b32.xlu2 %v255_v2, %s3599_s22  ;;  %224 = vst.msk [vmem:[#allocation2 + $0x8] sm:$0xff] %vm222_vm0, %v3600_v5  ;;  %v256_v6 = vld [vmem:[%s3745_s4 + $0x28] sm:$0xff]  ;;  %v258_v7 = vld [vmem:[%s3745_s4 + $0x38] sm:$0xff]  ;;  %v257_v8 = vld [vmem:[%s3745_s4 + $0x30] sm:$0xff]  ;;  %vm239_vm4 = vcmask 177304   ;;  %s3167_s24 = sld [smem:[#allocation4 + $0x5]] }
  0x2e   : > { %237 = vst.msk [vmem:[#allocation2] sm:$0xff] %vm236_vm1, %v3600_v5  ;;  %vm291_vm5 = vcmask 154648   ;;  %s3166_s30 = sld [smem:[#allocation4 + $0x4]]  ;;  %s3601_s10 = smov 124   ;;  %vm3014_vm10 = vcmask 130048  }
  0x2f   : > { %238 = vst.msk [vmem:[#allocation2 + $0x8] sm:$0xff] %vm236_vm1, %v3600_v5  ;;  %s3168_s9 = sld [smem:[#allocation4 + $0x6]]  ;;  %s3602_s0 = smov 127  }
  0x30   : > { %336 = vst.msk [vmem:[#allocation2] sm:$0x7] %vm335_vm2, %v3600_v5  ;;  %s3170_s11 = sld [smem:[#allocation4 + $0x8]]  ;;  %s3603_s8 = smov 123  }
  0x31   : > { %227 = vst.msk [vmem:[#allocation2 + $0x18] sm:$0xff] %vm222_vm0, %v3600_v5  ;;  %s3169_s12 = sld [smem:[#allocation4 + $0x7]] }
  0x32   : > { %228 = vst.msk [vmem:[#allocation2 + $0x20] sm:$0xff] %vm222_vm0, %v3600_v5  ;;  %s3171_s13 = sld [smem:[#allocation4 + $0x9]] }
  0x33   : > { %230 = vst.msk [vmem:[#allocation2 + $0x30] sm:$0xff] %vm222_vm0, %v3600_v5  ;;  %v420_v10 = vstv %s3167_s24  ;;  %s3173_s20 = sld [smem:[#allocation4 + $0xb]] }
  0x34   : > { %269 = vrot.lane.b32.xlu0 %v252_v3, %s3599_s22  ;;  %273 = vrot.lane.b32.xlu1 %v254_v4, %s3599_s22  ;;  %231 = vst.msk [vmem:[#allocation2 + $0x38] sm:$0xff] %vm222_vm0, %v3600_v5  ;;  %v406_v11 = vstv %s3166_s30  ;;  %s3172_s27 = sld [smem:[#allocation4 + $0xa]]  ;;  %s3604_s30 = smov 2  }
  0x35   : > { %277 = vrot.lane.b32.xlu2 %v256_v6, %s3599_s22  ;;  %233 = vst.msk [vmem:[#allocation2 + $0x48] sm:$0xff] %vm222_vm0, %v3600_v5  ;;  %v434_v17 = vstv %s3168_s9  ;;  %s3174_s28 = sld [smem:[#allocation4 + $0xc]] }
  0x36   : > { %234 = vst.msk [vmem:[#allocation2 + $0x50] sm:$0xff] %vm222_vm0, %v3600_v5  ;;  %v464_v22 = vstv %s3170_s11  ;;  %s3817_s29 = sld [smem:[#allocation4 + $0xe]] }
  0x37   : > { %241 = vst.msk [vmem:[#allocation2 + $0x18] sm:$0xff] %vm236_vm1, %v3600_v5  ;;  %v450_v23 = vstv %s3169_s12  ;;  %s3175_s7 = sld [smem:[#allocation4 + $0xd]] }
  0x38   : > { %242 = vst.msk [vmem:[#allocation2 + $0x20] sm:$0xff] %vm236_vm1, %v3600_v5  ;;  %v478_v28 = vstv %s3171_s13  ;;  %s3177_s24 = sld [smem:[#allocation4 + $0xf]]  ;;  %s3605_s13 = smov 126  }
  0x39   : > { %244 = vst.msk [vmem:[#allocation2 + $0x30] sm:$0xff] %vm236_vm1, %v3600_v5  ;;  %v506_v32 = vstv %s3173_s20  ;;  %s3179_s9 = sld [smem:[#allocation4 + $0x11]] }
  0x3a   : > { %245 = vst.msk [vmem:[#allocation2 + $0x38] sm:$0xff] %vm236_vm1, %v3600_v5  ;;  %v492_v33 = vstv %s3172_s27  ;;  %s3178_s11 = sld [smem:[#allocation4 + $0x10]] }
  0x3b   : > { %247 = vst.msk [vmem:[#allocation2 + $0x48] sm:$0xff] %vm236_vm1, %v3600_v5  ;;  %v520_v37 = vstv %s3174_s28  ;;  %s3180_s12 = sld [smem:[#allocation4 + $0x12]] }
  0x3c   : > { %281 = vrot.lane.b32.xlu1 %v258_v7, %s3599_s22  ;;  %279 = vrot.lane.b32.xlu0 %v257_v8, %s3599_s22  ;;  %248 = vst.msk [vmem:[#allocation2 + $0x50] sm:$0xff] %vm236_vm1, %v3600_v5  ;;  %v550_v43 = vstv %s3817_s29  ;;  %s3182_s20 = sld [smem:[#allocation4 + $0x14]]  ;;  %s3606_s29 = smov 122  }
  0x3d   : > { %337 = vst.msk [vmem:[#allocation2 + $0x18] sm:$0x7] %vm335_vm2, %v3600_v5  ;;  %v534_v44 = vstv %s3175_s7  ;;  %s3181_s27 = sld [smem:[#allocation4 + $0x13]] }
  0x3e   : > { %338 = vst.msk [vmem:[#allocation2 + $0x30] sm:$0x7] %vm335_vm2, %v3600_v5  ;;  %v564_v50 = vstv %s3177_s24  ;;  %s3183_s28 = sld [smem:[#allocation4 + $0x15]] }
  0x3f   : > { %339 = vst.msk [vmem:[#allocation2 + $0x48] sm:$0x7] %vm335_vm2, %v3600_v5  ;;  %v592_v55 = vstv %s3179_s9  ;;  %s3185_s7 = sld [smem:[#allocation4 + $0x17]]  ;;  %s5567_s9 = smov 1  }
  0x40   : > { %226 = vst.msk [vmem:[#allocation2 + $0x10] sm:$0x3f] %vm225_vm3, %v3600_v5  ;;  %v578_v56 = vstv %s3178_s11  ;;  %s3184_s24 = sld [smem:[#allocation4 + $0x16]] }
  0x41   : > { %240 = vst.msk [vmem:[#allocation2 + $0x10] sm:$0x3f] %vm239_vm4, %v3600_v5  ;;  %v606_v61 = vstv %s3180_s12  ;;  %s3186_s11 = sld [smem:[#allocation4 + $0x18]] }
  0x42   : > { %375 = vst.msk [vmem:[#allocation2 + $0x13] sm:$0x7] %vm335_vm2, %v3600_v5  ;;  %v634_v2 = vstv %s3182_s20  ;;  %s3188_s12 = sld [smem:[#allocation4 + $0x1a]] }
  0x43   : > { %229 = vst.msk [vmem:[#allocation2 + $0x28] sm:$0x3f] %vm225_vm3, %v3600_v5  ;;  %v620_v3 = vstv %s3181_s27  ;;  %s3187_s20 = sld [smem:[#allocation4 + $0x19]]  ;;  %s5565_s27 = smov 125  }
  0x44   : > { %232 = vst.msk [vmem:[#allocation2 + $0x40] sm:$0x3f] %vm225_vm3, %v3600_v5  ;;  %s3996_s6 = sld [smem:[#allocation4 + $0x2]] }
  0x45   : > { %235 = vst.msk [vmem:[#allocation2 + $0x58] sm:$0x3f] %vm225_vm3, %v3600_v5 }
  0x46   : > { %243 = vst.msk [vmem:[#allocation2 + $0x28] sm:$0x3f] %vm239_vm4, %v3600_v5 }
  0x47   : > { %246 = vst.msk [vmem:[#allocation2 + $0x40] sm:$0x3f] %vm239_vm4, %v3600_v5 }
  0x48   : > { %249 = vst.msk [vmem:[#allocation2 + $0x58] sm:$0x3f] %vm239_vm4, %v3600_v5 }
  0x49   : > { %376 = vst.msk [vmem:[#allocation2 + $0x2b] sm:$0x7] %vm335_vm2, %v3600_v5 }
  0x4a   : > { %377 = vst.msk [vmem:[#allocation2 + $0x43] sm:$0x7] %vm335_vm2, %v3600_v5 }
  0x4b   : > { %378 = vst.msk [vmem:[#allocation2 + $0x5b] sm:$0x7] %vm335_vm2, %v3600_v5 }
  0x87   : > { %v276_v41 = vpop.permute.xlu2 %275 }
  0x88   : > { %296 = vst.msk [vmem:[#allocation2 + $0x33] sm:$0xff] %vm291_vm5, %v276_v41 }
  0x8f   : > { %v278_v48 = vpop.permute.xlu2 %277 }
  0x90   : > { %297 = vst.msk [vmem:[#allocation2 + $0x3b] sm:$0xff] %vm291_vm5, %v278_v48 }
  0x9e   : > { %v268_v9 = vpop.permute.xlu0 %267  ;;  %v272_v54 = vpop.permute.xlu1 %271 }
  0x9f   : > { %292 = vst.msk [vmem:[#allocation2 + $0x3] sm:$0xff] %vm291_vm5, %v268_v9  ;;  %v650_v9 = vstv %s3183_s28  ;;  %s3189_s28 = sld [smem:[#allocation4 + $0x1b]] }
  0xa0   : > { %294 = vst.msk [vmem:[#allocation2 + $0x1b] sm:$0xff] %vm291_vm5, %v272_v54 }
  0xa6   : > { %v270_v12 = vpop.permute.xlu0 %269  ;;  %v3792_v13 = vld [vmem:[#allocation2] sm:$0xff]  ;;  %v274_v60 = vpop.permute.xlu1 %273 }
  0xa7   : > { %293 = vst.msk [vmem:[#allocation2 + $0xb] sm:$0xff] %vm291_vm5, %v270_v12  ;;  %v421_v14 = vmul.f32 %v420_v10, %v3792_v13  ;;  %v407_v15 = vmul.f32 %v406_v11, %v3792_v13  ;;  %v447_v21 = vld [vmem:[#allocation2 + $0x1] sm:$0xff]  ;;  %v435_v24 = vmul.f32 %v434_v17, %v3792_v13 }
  0xa8   : > { %v465_v25 = vmul.f32 %v464_v22, %v447_v21  ;;  %v451_v26 = vmul.f32 %v450_v23, %v447_v21  ;;  %v479_v34 = vmul.f32 %v478_v28, %v447_v21  ;;  %v507_v35 = vmul.f32 %v506_v32, %v447_v21  ;;  %v547_v42 = vld [vmem:[#allocation2 + $0x2] sm:$0xff]  ;;  %295 = vst.msk [vmem:[#allocation2 + $0x23] sm:$0xff] %vm291_vm5, %v274_v60 }
  0xa9   : > { %425 = vrot.lane.b32.xlu1 %v421_v14, %s3601_s10  ;;  %411 = vrot.lane.b32.xlu2 %v407_v15, %s3601_s10  ;;  %v493_v36 = vmul.f32 %v492_v33, %v447_v21  ;;  %v521_v45 = vmul.f32 %v520_v37, %v447_v21  ;;  %v551_v46 = vmul.f32 %v550_v43, %v547_v42  ;;  %v647_v15 = vld [vmem:[#allocation2 + $0x3] sm:$0xff] }
  0xaa   : > { %v535_v47 = vmul.f32 %v534_v44, %v447_v21  ;;  %v565_v57 = vmul.f32 %v564_v50, %v547_v42  ;;  %v593_v58 = vmul.f32 %v592_v55, %v547_v42  ;;  %v579_v59 = vmul.f32 %v578_v56, %v547_v42 }
  0xab   : > { %v607_v4 = vmul.f32 %v606_v61, %v547_v42  ;;  %v635_v5 = vmul.f32 %v634_v2, %v547_v42  ;;  %v621_v6 = vmul.f32 %v620_v3, %v547_v42 }
  0xae   : > { %v3799_v16 = vld [vmem:[#allocation2 + $0x8] sm:$0xff]  ;;  %v282_v1 = vpop.permute.xlu1 %281  ;;  %v280_v7 = vpop.permute.xlu0 %279 }
  0xaf   : > { %v408_v18 = vmul.f32 %v406_v11, %v3799_v16  ;;  %v436_v19 = vmul.f32 %v434_v17, %v3799_v16  ;;  %v422_v20 = vmul.f32 %v420_v10, %v3799_v16  ;;  %v448_v27 = vld [vmem:[#allocation2 + $0x9] sm:$0xff]  ;;  %299 = vst.msk [vmem:[#allocation2 + $0x53] sm:$0xff] %vm291_vm5, %v282_v1  ;;  %v678_v17 = vstv %s3185_s7  ;;  %s3866_s7 = sld [smem:[#allocation4 + $0x21]] }
  0xb0   : > { %v452_v29 = vmul.f32 %v450_v23, %v448_v27  ;;  %v480_v30 = vmul.f32 %v478_v28, %v448_v27  ;;  %v466_v31 = vmul.f32 %v464_v22, %v448_v27  ;;  %v494_v38 = vmul.f32 %v492_v33, %v448_v27  ;;  %v548_v49 = vld [vmem:[#allocation2 + $0xa] sm:$0xff]  ;;  %298 = vst.msk [vmem:[#allocation2 + $0x4b] sm:$0xff] %vm291_vm5, %v280_v7 }
  0xb1   : > { %413 = vrot.lane.b32.xlu0 %v408_v18, %s3601_s10  ;;  %441 = vrot.lane.b32.xlu1 %v436_v19, %s3601_s10  ;;  %v522_v39 = vmul.f32 %v520_v37, %v448_v27  ;;  %v508_v40 = vmul.f32 %v506_v32, %v448_v27  ;;  %v536_v51 = vmul.f32 %v534_v44, %v448_v27  ;;  %v648_v8 = vld [vmem:[#allocation2 + $0xb] sm:$0xff]  ;;  %v664_v18 = vstv %s3184_s24  ;;  %s3194_s24 = sld [smem:[#allocation4 + $0x20]] }
  0xb2   : > { %427 = vrot.lane.b32.xlu2 %v422_v20, %s3601_s10  ;;  %v566_v52 = vmul.f32 %v564_v50, %v548_v49  ;;  %v552_v53 = vmul.f32 %v550_v43, %v548_v49  ;;  %v580_v62 = vmul.f32 %v578_v56, %v548_v49  ;;  %v608_v63 = vmul.f32 %v606_v61, %v548_v49  ;;  %v3877_v42 = vld [vmem:[#allocation2 + $0x4] sm:$0xff] }
  0xb3   : > { %v594_v0 = vmul.f32 %v592_v55, %v548_v49  ;;  %v622_v10 = vmul.f32 %v620_v3, %v548_v49  ;;  %v652_v11 = vmul.f32 %v650_v9, %v648_v8  ;;  %v636_v12 = vmul.f32 %v634_v2, %v548_v49 }
  0xb4   : > { %v651_v19 = vmul.f32 %v650_v9, %v647_v15  ;;  %v679_v20 = vmul.f32 %v678_v17, %v647_v15  ;;  %v665_v21 = vmul.f32 %v664_v18, %v647_v15  ;;  %v692_v23 = vstv %s3186_s11  ;;  %s3196_s11 = sld [smem:[#allocation4 + $0x22]] }
  0xb5   : > { %v720_v28 = vstv %s3188_s12  ;;  %v788_v43 = vstv %s3866_s7  ;;  %s3198_s12 = sld [smem:[#allocation4 + $0x24]] }
  0xb6   : > { %s3201_s7 = sld [smem:[#allocation4 + $0x27]] }
  0xb7   : > { %v774_v44 = vstv %s3194_s24  ;;  %s3200_s24 = sld [smem:[#allocation4 + $0x26]] }
  0xb9   : > { %439 = vrot.lane.b32.xlu0 %v435_v24, %s3601_s10  ;;  %469 = vrot.lane.b32.xlu1 %v465_v25, %s3602_s0  ;;  %v666_v24 = vmul.f32 %v664_v18, %v648_v8  ;;  %v694_v25 = vmul.f32 %v692_v23, %v648_v8 }
  0xba   : > { %455 = vrot.lane.b32.xlu2 %v451_v26, %s3599_s22  ;;  %v680_v26 = vmul.f32 %v678_v17, %v648_v8 }
  0xbb   : > { %v832_v60 = vstv %s3198_s12  ;;  %s3204_s12 = sld [smem:[#allocation4 + $0x2a]] }
  0xc1   : > { %457 = vrot.lane.b32.xlu0 %v452_v29, %s3599_s22  ;;  %485 = vrot.lane.b32.xlu1 %v480_v30, %s3602_s0  ;;  %v706_v29 = vstv %s3187_s20  ;;  %v693_v30 = vmul.f32 %v692_v23, %v647_v15  ;;  %s3197_s20 = sld [smem:[#allocation4 + $0x23]] }
  0xc2   : > { %471 = vrot.lane.b32.xlu2 %v466_v31, %s3602_s0  ;;  %v721_v31 = vmul.f32 %v720_v28, %v647_v15  ;;  %v707_v32 = vmul.f32 %v706_v29, %v647_v15 }
  0xc7   : > { %v818_v61 = vstv %s3197_s20  ;;  %s3203_s20 = sld [smem:[#allocation4 + $0x29]] }
  0xc9   : > { %483 = vrot.lane.b32.xlu0 %v479_v34, %s3602_s0  ;;  %511 = vrot.lane.b32.xlu1 %v507_v35, %s3602_s0  ;;  %v734_v35 = vstv %s3189_s28  ;;  %s3199_s28 = sld [smem:[#allocation4 + $0x25]] }
  0xca   : > { %497 = vrot.lane.b32.xlu2 %v493_v36, %s3602_s0  ;;  %v708_v36 = vmul.f32 %v706_v29, %v648_v8  ;;  %v736_v37 = vmul.f32 %v734_v35, %v648_v8 }
  0xd1   : > { %499 = vrot.lane.b32.xlu0 %v494_v38, %s3602_s0  ;;  %527 = vrot.lane.b32.xlu1 %v522_v39, %s3603_s8  ;;  %v722_v38 = vmul.f32 %v720_v28, %v648_v8 }
  0xd2   : > { %513 = vrot.lane.b32.xlu2 %v508_v40, %s3602_s0 }
  0xd9   : > { %525 = vrot.lane.b32.xlu0 %v521_v45, %s3603_s8  ;;  %555 = vrot.lane.b32.xlu1 %v551_v46, %s3604_s30  ;;  %v735_v45 = vmul.f32 %v734_v35, %v647_v15  ;;  %v789_v46 = vmul.f32 %v788_v43, %v3877_v42  ;;  %v860_v15 = vstv %s3200_s24  ;;  %v918_v35 = vstv %s3204_s12  ;;  %s3206_s24 = sld [smem:[#allocation4 + $0x2c]] }
  0xda   : > { %539 = vrot.lane.b32.xlu2 %v535_v47, %s3603_s8  ;;  %v775_v47 = vmul.f32 %v774_v44, %v3877_v42  ;;  %s3972_s12 = sld [smem:[#allocation4 + $0x1]] }
  0xe1   : > { %541 = vrot.lane.b32.xlu0 %v536_v51, %s3603_s8  ;;  %571 = vrot.lane.b32.xlu1 %v566_v52, %s3604_s30  ;;  %v3891_v51 = vld [vmem:[#allocation2 + $0xc] sm:$0xff]  ;;  %v802_v52 = vstv %s3196_s11  ;;  %s3202_s11 = sld [smem:[#allocation4 + $0x28]] }
  0xe2   : > { %557 = vrot.lane.b32.xlu2 %v552_v53, %s3604_s30  ;;  %v776_v53 = vmul.f32 %v774_v44, %v3891_v51  ;;  %v804_v54 = vmul.f32 %v802_v52, %v3891_v51  ;;  %v790_v55 = vmul.f32 %v788_v43, %v3891_v51 }
  0xe9   : > { %569 = vrot.lane.b32.xlu0 %v565_v57, %s3604_s30  ;;  %597 = vrot.lane.b32.xlu1 %v593_v58, %s3605_s13 }
  0xea   : > { %583 = vrot.lane.b32.xlu2 %v579_v59, %s3605_s13  ;;  %v815_v59 = vld [vmem:[#allocation2 + $0x5] sm:$0xff] }
  0xf1   : > { %585 = vrot.lane.b32.xlu0 %v580_v62, %s3605_s13  ;;  %613 = vrot.lane.b32.xlu1 %v608_v63, %s3605_s13  ;;  %v803_v62 = vmul.f32 %v802_v52, %v3877_v42  ;;  %v833_v63 = vmul.f32 %v832_v60, %v815_v59 }
  0xf2   : > { %599 = vrot.lane.b32.xlu2 %v594_v0, %s3605_s13  ;;  %v819_v0 = vmul.f32 %v818_v61, %v815_v59 }
  0xf9   : > { %611 = vrot.lane.b32.xlu0 %v607_v4, %s3605_s13  ;;  %639 = vrot.lane.b32.xlu1 %v635_v5, %s3606_s29  ;;  %v816_v4 = vld [vmem:[#allocation2 + $0xd] sm:$0xff]  ;;  %v846_v5 = vstv %s3199_s28  ;;  %s3205_s28 = sld [smem:[#allocation4 + $0x2b]] }
  0xfa   : > { %625 = vrot.lane.b32.xlu2 %v621_v6, %s3605_s13  ;;  %v820_v6 = vmul.f32 %v818_v61, %v816_v4  ;;  %v848_v7 = vmul.f32 %v846_v5, %v816_v4  ;;  %v834_v8 = vmul.f32 %v832_v60, %v816_v4  ;;  %v847_v17 = vmul.f32 %v846_v5, %v815_v59 }
  0xff   : > { %v932_v52 = vstv %s3205_s28  ;;  %s3986_s28 = sld [smem:[#allocation4 + $0x30]] }
 0x101   : > { %627 = vrot.lane.b32.xlu0 %v622_v10, %s3605_s13  ;;  %657 = vrot.lane.b32.xlu1 %v652_v11, %s5567_s9 }
 0x102   : > { %641 = vrot.lane.b32.xlu2 %v636_v12, %s3606_s29  ;;  %v874_v12 = vstv %s3201_s7  ;;  %s3956_s7 = sld [smem:[#allocation4 + $0x2d]] }
 0x103   : > { %v3847_v14 = vpop.permute.xlu2 %411  ;;  %v875_v18 = vmul.f32 %v874_v12, %v815_v59  ;;  %v876_v28 = vmul.f32 %v874_v12, %v816_v4 }
 0x109   : > { %655 = vrot.lane.b32.xlu0 %v651_v19, %s5567_s9  ;;  %683 = vrot.lane.b32.xlu1 %v679_v20, %s5567_s9  ;;  %v861_v19 = vmul.f32 %v860_v15, %v815_v59 }
 0x10a   : > { %669 = vrot.lane.b32.xlu2 %v665_v21, %s5567_s9 }
 0x10c   : > { %v3852_v22 = vpop.permute.xlu2 %427 }
 0x111   : > { %671 = vrot.lane.b32.xlu0 %v666_v24, %s5567_s9  ;;  %699 = vrot.lane.b32.xlu1 %v694_v25, %s5565_s27  ;;  %v888_v24 = vstv %s3202_s11  ;;  %v862_v25 = vmul.f32 %v860_v15, %v816_v4  ;;  %s3970_s11 = sld [smem:[#allocation4 + $0x2e]]  ;;  %v388_v15 = vstv %s3972_s12 }
 0x112   : > { %685 = vrot.lane.b32.xlu2 %v680_v26, %s5567_s9  ;;  %v890_v26 = vmul.f32 %v888_v24, %v816_v4  ;;  %s4032_s9 = sld [smem:[#allocation4 + $0x3]] }
 0x113   : > { %s4126_s12 = sld [smem:[#allocation4 + $0x3a]] }
 0x114   : > { %v3857_v27 = vpop.permute.xlu2 %455 }
 0x117   : > { %v974_v12 = vstv %s3970_s11  ;;  %s4013_s11 = sld [smem:[#allocation4 + $0x1d]] }
 0x119   : > { %697 = vrot.lane.b32.xlu0 %v693_v30, %s5565_s27  ;;  %725 = vrot.lane.b32.xlu1 %v721_v31, %s5565_s27 }
 0x11a   : > { %711 = vrot.lane.b32.xlu2 %v707_v32, %s5565_s27  ;;  %v3942_v32 = vld [vmem:[#allocation2 + $0x6] sm:$0xff] }
 0x11b   : > { %v3862_v33 = vpop.permute.xlu1 %425 }
 0x11c   : > { %v3864_v34 = vpop.permute.xlu2 %471 }
 0x121   : > { %713 = vrot.lane.b32.xlu0 %v708_v36, %s5565_s27  ;;  %741 = vrot.lane.b32.xlu1 %v736_v37, %s5565_s27  ;;  %v902_v36 = vstv %s3203_s20  ;;  %v889_v37 = vmul.f32 %v888_v24, %v815_v59  ;;  %s3979_s20 = sld [smem:[#allocation4]] }
 0x122   : > { %727 = vrot.lane.b32.xlu2 %v722_v38, %s5565_s27  ;;  %v919_v38 = vmul.f32 %v918_v35, %v3942_v32  ;;  %v903_v43 = vmul.f32 %v902_v36, %v815_v59 }
 0x123   : > { %v3871_v39 = vpop.permute.xlu0 %413  ;;  %v3873_v40 = vpop.permute.xlu1 %441 }
 0x124   : > { %v3875_v41 = vpop.permute.xlu2 %497 }
 0x129   : > { %739 = vrot.lane.b32.xlu0 %v735_v45, %s5565_s27  ;;  %793 = vrot.lane.b32.xlu1 %v789_v46, %s3601_s10  ;;  %s4018_s27 = sld [smem:[#allocation4 + $0x35]] }
 0x12a   : > { %779 = vrot.lane.b32.xlu2 %v775_v47, %s3601_s10  ;;  %v3954_v47 = vld [vmem:[#allocation2 + $0xe] sm:$0xff] }
 0x12b   : > { %v3885_v48 = vpop.permute.xlu0 %439  ;;  %v3887_v49 = vpop.permute.xlu1 %469 }
 0x12c   : > { %v3889_v50 = vpop.permute.xlu2 %513 }
 0x131   : > { %781 = vrot.lane.b32.xlu0 %v776_v53, %s3601_s10  ;;  %809 = vrot.lane.b32.xlu1 %v804_v54, %s3601_s10  ;;  %v904_v53 = vmul.f32 %v902_v36, %v816_v4  ;;  %v934_v54 = vmul.f32 %v932_v52, %v3954_v47 }
 0x132   : > { %795 = vrot.lane.b32.xlu2 %v790_v55, %s3601_s10  ;;  %v920_v55 = vmul.f32 %v918_v35, %v3954_v47 }
 0x133   : > { %v3899_v56 = vpop.permute.xlu0 %457  ;;  %v3901_v57 = vpop.permute.xlu1 %485 }
 0x134   : > { %v3903_v58 = vpop.permute.xlu2 %539 }
 0x139   : > { %807 = vrot.lane.b32.xlu0 %v803_v62, %s3601_s10  ;;  %837 = vrot.lane.b32.xlu1 %v833_v63, %s3602_s0  ;;  %v960_v62 = vstv %s3956_s7  ;;  %v946_v63 = vstv %s3206_s24  ;;  %s3991_s7 = sld [smem:[#allocation4 + $0xa7]] }
 0x13a   : > { %823 = vrot.lane.b32.xlu2 %v819_v0, %s3599_s22  ;;  %v933_v0 = vmul.f32 %v932_v52, %v3942_v32  ;;  %v961_v4 = vmul.f32 %v960_v62, %v3942_v32  ;;  %v947_v5 = vmul.f32 %v946_v63, %v3942_v32  ;;  %s3994_s24 = sld [smem:[#allocation4 + $0x2f]]  ;;  %v962_v24 = vmul.f32 %v960_v62, %v3954_v47  ;;  %v2459_v52 = vld [vmem:[#allocation2 + $0x52] sm:$0xff] }
 0x13b   : > { %v3909_v1 = vpop.permute.xlu0 %483  ;;  %v3911_v2 = vpop.permute.xlu1 %511  ;;  %v975_v62 = vmul.f32 %v974_v12, %v3942_v32 }
 0x13c   : > { %v3913_v3 = vpop.permute.xlu2 %557 }
 0x141   : > { %825 = vrot.lane.b32.xlu0 %v820_v6, %s3599_s22  ;;  %853 = vrot.lane.b32.xlu1 %v848_v7, %s3602_s0 }
 0x142   : > { %839 = vrot.lane.b32.xlu2 %v834_v8, %s3602_s0 }
 0x143   : > { %v3918_v9 = vpop.permute.xlu0 %499  ;;  %v3920_v10 = vpop.permute.xlu1 %527 }
 0x144   : > { %v3922_v11 = vpop.permute.xlu2 %583 }
 0x149   : > { %851 = vrot.lane.b32.xlu0 %v847_v17, %s3602_s0  ;;  %879 = vrot.lane.b32.xlu1 %v875_v18, %s3602_s0  ;;  %v948_v17 = vmul.f32 %v946_v63, %v3954_v47  ;;  %v976_v18 = vmul.f32 %v974_v12, %v3954_v47 }
 0x14a   : > { %865 = vrot.lane.b32.xlu2 %v861_v19, %s3602_s0  ;;  %v389_v19 = vmul.f32 %v388_v15, %v3792_v13 }
 0x14b   : > { %v3927_v20 = vpop.permute.xlu0 %525  ;;  %v3929_v21 = vpop.permute.xlu1 %555 }
 0x14c   : > { %v3931_v23 = vpop.permute.xlu2 %599 }
 0x151   : > { %867 = vrot.lane.b32.xlu0 %v862_v25, %s3602_s0  ;;  %895 = vrot.lane.b32.xlu1 %v890_v26, %s3603_s8  ;;  %v431_v25 = vadd.f32 %v3862_v33, %v389_v19  ;;  %v382_v26 = vstv %s3979_s20  ;;  %v2545_v33 = vstv %s3991_s7  ;;  %s4026_s20 = sld [smem:[#allocation4 + $0x1c]] }
 0x152   : > { %881 = vrot.lane.b32.xlu2 %v876_v28, %s3602_s0  ;;  %v384_v36 = vmul.f32 %v382_v26, %v3799_v16  ;;  %v756_v19 = vstv %s4013_s11  ;;  %s3223_s11 = sld [smem:[#allocation4 + $0x3d]] }
 0x153   : > { %v3936_v29 = vpop.permute.xlu0 %541  ;;  %v3938_v30 = vpop.permute.xlu1 %571  ;;  %s5332_s7 = sld [smem:[#allocation4 + $0xac]] }
 0x154   : > { %v3940_v31 = vpop.permute.xlu2 %625 }
 0x159   : > { %893 = vrot.lane.b32.xlu0 %v889_v37, %s3603_s8  ;;  %923 = vrot.lane.b32.xlu1 %v919_v38, %s3604_s30  ;;  %v489_v37 = vadd.f32 %v3909_v1, %v431_v25 }
 0x15a   : > { %907 = vrot.lane.b32.xlu2 %v903_v43, %s3603_s8  ;;  %v1002_v43 = vstv %s3986_s28  ;;  %s4048_s28 = sld [smem:[#allocation4 + $0x37]] }
 0x15b   : > { %v3948_v44 = vpop.permute.xlu0 %569  ;;  %v3950_v45 = vpop.permute.xlu1 %597  ;;  %v1003_v63 = vmul.f32 %v1002_v43, %v3942_v32 }
 0x15c   : > { %v3952_v46 = vpop.permute.xlu2 %641 }
 0x161   : > { %909 = vrot.lane.b32.xlu0 %v904_v53, %s3603_s8  ;;  %939 = vrot.lane.b32.xlu1 %v934_v54, %s3604_s30  ;;  %v988_v53 = vstv %s3994_s24  ;;  %v418_v54 = vadd.f32 %v3871_v39, %v384_v36  ;;  %v1043_v36 = vstv %s4018_s27  ;;  %s4057_s24 = sld [smem:[#allocation4 + $0x36]] }
 0x162   : > { %925 = vrot.lane.b32.xlu2 %v920_v55, %s3604_s30  ;;  %v394_v55 = vstv %s3996_s6  ;;  %s4039_s6 = sld [smem:[#allocation4 + $0x1e]] }
 0x163   : > { %v3963_v59 = vpop.permute.xlu0 %585  ;;  %v3965_v60 = vpop.permute.xlu1 %613  ;;  %v396_v1 = vmul.f32 %v394_v55, %v3799_v16  ;;  %v476_v12 = vadd.f32 %v3864_v34, %v418_v54  ;;  %s4106_s27 = sld [smem:[#allocation4 + $0x1f]] }
 0x164   : > { %v3967_v61 = vpop.permute.xlu2 %669 }
 0x165   : > { %v446_v39 = vadd.f32 %v3873_v40, %v396_v1  ;;  %v532_v40 = vadd.f32 %v3920_v10, %v476_v12  ;;  %v990_v10 = vmul.f32 %v988_v53, %v3954_v47  ;;  %v1071_v12 = vstv %s4048_s28  ;;  %s3222_s28 = sld [smem:[#allocation4 + $0x3c]] }
 0x167   : > { %v590_v54 = vadd.f32 %v3963_v59, %v532_v40  ;;  %v1057_v40 = vstv %s4057_s24  ;;  %s3224_s24 = sld [smem:[#allocation4 + $0x3e]] }
 0x168   : > { %v762_v59 = vstv %s4039_s6  ;;  %s4156_s6 = sld [smem:[#allocation4 + $0x3b]] }
 0x169   : > { %937 = vrot.lane.b32.xlu0 %v933_v0, %s3604_s30  ;;  %965 = vrot.lane.b32.xlu1 %v961_v4, %s3605_s13  ;;  %v4030_v0 = vmul.f32 %v2545_v33, %v2459_v52  ;;  %v545_v4 = vadd.f32 %v3903_v58, %v489_v37  ;;  %v383_v37 = vmul.f32 %v382_v26, %v3792_v13 }
 0x16a   : > { %951 = vrot.lane.b32.xlu2 %v947_v5, %s3605_s13  ;;  %v989_v5 = vmul.f32 %v988_v53, %v3942_v32 }
 0x16b   : > { %v3982_v6 = vpop.permute.xlu0 %611  ;;  %v3984_v7 = vpop.permute.xlu1 %639  ;;  %v417_v1 = vadd.f32 %v3847_v14, %v383_v37 }
 0x16c   : > { %v3988_v8 = vpop.permute.xlu2 %685 }
 0x171   : > { %953 = vrot.lane.b32.xlu0 %v948_v17, %s3605_s13  ;;  %981 = vrot.lane.b32.xlu1 %v976_v18, %s3605_s13  ;;  %v603_v17 = vadd.f32 %v3950_v45, %v545_v4  ;;  %v395_v18 = vmul.f32 %v394_v55, %v3792_v13  ;;  %v4053_v45 = vld [vmem:[#allocation2 + $0x20] sm:$0xff]  ;;  %v1004_v4 = vmul.f32 %v1002_v43, %v3954_v47 }
 0x172   : > { %967 = vrot.lane.b32.xlu2 %v962_v24, %s3605_s13  ;;  %v504_v24 = vadd.f32 %v3918_v9, %v446_v39  ;;  %v757_v9 = vmul.f32 %v756_v19, %v3877_v42 }
 0x173   : > { %v4009_v28 = vpop.permute.xlu0 %627  ;;  %v4011_v35 = vpop.permute.xlu1 %657  ;;  %v445_v52 = vadd.f32 %v3885_v48, %v395_v18  ;;  %v400_v48 = vstv %s4032_s9  ;;  %s4083_s9 = sld [smem:[#allocation4 + $0x38]] }
 0x174   : > { %v712_v38 = vpop.permute.xlu2 %711  ;;  %v562_v26 = vadd.f32 %v3913_v3, %v504_v24  ;;  %v646_v3 = vadd.f32 %v3952_v46, %v590_v54  ;;  %v402_v47 = vmul.f32 %v400_v48, %v3799_v16  ;;  %v4090_v24 = vld [vmem:[#allocation2 + $0x18] sm:$0xff]  ;;  %v390_v46 = vmul.f32 %v388_v15, %v3799_v16 }
 0x175   : > { %v503_v53 = vadd.f32 %v3875_v41, %v445_v52  ;;  %v1058_v16 = vmul.f32 %v1057_v40, %v4090_v24 }
 0x176   : > { %v618_v14 = vadd.f32 %v3965_v60, %v562_v26  ;;  %v462_v37 = vadd.f32 %v3899_v56, %v402_v47  ;;  %v763_v26 = vmul.f32 %v762_v59, %v3877_v42 }
 0x177   : > { %v561_v41 = vadd.f32 %v3929_v21, %v503_v53  ;;  %v1044_v21 = vmul.f32 %v1043_v36, %v4090_v24 }
 0x179   : > { %979 = vrot.lane.b32.xlu0 %v975_v62, %s3605_s13  ;;  %1007 = vrot.lane.b32.xlu1 %v1003_v63, %s3606_s29  ;;  %v1045_v62 = vmul.f32 %v1043_v36, %v4053_v45  ;;  %v750_v63 = vstv %s4026_s20  ;;  %v617_v52 = vadd.f32 %v3982_v6, %v561_v41  ;;  %v518_v6 = vadd.f32 %v3889_v50, %v462_v37  ;;  %s4128_s20 = sld [smem:[#allocation4 + $0x39]] }
 0x17a   : > { %993 = vrot.lane.b32.xlu2 %v989_v5, %s3605_s13 }
 0x17b   : > { %v656_v58 = vpop.permute.xlu0 %655  ;;  %v4046_v32 = vpop.permute.xlu1 %683 }
 0x17c   : > { %v661_v25 = vadd.f32 %v656_v58, %v603_v17  ;;  %v728_v34 = vpop.permute.xlu2 %727  ;;  %v752_v17 = vmul.f32 %v750_v63, %v3891_v51 }
 0x17e   : > { %v717_v55 = vadd.f32 %v712_v38, %v661_v25  ;;  %v475_v38 = vadd.f32 %v3887_v49, %v417_v1  ;;  %v764_v25 = vmul.f32 %v762_v59, %v3891_v51  ;;  %v1087_v1 = vstv %s4083_s9  ;;  %s3226_s9 = sld [smem:[#allocation4 + $0x40]] }
 0x180   : > { %v4070_v5 = vadd.f32 %v757_v9, %v717_v55  ;;  %v531_v49 = vadd.f32 %v3927_v20, %v475_v38  ;;  %v1072_v55 = vmul.f32 %v1071_v12, %v4090_v24  ;;  %v432_v9 = vadd.f32 %v3852_v22, %v390_v46 }
 0x181   : > { %995 = vrot.lane.b32.xlu0 %v990_v10, %s3605_s13  ;;  %1050 = vrot.lane.b32.xlu1 %v1045_v62, %s3601_s10  ;;  %v675_v22 = vadd.f32 %v3967_v61, %v617_v52  ;;  %v576_v38 = vadd.f32 %v3938_v30, %v518_v6  ;;  %v401_v61 = vmul.f32 %v400_v48, %v3792_v13  ;;  %v1115_v46 = vstv %s4126_s12  ;;  %s3227_s12 = sld [smem:[#allocation4 + $0x41]] }
 0x182   : > { %1009 = vrot.lane.b32.xlu2 %v1004_v4, %s3606_s29  ;;  %v589_v10 = vadd.f32 %v3922_v11, %v531_v49  ;;  %v490_v56 = vadd.f32 %v3901_v57, %v432_v9  ;;  %v751_v11 = vmul.f32 %v750_v63, %v3877_v42  ;;  %v1059_v30 = vmul.f32 %v1057_v40, %v4053_v45 }
 0x183   : > { %v672_v43 = vpop.permute.xlu0 %671  ;;  %v700_v39 = vpop.permute.xlu1 %699  ;;  %v632_v63 = vadd.f32 %v4009_v28, %v576_v38 }
 0x184   : > { %v676_v18 = vadd.f32 %v672_v43, %v618_v14  ;;  %v704_v60 = vadd.f32 %v700_v39, %v646_v3  ;;  %v4088_v58 = vpop.permute.xlu2 %779  ;;  %v546_v4 = vadd.f32 %v3936_v29, %v490_v56  ;;  %v461_v3 = vadd.f32 %v3857_v27, %v401_v61 }
 0x185   : > { %v1073_v43 = vmul.f32 %v1071_v12, %v4053_v45  ;;  %v768_v39 = vstv %s4106_s27  ;;  %v690_v48 = vadd.f32 %v3988_v8, %v632_v63  ;;  %v758_v27 = vmul.f32 %v756_v19, %v3891_v51  ;;  %s3225_s27 = sld [smem:[#allocation4 + $0x3f]] }
 0x186   : > { %v732_v54 = vadd.f32 %v728_v34, %v676_v18  ;;  %v4099_v20 = vadd.f32 %v752_v17, %v704_v60  ;;  %v645_v34 = vadd.f32 %v3984_v7, %v589_v10  ;;  %v4124_v7 = vld [vmem:[#allocation2 + $0x21] sm:$0xff]  ;;  %v604_v47 = vadd.f32 %v3931_v23, %v546_v4 }
 0x187   : > { %v1089_v14 = vmul.f32 %v1087_v1, %v4124_v7  ;;  %v517_v13 = vadd.f32 %v3911_v2, %v461_v3  ;;  %v770_v17 = vmul.f32 %v768_v39, %v3891_v51  ;;  %v1084_v2 = vld [vmem:[#allocation2 + $0x19] sm:$0xff]  ;;  %v1129_v10 = vstv %s4156_s6  ;;  %s3228_s6 = sld [smem:[#allocation4 + $0x42]] }
 0x188   : > { %v4108_v15 = vadd.f32 %v764_v25, %v732_v54  ;;  %v662_v28 = vadd.f32 %v4011_v35, %v604_v47  ;;  %v1101_v35 = vstv %s4128_s20  ;;  %v1088_v19 = vmul.f32 %v1087_v1, %v1084_v2  ;;  %v4207_v47 = vld [vmem:[#allocation2 + $0x1a] sm:$0xff]  ;;  %s3229_s20 = sld [smem:[#allocation4 + $0x43]] }
 0x189   : > { %1048 = vrot.lane.b32.xlu0 %v1044_v21, %s3601_s10  ;;  %1076 = vrot.lane.b32.xlu1 %v1072_v55, %s3601_s10  ;;  %v575_v49 = vadd.f32 %v3948_v44, %v517_v13  ;;  %v1116_v25 = vmul.f32 %v1115_v46, %v1084_v2  ;;  %v1102_v37 = vmul.f32 %v1101_v35, %v1084_v2 }
 0x18a   : > { %1062 = vrot.lane.b32.xlu2 %v1058_v16, %s3601_s10  ;;  %v769_v21 = vmul.f32 %v768_v39, %v3877_v42  ;;  %v1103_v16 = vmul.f32 %v1101_v35, %v4124_v7  ;;  %v1131_v56 = vmul.f32 %v1129_v10, %v4124_v7 }
 0x18b   : > { %v698_v36 = vpop.permute.xlu0 %697  ;;  %v726_v62 = vpop.permute.xlu1 %725  ;;  %v631_v51 = vadd.f32 %v3940_v31, %v575_v49  ;;  %v1187_v39 = vstv %s3225_s27  ;;  %s4260_s27 = sld [smem:[#allocation4 + $0x34]] }
 0x18c   : > { %v703_v57 = vadd.f32 %v698_v36, %v645_v34  ;;  %v731_v50 = vadd.f32 %v726_v62, %v675_v22  ;;  %v4122_v53 = vpop.permute.xlu2 %795  ;;  %v1157_v22 = vstv %s3223_s11  ;;  %v1130_v36 = vmul.f32 %v1129_v10, %v1084_v2  ;;  %s4230_s11 = sld [smem:[#allocation4 + $0x44]] }
 0x18d   : > { %v689_v44 = vadd.f32 %v4046_v32, %v631_v51  ;;  %v1117_v32 = vmul.f32 %v1115_v46, %v4124_v7  ;;  %v1158_v62 = vmul.f32 %v1157_v22, %v1084_v2  ;;  %v1159_v63 = vmul.f32 %v1157_v22, %v4124_v7 }
 0x18e   : > { %v4132_v59 = vadd.f32 %v751_v11, %v703_v57  ;;  %v4134_v29 = vadd.f32 %v763_v26, %v731_v50  ;;  %v1143_v11 = vstv %s3222_s28  ;;  %v1171_v57 = vstv %s3224_s24  ;;  %s4242_s28 = sld [smem:[#allocation4 + $0x32]] }
 0x18f   : > { %v1144_v1 = vmul.f32 %v1143_v11, %v1084_v2  ;;  %v1145_v50 = vmul.f32 %v1143_v11, %v4124_v7  ;;  %v1173_v61 = vmul.f32 %v1171_v57, %v4124_v7  ;;  %v1172_v13 = vmul.f32 %v1171_v57, %v1084_v2  ;;  %s4245_s24 = sld [smem:[#allocation4 + $0x46]] }
 0x190   : > { %v1188_v7 = vmul.f32 %v1187_v39, %v4207_v47 }
 0x191   : > { %1064 = vrot.lane.b32.xlu0 %v1059_v30, %s3601_s10  ;;  %1094 = vrot.lane.b32.xlu1 %v1089_v14, %s3599_s22 }
 0x192   : > { %1078 = vrot.lane.b32.xlu2 %v1073_v43, %s3601_s10  ;;  %v1201_v43 = vstv %s3226_s9  ;;  %v1257_v10 = vstv %s4230_s11  ;;  %s4247_s9 = sld [smem:[#allocation4 + $0x45]] }
 0x193   : > { %v714_v23 = vpop.permute.xlu0 %713  ;;  %v742_v12 = vpop.permute.xlu1 %741  ;;  %s4284_s11 = sld [smem:[#allocation4 + $0x49]] }
 0x194   : > { %v718_v41 = vadd.f32 %v714_v23, %v662_v28  ;;  %v746_v18 = vadd.f32 %v742_v12, %v690_v48  ;;  %v4153_v60 = vpop.permute.xlu2 %823  ;;  %v1202_v28 = vmul.f32 %v1201_v43, %v4207_v47  ;;  %v4216_v12 = vld [vmem:[#allocation2 + $0x22] sm:$0xff] }
 0x195   : > { %v1189_v49 = vmul.f32 %v1187_v39, %v4216_v12 }
 0x196   : > { %v4159_v8 = vadd.f32 %v758_v27, %v718_v41  ;;  %v4161_v40 = vadd.f32 %v770_v17, %v746_v18  ;;  %v1215_v17 = vstv %s3227_s12  ;;  %v1203_v18 = vmul.f32 %v1201_v43, %v4216_v12  ;;  %s4268_s12 = sld [smem:[#allocation4 + $0x47]] }
 0x197   : > { %v1217_v41 = vmul.f32 %v1215_v17, %v4216_v12  ;;  %v1216_v51 = vmul.f32 %v1215_v17, %v4207_v47 }
 0x199   : > { %1092 = vrot.lane.b32.xlu0 %v1088_v19, %s3599_s22  ;;  %1120 = vrot.lane.b32.xlu1 %v1116_v25, %s3602_s0  ;;  %v1243_v19 = vstv %s3229_s20  ;;  %v1229_v25 = vstv %s3228_s6  ;;  %s4276_s20 = sld [smem:[#allocation4 + $0x33]]  ;;  %s5576_s6 = smov 1  }
 0x19a   : > { %1106 = vrot.lane.b32.xlu2 %v1102_v37, %s3602_s0  ;;  %v1244_v37 = vmul.f32 %v1243_v19, %v4207_v47  ;;  %v1245_v22 = vmul.f32 %v1243_v19, %v4216_v12 }
 0x19b   : > { %v740_v52 = vpop.permute.xlu0 %739  ;;  %v4168_v54 = vpop.permute.xlu1 %793 }
 0x19c   : > { %v745_v55 = vadd.f32 %v740_v52, %v689_v44  ;;  %v4171_v9 = vpop.permute.xlu2 %839  ;;  %v1230_v44 = vmul.f32 %v1229_v25, %v4207_v47  ;;  %v799_v57 = vadd.f32 %v4168_v54, %v4070_v5 }
 0x19e   : > { %v4174_v31 = vadd.f32 %v769_v21, %v745_v55 }
 0x1a0   : > { %v829_v5 = vadd.f32 %v4153_v60, %v4174_v31 }
 0x1a1   : > { %1108 = vrot.lane.b32.xlu0 %v1103_v16, %s3602_s0  ;;  %1136 = vrot.lane.b32.xlu1 %v1131_v56, %s3602_s0  ;;  %v1231_v16 = vmul.f32 %v1229_v25, %v4216_v12  ;;  %v1259_v56 = vmul.f32 %v1257_v10, %v4216_v12  ;;  %v4294_v25 = vld [vmem:[#allocation2 + $0x23] sm:$0xff] }
 0x1a2   : > { %1122 = vrot.lane.b32.xlu2 %v1117_v32, %s3602_s0  ;;  %v800_v32 = vadd.f32 %v4122_v53, %v4159_v8  ;;  %v4264_v8 = vld [vmem:[#allocation2 + $0x1b] sm:$0xff] }
 0x1a3   : > { %v4182_v42 = vpop.permute.xlu0 %781  ;;  %v4184_v6 = vpop.permute.xlu1 %809 }
 0x1a4   : > { %v4186_v34 = vpop.permute.xlu2 %865 }
 0x1a9   : > { %1134 = vrot.lane.b32.xlu0 %v1130_v36, %s3602_s0  ;;  %1162 = vrot.lane.b32.xlu1 %v1158_v62, %s3603_s8 }
 0x1aa   : > { %1148 = vrot.lane.b32.xlu2 %v1144_v1, %s3602_s0  ;;  %v1025_v1 = vstv %s4242_s28  ;;  %s4287_s28 = sld [smem:[#allocation4 + $0x31]] }
 0x1ab   : > { %v4191_v26 = vpop.permute.xlu0 %807  ;;  %v4193_v4 = vpop.permute.xlu1 %837  ;;  %v1027_v39 = vmul.f32 %v1025_v1, %v4053_v45  ;;  %v1026_v31 = vmul.f32 %v1025_v1, %v4090_v24 }
 0x1ac   : > { %v4195_v38 = vpop.permute.xlu2 %881 }
 0x1b0   : > { %v1019_v1 = vstv %s4287_s28  ;;  %s3243_s28 = sld [smem:[#allocation4 + $0x51]] }
 0x1b1   : > { %1150 = vrot.lane.b32.xlu0 %v1145_v50, %s3602_s0  ;;  %1178 = vrot.lane.b32.xlu1 %v1173_v61, %s3603_s8  ;;  %v1287_v61 = vstv %s4245_s24  ;;  %s4297_s24 = sld [smem:[#allocation4 + $0x48]] }
 0x1b2   : > { %1164 = vrot.lane.b32.xlu2 %v1159_v63, %s3603_s8  ;;  %v1271_v63 = vstv %s4247_s9  ;;  %s4331_s9 = sld [smem:[#allocation4 + $0x4a]] }
 0x1b3   : > { %v4203_v30 = vpop.permute.xlu0 %825  ;;  %v854_v14 = vpop.permute.xlu1 %853  ;;  %v1272_v54 = vmul.f32 %v1271_v63, %v4207_v47 }
 0x1b4   : > { %v4205_v3 = vpop.permute.xlu2 %907  ;;  %v858_v11 = vadd.f32 %v854_v14, %v800_v32 }
 0x1b9   : > { %1176 = vrot.lane.b32.xlu0 %v1172_v13, %s3603_s8  ;;  %1206 = vrot.lane.b32.xlu1 %v1202_v28, %s3604_s30  ;;  %v1258_v13 = vmul.f32 %v1257_v10, %v4207_v47  ;;  %v1288_v28 = vmul.f32 %v1287_v61, %v4264_v8  ;;  %v1037_v47 = vstv %s4260_s27  ;;  %v1289_v10 = vmul.f32 %v1287_v61, %v4294_v25  ;;  %s4393_s27 = sld [smem:[#allocation4 + $0x53]] }
 0x1ba   : > { %1192 = vrot.lane.b32.xlu2 %v1188_v7, %s3604_s30 }
 0x1bb   : > { %v852_v48 = vpop.permute.xlu0 %851  ;;  %v880_v27 = vpop.permute.xlu1 %879 }
 0x1bc   : > { %v4214_v23 = vpop.permute.xlu2 %925  ;;  %v857_v14 = vadd.f32 %v852_v48, %v799_v57  ;;  %v885_v48 = vadd.f32 %v880_v27, %v829_v5  ;;  %v814_v27 = vadd.f32 %v4184_v6, %v4108_v15  ;;  %v813_v57 = vadd.f32 %v4191_v26, %v4134_v29 }
 0x1be   : > { %v913_v17 = vadd.f32 %v4205_v3, %v857_v14  ;;  %v1021_v14 = vmul.f32 %v1019_v1, %v4053_v45  ;;  %v871_v26 = vadd.f32 %v4186_v34, %v813_v57  ;;  %v830_v34 = vadd.f32 %v4203_v30, %v4161_v40 }
 0x1c1   : > { %1194 = vrot.lane.b32.xlu0 %v1189_v49, %s3604_s30  ;;  %1222 = vrot.lane.b32.xlu1 %v1217_v41, %s3605_s13  ;;  %v786_v41 = vadd.f32 %v4182_v42, %v4099_v20  ;;  %v1038_v20 = vmul.f32 %v1037_v47, %v4090_v24  ;;  %v1273_v42 = vmul.f32 %v1271_v63, %v4216_v12 }
 0x1c2   : > { %1208 = vrot.lane.b32.xlu2 %v1203_v18, %s3604_s30 }
 0x1c3   : > { %v4224_v2 = vpop.permute.xlu0 %867  ;;  %v4226_v46 = vpop.permute.xlu1 %895  ;;  %v844_v6 = vadd.f32 %v4171_v9, %v786_v41  ;;  %v886_v41 = vadd.f32 %v4195_v38, %v830_v34  ;;  %v1039_v38 = vmul.f32 %v1037_v47, %v4053_v45  ;;  %v4391_v47 = vld [vmem:[#allocation2 + $0x24] sm:$0xff] }
 0x1c4   : > { %v4228_v35 = vpop.permute.xlu2 %951 }
 0x1c5   : > { %v900_v12 = vadd.f32 %v4226_v46, %v844_v6 }
 0x1c9   : > { %1220 = vrot.lane.b32.xlu0 %v1216_v51, %s3605_s13  ;;  %1248 = vrot.lane.b32.xlu1 %v1244_v37, %s3605_s13  ;;  %v1301_v51 = vstv %s4268_s12  ;;  %v872_v37 = vadd.f32 %v4224_v2, %v814_v27  ;;  %v785_v2 = vadd.f32 %v4088_v58, %v4132_v59  ;;  %v1315_v59 = vstv %s4297_s24  ;;  %s5577_s12 = smov 125   ;;  %s3244_s24 = sld [smem:[#allocation4 + $0x52]] }
 0x1ca   : > { %1234 = vrot.lane.b32.xlu2 %v1230_v44, %s3605_s13  ;;  %v1303_v15 = vmul.f32 %v1301_v51, %v4294_v25  ;;  %v1317_v40 = vmul.f32 %v1315_v59, %v4294_v25 }
 0x1cb   : > { %v4238_v52 = vpop.permute.xlu0 %893  ;;  %v4240_v21 = vpop.permute.xlu1 %923  ;;  %v930_v32 = vadd.f32 %v4214_v23, %v872_v37 }
 0x1cc   : > { %v968_v55 = vpop.permute.xlu2 %967 }
 0x1d1   : > { %1236 = vrot.lane.b32.xlu0 %v1231_v16, %s3605_s13  ;;  %1264 = vrot.lane.b32.xlu1 %v1259_v56, %s3605_s13  ;;  %v1031_v16 = vstv %s4276_s20  ;;  %s4350_s20 = sld [smem:[#allocation4 + $0x4c]] }
 0x1d2   : > { %1250 = vrot.lane.b32.xlu2 %v1245_v22, %s3605_s13 }
 0x1d3   : > { %v910_v36 = vpop.permute.xlu0 %909  ;;  %v4257_v62 = vpop.permute.xlu1 %939 }
 0x1d4   : > { %v914_v50 = vadd.f32 %v910_v36, %v858_v11  ;;  %v994_v53 = vpop.permute.xlu2 %993  ;;  %v1329_v11 = vstv %s4284_s11  ;;  %v1033_v36 = vmul.f32 %v1031_v16, %v4053_v45  ;;  %s4353_s11 = sld [smem:[#allocation4 + $0x4b]] }
 0x1d5   : > { %v1330_v29 = vmul.f32 %v1329_v11, %v4264_v8  ;;  %v1331_v27 = vmul.f32 %v1329_v11, %v4294_v25  ;;  %v4407_v11 = vld [vmem:[#allocation2 + $0x1c] sm:$0xff] }
 0x1d6   : > { %v972_v43 = vadd.f32 %v968_v55, %v914_v50  ;;  %v843_v50 = vadd.f32 %v4193_v4, %v785_v2  ;;  %v1316_v4 = vmul.f32 %v1315_v59, %v4264_v8 }
 0x1d7   : > { %v1371_v37 = vstv %s4350_s20  ;;  %s3248_s20 = sld [smem:[#allocation4 + $0x56]] }
 0x1d8   : > { %v4278_v7 = vadd.f32 %v1027_v39, %v972_v43  ;;  %v899_v46 = vadd.f32 %v4238_v52, %v843_v50  ;;  %v1302_v43 = vmul.f32 %v1301_v51, %v4264_v8  ;;  %v929_v52 = vadd.f32 %v4240_v21, %v871_v26 }
 0x1d9   : > { %1262 = vrot.lane.b32.xlu0 %v1258_v13, %s3605_s13  ;;  %1292 = vrot.lane.b32.xlu1 %v1288_v28, %s5576_s6  ;;  %v1343_v21 = vstv %s4331_s9  ;;  %s3246_s9 = sld [smem:[#allocation4 + $0x54]] }
 0x1da   : > { %1276 = vrot.lane.b32.xlu2 %v1272_v54, %s3606_s29  ;;  %v957_v13 = vadd.f32 %v4228_v35, %v899_v46  ;;  %v1020_v54 = vmul.f32 %v1019_v1, %v4090_v24  ;;  %v1345_v30 = vmul.f32 %v1343_v21, %v4294_v25  ;;  %v1425_v1 = vstv %s3244_s24  ;;  %v1453_v46 = vld [vmem:[#allocation2 + $0x25] sm:$0xff]  ;;  %s3250_s24 = sld [smem:[#allocation4 + $0x58]] }
 0x1db   : > { %v938_v49 = vpop.permute.xlu0 %937  ;;  %v966_v60 = vpop.permute.xlu1 %965  ;;  %v1426_v50 = vmul.f32 %v1425_v1, %v4407_v11 }
 0x1dc   : > { %v943_v18 = vadd.f32 %v938_v49, %v885_v48  ;;  %v971_v19 = vadd.f32 %v966_v60, %v913_v17  ;;  %v1010_v3 = vpop.permute.xlu2 %1009  ;;  %v1032_v60 = vmul.f32 %v1031_v16, %v4090_v24  ;;  %v944_v24 = vadd.f32 %v4257_v62, %v886_v41 }
 0x1dd   : > { %v1372_v62 = vmul.f32 %v1371_v37, %v4264_v8  ;;  %v1411_v16 = vstv %s3243_s28  ;;  %s3249_s28 = sld [smem:[#allocation4 + $0x57]] }
 0x1de   : > { %v999_v44 = vadd.f32 %v994_v53, %v943_v18  ;;  %v4300_v55 = vadd.f32 %v1026_v31, %v971_v19  ;;  %v1413_v2 = vmul.f32 %v1411_v16, %v4391_v47  ;;  %v1412_v57 = vmul.f32 %v1411_v16, %v4407_v11 }
 0x1e0   : > { %v4310_v56 = vadd.f32 %v1038_v20, %v999_v44  ;;  %v1357_v44 = vstv %s4353_s11  ;;  %s3247_s11 = sld [smem:[#allocation4 + $0x55]] }
 0x1e1   : > { %1278 = vrot.lane.b32.xlu0 %v1273_v42, %s3606_s29  ;;  %1308 = vrot.lane.b32.xlu1 %v1303_v15, %s5576_s6  ;;  %v1344_v42 = vmul.f32 %v1343_v21, %v4264_v8  ;;  %v1358_v15 = vmul.f32 %v1357_v44, %v4264_v8  ;;  %v1359_v8 = vmul.f32 %v1357_v44, %v4294_v25 }
 0x1e2   : > { %1294 = vrot.lane.b32.xlu2 %v1289_v10, %s5576_s6 }
 0x1e3   : > { %v954_v9 = vpop.permute.xlu0 %953  ;;  %v982_v22 = vpop.permute.xlu1 %981 }
 0x1e4   : > { %v958_v53 = vadd.f32 %v954_v9, %v900_v12  ;;  %v986_v61 = vadd.f32 %v982_v22, %v930_v32  ;;  %v4325_v58 = vpop.permute.xlu2 %1062  ;;  %v1373_v12 = vmul.f32 %v1371_v37, %v4294_v25 }
 0x1e6   : > { %v1014_v63 = vadd.f32 %v1010_v3, %v958_v53  ;;  %v4329_v23 = vadd.f32 %v1033_v36, %v986_v61  ;;  %v1439_v36 = vstv %s4393_s27  ;;  %s3251_s27 = sld [smem:[#allocation4 + $0x59]] }
 0x1e7   : > { %v1440_v25 = vmul.f32 %v1439_v36, %v4407_v11 }
 0x1e8   : > { %v4338_v39 = vadd.f32 %v1021_v14, %v1014_v63  ;;  %v1455_v63 = vstv %s3246_s9  ;;  %v1427_v14 = vmul.f32 %v1425_v1, %v4391_v47  ;;  %s3252_s9 = sld [smem:[#allocation4 + $0x5a]] }
 0x1e9   : > { %1306 = vrot.lane.b32.xlu0 %v1302_v43, %s5576_s6  ;;  %1334 = vrot.lane.b32.xlu1 %v1330_v29, %s5577_s12  ;;  %v1457_v43 = vmul.f32 %v1455_v63, %v1453_v46  ;;  %v1441_v29 = vmul.f32 %v1439_v36, %v4391_v47 }
 0x1ea   : > { %1320 = vrot.lane.b32.xlu2 %v1316_v4, %s5576_s6 }
 0x1eb   : > { %v980_v28 = vpop.permute.xlu0 %979  ;;  %v1008_v5 = vpop.permute.xlu1 %1007 }
 0x1ec   : > { %v985_v48 = vadd.f32 %v980_v28, %v929_v52  ;;  %v1013_v17 = vadd.f32 %v1008_v5, %v957_v13  ;;  %v4348_v49 = vpop.permute.xlu2 %1078  ;;  %v1452_v13 = vld [vmem:[#allocation2 + $0x1d] sm:$0xff]  ;;  %v1483_v28 = vstv %s3248_s20  ;;  %v1469_v5 = vstv %s3247_s11  ;;  %s4460_s20 = sld [smem:[#allocation4 + $0x5c]] }
 0x1ed   : > { %v1484_v34 = vmul.f32 %v1483_v28, %v1452_v13  ;;  %v1525_v37 = vstv %s3251_s27  ;;  %s3253_s11 = sld [smem:[#allocation4 + $0x5b]] }
 0x1ee   : > { %v4356_v35 = vadd.f32 %v1020_v54, %v1013_v17  ;;  %v4358_v31 = vadd.f32 %v1032_v60, %v985_v48  ;;  %v1456_v54 = vmul.f32 %v1455_v63, %v1452_v13  ;;  %v1470_v48 = vmul.f32 %v1469_v5, %v1452_v13  ;;  %v4469_v63 = vld [vmem:[#allocation2 + $0x1e] sm:$0xff]  ;;  %s4483_s27 = sld [smem:[#allocation4 + $0x5f]] }
 0x1ef   : > { %v1527_v1 = vmul.f32 %v1525_v37, %v1453_v46 }
 0x1f1   : > { %1322 = vrot.lane.b32.xlu0 %v1317_v40, %s5576_s6  ;;  %1350 = vrot.lane.b32.xlu1 %v1345_v30, %s5577_s12  ;;  %v1497_v40 = vstv %s3249_s28  ;;  %v1471_v30 = vmul.f32 %v1469_v5, %v1453_v46  ;;  %s3255_s28 = sld [smem:[#allocation4 + $0x5d]] }
 0x1f2   : > { %1336 = vrot.lane.b32.xlu2 %v1331_v27, %s5577_s12  ;;  %v1499_v41 = vmul.f32 %v1497_v40, %v1453_v46  ;;  %v1485_v27 = vmul.f32 %v1483_v28, %v1453_v46  ;;  %v1498_v44 = vmul.f32 %v1497_v40, %v1452_v13 }
 0x1f3   : > { %v996_v18 = vpop.permute.xlu0 %995  ;;  %v4368_v19 = vpop.permute.xlu1 %1050 }
 0x1f4   : > { %v1000_v3 = vadd.f32 %v996_v18, %v944_v24  ;;  %v4370_v51 = vpop.permute.xlu2 %1106 }
 0x1f6   : > { %v4377_v20 = vadd.f32 %v1039_v38, %v1000_v3  ;;  %v1511_v38 = vstv %s3250_s24  ;;  %s4485_s24 = sld [smem:[#allocation4 + $0x5e]] }
 0x1f9   : > { %1348 = vrot.lane.b32.xlu0 %v1344_v42, %s5577_s12  ;;  %1376 = vrot.lane.b32.xlu1 %v1372_v62, %s5577_s12  ;;  %v1526_v42 = vmul.f32 %v1525_v37, %v1452_v13  ;;  %v1512_v62 = vmul.f32 %v1511_v38, %v1452_v13 }
 0x1fa   : > { %1362 = vrot.lane.b32.xlu2 %v1358_v15, %s5577_s12 }
 0x1fb   : > { %v4385_v6 = vpop.permute.xlu0 %1048  ;;  %v4387_v10 = vpop.permute.xlu1 %1076 }
 0x1fc   : > { %v4389_v45 = vpop.permute.xlu2 %1122 }
 0x201   : > { %1364 = vrot.lane.b32.xlu0 %v1359_v8, %s5577_s12  ;;  %1418 = vrot.lane.b32.xlu1 %v1413_v2, %s3601_s10  ;;  %v1539_v2 = vstv %s3252_s9  ;;  %s4501_s9 = sld [smem:[#allocation4 + $0x60]] }
 0x202   : > { %1378 = vrot.lane.b32.xlu2 %v1373_v12, %s5577_s12  ;;  %v1513_v12 = vmul.f32 %v1511_v38, %v1453_v46  ;;  %v1541_v36 = vmul.f32 %v1539_v2, %v1453_v46 }
 0x203   : > { %v4401_v32 = vpop.permute.xlu0 %1064  ;;  %v4403_v9 = vpop.permute.xlu1 %1094 }
 0x204   : > { %v4405_v22 = vpop.permute.xlu2 %1148 }
 0x209   : > { %1416 = vrot.lane.b32.xlu0 %v1412_v57, %s3601_s10  ;;  %1444 = vrot.lane.b32.xlu1 %v1440_v25, %s3601_s10 }
 0x20a   : > { %1430 = vrot.lane.b32.xlu2 %v1426_v50, %s3601_s10 }
 0x20b   : > { %v4416_v53 = vpop.permute.xlu0 %1092  ;;  %v4418_v61 = vpop.permute.xlu1 %1120 }
 0x20c   : > { %v4420_v59 = vpop.permute.xlu2 %1164 }
 0x211   : > { %1432 = vrot.lane.b32.xlu0 %v1427_v14, %s3601_s10  ;;  %1462 = vrot.lane.b32.xlu1 %v1457_v43, %s3599_s22  ;;  %v1569_v14 = vstv %s4460_s20  ;;  %v1555_v43 = vstv %s3253_s11  ;;  %s4515_s20 = sld [smem:[#allocation4 + $0x66]] }
 0x212   : > { %1446 = vrot.lane.b32.xlu2 %v1441_v29, %s3601_s10  ;;  %v1540_v29 = vmul.f32 %v1539_v2, %v1452_v13  ;;  %v1570_v28 = vmul.f32 %v1569_v14, %v4469_v63  ;;  %v1556_v46 = vmul.f32 %v1555_v43, %v4469_v63  ;;  %v1583_v13 = vstv %s3255_s28  ;;  %s4518_s11 = sld [smem:[#allocation4 + $0x61]] }
 0x213   : > { %v4427_v26 = vpop.permute.xlu0 %1108  ;;  %v4429_v4 = vpop.permute.xlu1 %1136  ;;  %s4520_s28 = sld [smem:[#allocation4 + $0x4d]] }
 0x214   : > { %v4431_v52 = vpop.permute.xlu2 %1192 }
 0x219   : > { %1460 = vrot.lane.b32.xlu0 %v1456_v54, %s3599_s22  ;;  %1488 = vrot.lane.b32.xlu1 %v1484_v34, %s3602_s0 }
 0x21a   : > { %1474 = vrot.lane.b32.xlu2 %v1470_v48, %s3602_s0  ;;  %v4481_v48 = vld [vmem:[#allocation2 + $0x26] sm:$0xff] }
 0x21b   : > { %v4436_v17 = vpop.permute.xlu0 %1134  ;;  %v4438_v60 = vpop.permute.xlu1 %1162  ;;  %v1557_v40 = vmul.f32 %v1555_v43, %v4481_v48 }
 0x21c   : > { %v4440_v21 = vpop.permute.xlu2 %1208 }
 0x221   : > { %1476 = vrot.lane.b32.xlu0 %v1471_v30, %s3602_s0  ;;  %1504 = vrot.lane.b32.xlu1 %v1499_v41, %s3602_s0  ;;  %v1585_v30 = vmul.f32 %v1583_v13, %v4481_v48  ;;  %v1571_v41 = vmul.f32 %v1569_v14, %v4481_v48 }
 0x222   : > { %1490 = vrot.lane.b32.xlu2 %v1485_v27, %s3602_s0 }
 0x223   : > { %v4445_v24 = vpop.permute.xlu0 %1150  ;;  %v4447_v18 = vpop.permute.xlu1 %1178 }
 0x224   : > { %v4449_v3 = vpop.permute.xlu2 %1234 }
 0x229   : > { %1502 = vrot.lane.b32.xlu0 %v1498_v44, %s3602_s0  ;;  %1530 = vrot.lane.b32.xlu1 %v1526_v42, %s3603_s8  ;;  %v1611_v44 = vstv %s4483_s27  ;;  %v1597_v42 = vstv %s4485_s24  ;;  %s4531_s27 = sld [smem:[#allocation4 + $0x4f]] }
 0x22a   : > { %1516 = vrot.lane.b32.xlu2 %v1512_v62, %s3602_s0  ;;  %v1584_v62 = vmul.f32 %v1583_v13, %v4469_v63  ;;  %v1612_v2 = vmul.f32 %v1611_v44, %v4469_v63  ;;  %s4539_s24 = sld [smem:[#allocation4 + $0x67]] }
 0x22b   : > { %v4454_v15 = vpop.permute.xlu0 %1176  ;;  %v4456_v16 = vpop.permute.xlu1 %1206 }
 0x22c   : > { %v4458_v8 = vpop.permute.xlu2 %1250 }
 0x231   : > { %1518 = vrot.lane.b32.xlu0 %v1513_v12, %s3602_s0  ;;  %1546 = vrot.lane.b32.xlu1 %v1541_v36, %s3603_s8  ;;  %v1598_v12 = vmul.f32 %v1597_v42, %v4469_v63  ;;  %v1055_v36 = vadd.f32 %v4368_v19, %v4338_v39  ;;  %v1599_v39 = vmul.f32 %v1597_v42, %v4481_v48 }
 0x232   : > { %1532 = vrot.lane.b32.xlu2 %v1527_v1, %s3603_s8 }
 0x233   : > { %v4465_v57 = vpop.permute.xlu0 %1194  ;;  %v1223_v25 = vpop.permute.xlu1 %1222  ;;  %v1113_v43 = vadd.f32 %v4427_v26, %v1055_v36 }
 0x234   : > { %v4467_v50 = vpop.permute.xlu2 %1276 }
 0x235   : > { %v1169_v13 = vadd.f32 %v4420_v59, %v1113_v43 }
 0x237   : > { %v1227_v26 = vadd.f32 %v1223_v25, %v1169_v13  ;;  %v1069_v25 = vadd.f32 %v4401_v32, %v4278_v7  ;;  %v1399_v7 = vstv %s4531_s27  ;;  %v1099_v32 = vadd.f32 %v4403_v9, %v4377_v20  ;;  %s3273_s27 = sld [smem:[#allocation4 + $0x6f]] }
 0x238   : > { %v1694_v13 = vstv %s4539_s24  ;;  %s4605_s24 = sld [smem:[#allocation4 + $0x6a]] }
 0x239   : > { %1544 = vrot.lane.b32.xlu0 %v1540_v29, %s3603_s8  ;;  %1574 = vrot.lane.b32.xlu1 %v1570_v28, %s3604_s30  ;;  %v1054_v28 = vadd.f32 %v4385_v6, %v4356_v35  ;;  %v1082_v35 = vadd.f32 %v4387_v10, %v4358_v31  ;;  %v1680_v31 = vstv %s4515_s20  ;;  %v1639_v10 = vstv %s4518_s11  ;;  %s4569_s20 = sld [smem:[#allocation4 + $0x69]] }
 0x23a   : > { %1560 = vrot.lane.b32.xlu2 %v1556_v46, %s3604_s30  ;;  %v1625_v46 = vstv %s4501_s9  ;;  %s4559_s9 = sld [smem:[#allocation4 + $0x4e]] }
 0x23b   : > { %v1221_v5 = vpop.permute.xlu0 %1220  ;;  %v4477_v54 = vpop.permute.xlu1 %1248  ;;  %v1627_v19 = vmul.f32 %v1625_v46, %v4481_v48  ;;  %v1112_v6 = vadd.f32 %v4370_v51, %v1054_v28  ;;  %v1387_v51 = vstv %s4520_s28  ;;  %v1626_v28 = vmul.f32 %v1625_v46, %v4469_v63  ;;  %s4576_s11 = sld [smem:[#allocation4 + $0x68]] }
 0x23c   : > { %v4479_v34 = vpop.permute.xlu2 %1294  ;;  %v1389_v43 = vmul.f32 %v1387_v51, %v4391_v47  ;;  %s4581_s28 = sld [smem:[#allocation4 + $0x50]] }
 0x241   : > { %1562 = vrot.lane.b32.xlu0 %v1557_v40, %s3604_s30  ;;  %1590 = vrot.lane.b32.xlu1 %v1585_v30, %s3605_s13  ;;  %v1613_v40 = vmul.f32 %v1611_v44, %v4481_v48  ;;  %v1168_v44 = vadd.f32 %v4438_v60, %v1112_v6 }
 0x242   : > { %1576 = vrot.lane.b32.xlu2 %v1571_v41, %s3604_s30  ;;  %v1140_v41 = vadd.f32 %v4436_v17, %v1082_v35  ;;  %v1155_v35 = vadd.f32 %v4445_v24, %v1099_v32 }
 0x243   : > { %v4493_v27 = vpop.permute.xlu0 %1236  ;;  %v4495_v37 = vpop.permute.xlu1 %1264 }
 0x244   : > { %v4497_v38 = vpop.permute.xlu2 %1320  ;;  %v1198_v60 = vadd.f32 %v4431_v52, %v1140_v41  ;;  %v1641_v41 = vmul.f32 %v1639_v10, %v4481_v48 }
 0x249   : > { %1588 = vrot.lane.b32.xlu0 %v1584_v62, %s3605_s13  ;;  %1616 = vrot.lane.b32.xlu1 %v1612_v2, %s3605_s13  ;;  %v4543_v2 = vld [vmem:[#allocation2 + $0x30] sm:$0xff] }
 0x24a   : > { %1602 = vrot.lane.b32.xlu2 %v1598_v12, %s3605_s13  ;;  %v1226_v12 = vadd.f32 %v1221_v5, %v1168_v44  ;;  %v1681_v17 = vmul.f32 %v1680_v31, %v4543_v2  ;;  %v1127_v5 = vadd.f32 %v4389_v45, %v1069_v25 }
 0x24b   : > { %v4511_v1 = vpop.permute.xlu0 %1262  ;;  %v4513_v14 = vpop.permute.xlu1 %1292 }
 0x24c   : > { %v1337_v29 = vpop.permute.xlu2 %1336  ;;  %v1282_v52 = vadd.f32 %v4467_v50, %v1226_v12  ;;  %v1183_v20 = vadd.f32 %v4447_v18, %v1127_v5  ;;  %v1400_v50 = vmul.f32 %v1399_v7, %v4407_v11  ;;  %v1083_v5 = vadd.f32 %v4348_v49, %v4329_v23 }
 0x24e   : > { %v1241_v24 = vadd.f32 %v4493_v27, %v1183_v20 }
 0x251   : > { %1604 = vrot.lane.b32.xlu0 %v1599_v39, %s3605_s13  ;;  %1632 = vrot.lane.b32.xlu1 %v1627_v19, %s3605_s13  ;;  %v1640_v39 = vmul.f32 %v1639_v10, %v4469_v63 }
 0x252   : > { %1618 = vrot.lane.b32.xlu2 %v1613_v40, %s3605_s13  ;;  %v1388_v40 = vmul.f32 %v1387_v51, %v4407_v11  ;;  %v1213_v51 = vadd.f32 %v4440_v21, %v1155_v35 }
 0x253   : > { %v1279_v59 = vpop.permute.xlu0 %1278  ;;  %v4537_v30 = vpop.permute.xlu1 %1308 }
 0x254   : > { %v1283_v42 = vadd.f32 %v1279_v59, %v1227_v26  ;;  %v1363_v62 = vpop.permute.xlu2 %1362  ;;  %v4574_v26 = vld [vmem:[#allocation2 + $0x38] sm:$0xff]  ;;  %v1269_v27 = vadd.f32 %v4495_v37, %v1213_v51 }
 0x255   : > { %v1696_v44 = vmul.f32 %v1694_v13, %v4574_v26  ;;  %v1682_v25 = vmul.f32 %v1680_v31, %v4574_v26  ;;  %v4612_v37 = vld [vmem:[#allocation2 + $0x31] sm:$0xff] }
 0x256   : > { %v1341_v36 = vadd.f32 %v1337_v29, %v1283_v42  ;;  %v1254_v29 = vadd.f32 %v4477_v54, %v1198_v60  ;;  %v1098_v54 = vadd.f32 %v4416_v53, %v4310_v56  ;;  %v1068_v42 = vadd.f32 %v4325_v58, %v4300_v55 }
 0x257   : > { %v1393_v56 = vstv %s4559_s9  ;;  %v1299_v55 = vadd.f32 %v4479_v34, %v1241_v24  ;;  %s4639_s9 = sld [smem:[#allocation4 + $0x6c]] }
 0x258   : > { %v4555_v19 = vadd.f32 %v1389_v43, %v1341_v36  ;;  %v1126_v53 = vadd.f32 %v4418_v61, %v1068_v42  ;;  %v1154_v48 = vadd.f32 %v4405_v22, %v1098_v54  ;;  %v1395_v31 = vmul.f32 %v1393_v56, %v4391_v47 }
 0x259   : > { %1630 = vrot.lane.b32.xlu0 %v1626_v28, %s3605_s13  ;;  %1685 = vrot.lane.b32.xlu1 %v1681_v17, %s3601_s10  ;;  %v1708_v28 = vstv %s4576_s11  ;;  %v1405_v17 = vstv %s4581_s28  ;;  %v1394_v23 = vmul.f32 %v1393_v56, %v4407_v11  ;;  %s3271_s11 = sld [smem:[#allocation4 + $0x6d]] }
 0x25a   : > { %1644 = vrot.lane.b32.xlu2 %v1640_v39, %s3606_s29  ;;  %v1182_v10 = vadd.f32 %v4454_v15, %v1126_v53  ;;  %v1212_v61 = vadd.f32 %v4456_v16, %v1154_v48  ;;  %v1407_v32 = vmul.f32 %v1405_v17, %v4391_v47  ;;  %v1695_v15 = vmul.f32 %v1694_v13, %v4543_v2  ;;  %s3272_s28 = sld [smem:[#allocation4 + $0x6e]] }
 0x25b   : > { %v1307_v63 = vpop.permute.xlu0 %1306  ;;  %v1335_v46 = vpop.permute.xlu1 %1334 }
 0x25c   : > { %v1312_v9 = vadd.f32 %v1307_v63, %v1254_v29  ;;  %v1340_v45 = vadd.f32 %v1335_v46, %v1282_v52  ;;  %v1379_v6 = vpop.permute.xlu2 %1378  ;;  %v1268_v34 = vadd.f32 %v4511_v1, %v1212_v61  ;;  %v1240_v29 = vadd.f32 %v4449_v3, %v1182_v10 }
 0x25d   : > { %v1709_v52 = vmul.f32 %v1708_v28, %v4543_v2  ;;  %v1141_v1 = vadd.f32 %v4429_v4, %v1083_v5  ;;  %v1406_v4 = vmul.f32 %v1405_v17, %v4407_v11 }
 0x25e   : > { %v1368_v59 = vadd.f32 %v1363_v62, %v1312_v9  ;;  %v4586_v18 = vadd.f32 %v1388_v40, %v1340_v45  ;;  %v1724_v62 = vstv %s4569_s20  ;;  %v1298_v46 = vadd.f32 %v4513_v14, %v1240_v29  ;;  %s4642_s20 = sld [smem:[#allocation4 + $0x6b]] }
 0x25f   : > { %v1725_v16 = vmul.f32 %v1724_v62, %v4612_v37  ;;  %v1326_v13 = vadd.f32 %v4497_v38, %v1268_v34  ;;  %v1738_v40 = vstv %s4605_s24  ;;  %v1199_v35 = vadd.f32 %v4465_v57, %v1141_v1  ;;  %s3274_s24 = sld [smem:[#allocation4 + $0x70]] }
 0x260   : > { %v4594_v12 = vadd.f32 %v1400_v50, %v1368_v59  ;;  %v1710_v57 = vmul.f32 %v1708_v28, %v4574_v26  ;;  %v1739_v53 = vmul.f32 %v1738_v40, %v4612_v37 }
 0x261   : > { %1646 = vrot.lane.b32.xlu0 %v1641_v41, %s3606_s29  ;;  %1701 = vrot.lane.b32.xlu1 %v1696_v44, %s3601_s10  ;;  %v1255_v54 = vadd.f32 %v4458_v8, %v1199_v35  ;;  %v1401_v44 = vmul.f32 %v1399_v7, %v4391_v47 }
 0x262   : > { %1687 = vrot.lane.b32.xlu2 %v1682_v25, %s3601_s10  ;;  %v1766_v25 = vstv %s4639_s9  ;;  %s3276_s9 = sld [smem:[#allocation4 + $0x72]] }
 0x263   : > { %v1323_v58 = vpop.permute.xlu0 %1322  ;;  %v1351_v21 = vpop.permute.xlu1 %1350  ;;  %v1313_v11 = vadd.f32 %v4537_v30, %v1255_v54  ;;  %v1767_v30 = vmul.f32 %v1766_v25, %v4612_v37 }
 0x264   : > { %v1327_v36 = vadd.f32 %v1323_v58, %v1269_v27  ;;  %v1355_v22 = vadd.f32 %v1351_v21, %v1299_v55  ;;  %v4610_v43 = vpop.permute.xlu2 %1430  ;;  %v1752_v8 = vstv %s4642_s20  ;;  %v1780_v55 = vstv %s3271_s11  ;;  %s3275_s20 = sld [smem:[#allocation4 + $0x71]] }
 0x265   : > { %v1753_v48 = vmul.f32 %v1752_v8, %v4612_v37  ;;  %v1781_v28 = vmul.f32 %v1780_v55, %v4612_v37  ;;  %v1824_v5 = vstv %s3274_s24  ;;  %s3277_s11 = sld [smem:[#allocation4 + $0x73]] }
 0x266   : > { %v1383_v60 = vadd.f32 %v1379_v6, %v1327_v36  ;;  %v4617_v39 = vadd.f32 %v1395_v31, %v1355_v22  ;;  %v1722_v6 = vld [vmem:[#allocation2 + $0x39] sm:$0xff]  ;;  %v1808_v36 = vstv %s3273_s27  ;;  %v1794_v22 = vstv %s3272_s28  ;;  %s4717_s27 = sld [smem:[#allocation4 + $0x75]] }
 0x267   : > { %v1740_v50 = vmul.f32 %v1738_v40, %v1722_v6  ;;  %v1726_v24 = vmul.f32 %v1724_v62, %v1722_v6  ;;  %v1754_v58 = vmul.f32 %v1752_v8, %v1722_v6  ;;  %v1782_v21 = vmul.f32 %v1780_v55, %v1722_v6  ;;  %s3278_s28 = sld [smem:[#allocation4 + $0x74]] }
 0x268   : > { %v4626_v63 = vadd.f32 %v1407_v32, %v1383_v60  ;;  %v1768_v62 = vmul.f32 %v1766_v25, %v1722_v6  ;;  %v1809_v17 = vmul.f32 %v1808_v36, %v4612_v37  ;;  %v1795_v34 = vmul.f32 %v1794_v22, %v4612_v37  ;;  %s4727_s24 = sld [smem:[#allocation4 + $0x76]] }
 0x269   : > { %1699 = vrot.lane.b32.xlu0 %v1695_v15, %s3601_s10  ;;  %1729 = vrot.lane.b32.xlu1 %v1725_v16, %s3599_s22  ;;  %v1822_v16 = vld [vmem:[#allocation2 + $0x3a] sm:$0xff]  ;;  %v1796_v29 = vmul.f32 %v1794_v22, %v1722_v6  ;;  %v1810_v1 = vmul.f32 %v1808_v36, %v1722_v6 }
 0x26a   : > { %1713 = vrot.lane.b32.xlu2 %v1709_v52, %s3601_s10  ;;  %v1826_v52 = vmul.f32 %v1824_v5, %v1822_v16 }
 0x26b   : > { %v1349_v49 = vpop.permute.xlu0 %1348  ;;  %v1377_v3 = vpop.permute.xlu1 %1376 }
 0x26c   : > { %v1354_v20 = vadd.f32 %v1349_v49, %v1298_v46  ;;  %v1382_v9 = vadd.f32 %v1377_v3, %v1326_v13  ;;  %v4637_v45 = vpop.permute.xlu2 %1446  ;;  %v1852_v49 = vstv %s3276_s9  ;;  %v1838_v3 = vstv %s3275_s20  ;;  %s4737_s9 = sld [smem:[#allocation4 + $0x78]] }
 0x26d   : > { %v1880_v25 = vstv %s3278_s28  ;;  %s4740_s20 = sld [smem:[#allocation4 + $0x77]] }
 0x26e   : > { %v4644_v38 = vadd.f32 %v1394_v23, %v1354_v20  ;;  %v4646_v14 = vadd.f32 %v1406_v4, %v1382_v9  ;;  %v4705_v23 = vld [vmem:[#allocation2 + $0x32] sm:$0xff]  ;;  %v1882_v36 = vmul.f32 %v1880_v25, %v1822_v16  ;;  %s4753_s28 = sld [smem:[#allocation4 + $0x62]] }
 0x26f   : > { %v1825_v40 = vmul.f32 %v1824_v5, %v4705_v23  ;;  %v1853_v35 = vmul.f32 %v1852_v49, %v4705_v23  ;;  %v1839_v20 = vmul.f32 %v1838_v3, %v4705_v23 }
 0x271   : > { %1715 = vrot.lane.b32.xlu0 %v1710_v57, %s3601_s10  ;;  %1745 = vrot.lane.b32.xlu1 %v1740_v50, %s3602_s0  ;;  %v1866_v57 = vstv %s3277_s11  ;;  %v1840_v50 = vmul.f32 %v1838_v3, %v1822_v16  ;;  %s4742_s11 = sld [smem:[#allocation4 + $0x63]] }
 0x272   : > { %1731 = vrot.lane.b32.xlu2 %v1726_v24, %s3599_s22  ;;  %v1868_v54 = vmul.f32 %v1866_v57, %v1822_v16  ;;  %v1854_v24 = vmul.f32 %v1852_v49, %v1822_v16  ;;  %v1867_v8 = vmul.f32 %v1866_v57, %v4705_v23 }
 0x273   : > { %v1365_v59 = vpop.permute.xlu0 %1364  ;;  %v4654_v41 = vpop.permute.xlu1 %1418 }
 0x274   : > { %v1369_v42 = vadd.f32 %v1365_v59, %v1313_v11  ;;  %v4659_v51 = vpop.permute.xlu2 %1474 }
 0x276   : > { %v4663_v56 = vadd.f32 %v1401_v44, %v1369_v42  ;;  %v1894_v42 = vstv %s4717_s27  ;;  %s4746_s27 = sld [smem:[#allocation4 + $0x64]] }
 0x277   : > { %v1662_v49 = vstv %s4742_s11  ;;  %s4797_s11 = sld [smem:[#allocation4 + $0x7a]] }
 0x278   : > { %v1663_v57 = vmul.f32 %v1662_v49, %v4543_v2 }
 0x279   : > { %1743 = vrot.lane.b32.xlu0 %v1739_v53, %s3602_s0  ;;  %1771 = vrot.lane.b32.xlu1 %v1767_v30, %s3602_s0  ;;  %v1895_v53 = vmul.f32 %v1894_v42, %v4705_v23  ;;  %v1881_v30 = vmul.f32 %v1880_v25, %v4705_v23 }
 0x27a   : > { %1757 = vrot.lane.b32.xlu2 %v1753_v48, %s3602_s0 }
 0x27b   : > { %v4671_v47 = vpop.permute.xlu0 %1416  ;;  %v4673_v7 = vpop.permute.xlu1 %1444 }
 0x27c   : > { %v4675_v27 = vpop.permute.xlu2 %1490 }
 0x281   : > { %1759 = vrot.lane.b32.xlu0 %v1754_v58, %s3602_s0  ;;  %1787 = vrot.lane.b32.xlu1 %v1782_v21, %s3602_s0  ;;  %v1908_v21 = vstv %s4727_s24  ;;  %s4763_s24 = sld [smem:[#allocation4 + $0x79]] }
 0x282   : > { %1773 = vrot.lane.b32.xlu2 %v1768_v62, %s3602_s0  ;;  %v1436_v62 = vadd.f32 %v4610_v43, %v4644_v38  ;;  %v1910_v22 = vmul.f32 %v1908_v21, %v1822_v16  ;;  %v1422_v43 = vadd.f32 %v4671_v47, %v4586_v18  ;;  %v1450_v38 = vadd.f32 %v4673_v7, %v4594_v12 }
 0x283   : > { %v4680_v31 = vpop.permute.xlu0 %1432  ;;  %v4682_v10 = vpop.permute.xlu1 %1462  ;;  %v1668_v7 = vstv %s4746_s27  ;;  %s4830_s27 = sld [smem:[#allocation4 + $0x7c]] }
 0x284   : > { %v4684_v61 = vpop.permute.xlu2 %1516  ;;  %v1480_v47 = vadd.f32 %v4659_v51, %v1422_v43 }
 0x289   : > { %1785 = vrot.lane.b32.xlu0 %v1781_v28, %s3602_s0  ;;  %1813 = vrot.lane.b32.xlu1 %v1809_v17, %s3603_s8  ;;  %v1896_v17 = vmul.f32 %v1894_v42, %v1822_v16  ;;  %v4759_v16 = vld [vmem:[#allocation2 + $0x33] sm:$0xff] }
 0x28a   : > { %1799 = vrot.lane.b32.xlu2 %v1795_v34, %s3603_s8 }
 0x28b   : > { %v4692_v60 = vpop.permute.xlu0 %1460  ;;  %v1489_v32 = vpop.permute.xlu1 %1488 }
 0x28c   : > { %v4694_v15 = vpop.permute.xlu2 %1532  ;;  %v1494_v28 = vadd.f32 %v1489_v32, %v1436_v62 }
 0x291   : > { %1801 = vrot.lane.b32.xlu0 %v1796_v29, %s3603_s8  ;;  %1831 = vrot.lane.b32.xlu1 %v1826_v52, %s3604_s30  ;;  %v1938_v52 = vstv %s4737_s9  ;;  %s4773_s9 = sld [smem:[#allocation4 + $0x65]] }
 0x292   : > { %1815 = vrot.lane.b32.xlu2 %v1810_v1, %s3603_s8  ;;  %v1924_v1 = vstv %s4740_s20  ;;  %v1939_v18 = vmul.f32 %v1938_v52, %v4759_v16  ;;  %s4785_s20 = sld [smem:[#allocation4 + $0x7b]] }
 0x293   : > { %v4699_v37 = vpop.permute.xlu0 %1476  ;;  %v4701_v46 = vpop.permute.xlu1 %1504  ;;  %v1925_v12 = vmul.f32 %v1924_v1, %v4759_v16 }
 0x294   : > { %v4703_v13 = vpop.permute.xlu2 %1560 }
 0x299   : > { %1829 = vrot.lane.b32.xlu0 %v1825_v40, %s3604_s30  ;;  %1857 = vrot.lane.b32.xlu1 %v1853_v35, %s3605_s13  ;;  %v1451_v35 = vadd.f32 %v4637_v45, %v4663_v56 }
 0x29a   : > { %1843 = vrot.lane.b32.xlu2 %v1839_v20, %s3604_s30  ;;  %v1909_v20 = vmul.f32 %v1908_v21, %v4705_v23 }
 0x29b   : > { %v1503_v9 = vpop.permute.xlu0 %1502  ;;  %v4713_v6 = vpop.permute.xlu1 %1530 }
 0x29c   : > { %v4715_v4 = vpop.permute.xlu2 %1576  ;;  %v1508_v3 = vadd.f32 %v1503_v9, %v1450_v38  ;;  %v1509_v9 = vadd.f32 %v4701_v46, %v1451_v35  ;;  %v1536_v45 = vadd.f32 %v4713_v6, %v1480_v47  ;;  %v1656_v46 = vstv %s4753_s28  ;;  %s4892_s28 = sld [smem:[#allocation4 + $0x85]] }
 0x29d   : > { %v1467_v6 = vadd.f32 %v4682_v10, %v4626_v63 }
 0x29e   : > { %v1566_v51 = vadd.f32 %v4703_v13, %v1508_v3 }
 0x2a1   : > { %1845 = vrot.lane.b32.xlu0 %v1840_v50, %s3604_s30  ;;  %1873 = vrot.lane.b32.xlu1 %v1868_v54, %s3605_s13 }
 0x2a2   : > { %1859 = vrot.lane.b32.xlu2 %v1854_v24, %s3605_s13  ;;  %v1669_v24 = vmul.f32 %v1668_v7, %v4543_v2 }
 0x2a3   : > { %v4722_v11 = vpop.permute.xlu0 %1518  ;;  %v4724_v59 = vpop.permute.xlu1 %1546 }
 0x2a4   : > { %v1603_v44 = vpop.permute.xlu2 %1602 }
 0x2a9   : > { %1871 = vrot.lane.b32.xlu0 %v1867_v8, %s3605_s13  ;;  %1899 = vrot.lane.b32.xlu1 %v1895_v53, %s3605_s13  ;;  %v4794_v8 = vld [vmem:[#allocation2 + $0x3b] sm:$0xff]  ;;  %v1952_v53 = vstv %s4763_s24  ;;  %s4849_s24 = sld [smem:[#allocation4 + $0x82]] }
 0x2aa   : > { %1885 = vrot.lane.b32.xlu2 %v1881_v30, %s3605_s13  ;;  %v1523_v30 = vadd.f32 %v4722_v11, %v1467_v6  ;;  %v1954_v10 = vmul.f32 %v1952_v53, %v4794_v8  ;;  %v1670_v11 = vmul.f32 %v1668_v7, %v4574_v26 }
 0x2ab   : > { %v1545_v48 = vpop.permute.xlu0 %1544  ;;  %v4735_v55 = vpop.permute.xlu1 %1574 }
 0x2ac   : > { %v1619_v58 = vpop.permute.xlu2 %1618  ;;  %v1550_v34 = vadd.f32 %v1545_v48, %v1494_v28  ;;  %v1674_v28 = vstv %s4773_s9  ;;  %s4852_s9 = sld [smem:[#allocation4 + $0x7d]] }
 0x2ad   : > { %v1676_v43 = vmul.f32 %v1674_v28, %v4574_v26 }
 0x2ae   : > { %v1608_v40 = vadd.f32 %v1603_v44, %v1550_v34  ;;  %v1437_v44 = vadd.f32 %v4680_v31, %v4617_v39  ;;  %v1657_v39 = vmul.f32 %v1656_v46, %v4543_v2  ;;  %v1926_v31 = vmul.f32 %v1924_v1, %v4794_v8 }
 0x2b0   : > { %v4782_v56 = vadd.f32 %v1663_v57, %v1608_v40  ;;  %v1495_v62 = vadd.f32 %v4675_v27, %v1437_v44  ;;  %v1966_v40 = vstv %s4797_s11  ;;  %s3294_s11 = sld [smem:[#allocation4 + $0x84]] }
 0x2b1   : > { %1887 = vrot.lane.b32.xlu0 %v1882_v36, %s3605_s13  ;;  %1915 = vrot.lane.b32.xlu1 %v1910_v22, %s3606_s29  ;;  %v1940_v36 = vmul.f32 %v1938_v52, %v4794_v8 }
 0x2b2   : > { %1901 = vrot.lane.b32.xlu2 %v1896_v17, %s3605_s13  ;;  %v1581_v17 = vadd.f32 %v4715_v4, %v1523_v30 }
 0x2b3   : > { %v1563_v5 = vpop.permute.xlu0 %1562  ;;  %v4751_v29 = vpop.permute.xlu1 %1590 }
 0x2b4   : > { %v1645_v32 = vpop.permute.xlu2 %1644  ;;  %v1567_v23 = vadd.f32 %v1563_v5, %v1509_v9  ;;  %v1980_v5 = vstv %s4785_s20  ;;  %s3293_s20 = sld [smem:[#allocation4 + $0x83]] }
 0x2b6   : > { %v1623_v63 = vadd.f32 %v1619_v58, %v1567_v23  ;;  %v1551_v58 = vadd.f32 %v4724_v59, %v1495_v62  ;;  %v1664_v59 = vmul.f32 %v1662_v49, %v4574_v26  ;;  %v1423_v49 = vadd.f32 %v4654_v41, %v4555_v19 }
 0x2b7   : > { %v1994_v19 = vstv %s4830_s27  ;;  %v1982_v23 = vmul.f32 %v1980_v5, %v4794_v8  ;;  %s3296_s27 = sld [smem:[#allocation4 + $0x86]] }
 0x2b8   : > { %v4820_v38 = vadd.f32 %v1670_v11, %v1623_v63  ;;  %v1481_v57 = vadd.f32 %v4699_v37, %v1423_v49  ;;  %v4890_v63 = vld [vmem:[#allocation2 + $0x3c] sm:$0xff] }
 0x2b9   : > { %1913 = vrot.lane.b32.xlu0 %v1909_v20, %s3606_s29  ;;  %1943 = vrot.lane.b32.xlu1 %v1939_v18, %s5576_s6  ;;  %v1953_v20 = vmul.f32 %v1952_v53, %v4759_v16  ;;  %v1981_v18 = vmul.f32 %v1980_v5, %v4759_v16 }
 0x2ba   : > { %1929 = vrot.lane.b32.xlu2 %v1925_v12, %s5576_s6  ;;  %v1537_v37 = vadd.f32 %v4694_v15, %v1481_v57  ;;  %v4872_v15 = vld [vmem:[#allocation2 + $0x34] sm:$0xff] }
 0x2bb   : > { %v1589_v50 = vpop.permute.xlu0 %1588  ;;  %v1617_v54 = vpop.permute.xlu1 %1616 }
 0x2bc   : > { %v1594_v42 = vadd.f32 %v1589_v50, %v1536_v45  ;;  %v1622_v13 = vadd.f32 %v1617_v54, %v1566_v51  ;;  %v4792_v25 = vpop.permute.xlu2 %1687  ;;  %v1675_v45 = vmul.f32 %v1674_v28, %v4543_v2  ;;  %v1996_v51 = vmul.f32 %v1994_v19, %v4794_v8 }
 0x2bd   : > { %v1595_v2 = vadd.f32 %v4751_v29, %v1537_v37  ;;  %v1995_v29 = vmul.f32 %v1994_v19, %v4759_v16 }
 0x2be   : > { %v1650_v48 = vadd.f32 %v1645_v32, %v1594_v42  ;;  %v4800_v21 = vadd.f32 %v1669_v24, %v1622_v13  ;;  %v1466_v32 = vadd.f32 %v4692_v60, %v4646_v14  ;;  %v1967_v60 = vmul.f32 %v1966_v40, %v4759_v16 }
 0x2bf   : > { %v1658_v24 = vmul.f32 %v1656_v46, %v4574_v26  ;;  %v2048_v42 = vstv %s4849_s24  ;;  %v2008_v13 = vstv %s4852_s9  ;;  %s3298_s24 = sld [smem:[#allocation4 + $0x88]] }
 0x2c0   : > { %v4809_v22 = vadd.f32 %v1657_v39, %v1650_v48  ;;  %v1522_v14 = vadd.f32 %v4684_v61, %v1466_v32  ;;  %v2049_v30 = vmul.f32 %v2048_v42, %v4872_v15  ;;  %v2009_v48 = vmul.f32 %v2008_v13, %v4759_v16  ;;  %s3297_s9 = sld [smem:[#allocation4 + $0x87]] }
 0x2c1   : > { %1931 = vrot.lane.b32.xlu0 %v1926_v31, %s5576_s6  ;;  %1959 = vrot.lane.b32.xlu1 %v1954_v10, %s5576_s6  ;;  %v2062_v31 = vstv %s3293_s20  ;;  %v2010_v16 = vmul.f32 %v2008_v13, %v4794_v8  ;;  %v2050_v62 = vmul.f32 %v2048_v42, %v4890_v63  ;;  %s4922_s20 = sld [smem:[#allocation4 + $0x89]] }
 0x2c2   : > { %1945 = vrot.lane.b32.xlu2 %v1940_v36, %s5576_s6  ;;  %v1580_v47 = vadd.f32 %v4735_v55, %v1522_v14  ;;  %v1968_v55 = vmul.f32 %v1966_v40, %v4794_v8  ;;  %v2064_v10 = vmul.f32 %v2062_v31, %v4890_v63  ;;  %v2063_v8 = vmul.f32 %v2062_v31, %v4872_v15 }
 0x2c3   : > { %v1605_v34 = vpop.permute.xlu0 %1604  ;;  %v1633_v27 = vpop.permute.xlu1 %1632 }
 0x2c4   : > { %v1609_v52 = vadd.f32 %v1605_v34, %v1551_v58  ;;  %v1637_v1 = vadd.f32 %v1633_v27, %v1581_v17  ;;  %v4824_v3 = vpop.permute.xlu2 %1713  ;;  %v2089_v58 = vld [vmem:[#allocation2 + $0x35] sm:$0xff]  ;;  %v2092_v17 = vstv %s4892_s28  ;;  %v2076_v34 = vstv %s3294_s11  ;;  %s4931_s28 = sld [smem:[#allocation4 + $0x8b]] }
 0x2c5   : > { %v2093_v27 = vmul.f32 %v2092_v17, %v2089_v58  ;;  %v2077_v5 = vmul.f32 %v2076_v34, %v4872_v15  ;;  %v2078_v40 = vmul.f32 %v2076_v34, %v4890_v63  ;;  %s4933_s11 = sld [smem:[#allocation4 + $0x8a]] }
 0x2c6   : > { %v4828_v35 = vadd.f32 %v1676_v43, %v1637_v1  ;;  %v4832_v4 = vadd.f32 %v1664_v59, %v1609_v52  ;;  %v4912_v1 = vld [vmem:[#allocation2 + $0x3d] sm:$0xff]  ;;  %v2106_v59 = vstv %s3296_s27  ;;  %s4950_s27 = sld [smem:[#allocation4 + $0x8c]] }
 0x2c7   : > { %v2107_v57 = vmul.f32 %v2106_v59, %v2089_v58  ;;  %v2148_v37 = vstv %s4922_s20  ;;  %s4993_s20 = sld [smem:[#allocation4 + $0x8f]] }
 0x2c9   : > { %1957 = vrot.lane.b32.xlu0 %v1953_v20, %s5576_s6  ;;  %1985 = vrot.lane.b32.xlu1 %v1981_v18, %s5577_s12  ;;  %v2108_v20 = vmul.f32 %v2106_v59, %v4912_v1  ;;  %v2094_v18 = vmul.f32 %v2092_v17, %v4912_v1 }
 0x2ca   : > { %1971 = vrot.lane.b32.xlu2 %v1967_v60, %s5577_s12  ;;  %v2176_v31 = vstv %s4931_s28  ;;  %s5010_s28 = sld [smem:[#allocation4 + $0x91]] }
 0x2cb   : > { %v1631_v12 = vpop.permute.xlu0 %1630  ;;  %v4844_v7 = vpop.permute.xlu1 %1685 }
 0x2cc   : > { %v1636_v9 = vadd.f32 %v1631_v12, %v1580_v47  ;;  %v4847_v61 = vpop.permute.xlu2 %1731  ;;  %v2134_v47 = vstv %s3298_s24  ;;  %v2120_v12 = vstv %s3297_s9  ;;  %s4960_s24 = sld [smem:[#allocation4 + $0x8e]] }
 0x2cd   : > { %s4968_s9 = sld [smem:[#allocation4 + $0x8d]] }
 0x2ce   : > { %v4855_v41 = vadd.f32 %v1675_v45, %v1636_v9  ;;  %v2135_v9 = vmul.f32 %v2134_v47, %v2089_v58  ;;  %v2121_v45 = vmul.f32 %v2120_v12, %v2089_v58 }
 0x2d1   : > { %1973 = vrot.lane.b32.xlu0 %v1968_v55, %s5577_s12  ;;  %2001 = vrot.lane.b32.xlu1 %v1996_v51, %s5577_s12 }
 0x2d2   : > { %1987 = vrot.lane.b32.xlu2 %v1982_v23, %s5577_s12  ;;  %v2122_v23 = vmul.f32 %v2120_v12, %v4912_v1  ;;  %v2220_v12 = vstv %s4960_s24  ;;  %s5032_s24 = sld [smem:[#allocation4 + $0x92]] }
 0x2d3   : > { %v1647_v50 = vpop.permute.xlu0 %1646  ;;  %v4865_v54 = vpop.permute.xlu1 %1701 }
 0x2d4   : > { %v1651_v44 = vadd.f32 %v1647_v50, %v1595_v2  ;;  %v4870_v6 = vpop.permute.xlu2 %1757  ;;  %v2150_v2 = vmul.f32 %v2148_v37, %v4912_v1 }
 0x2d6   : > { %v4876_v53 = vadd.f32 %v1658_v24, %v1651_v44  ;;  %v2136_v24 = vmul.f32 %v2134_v47, %v4912_v1 }
 0x2d8   : > { %v1692_v50 = vadd.f32 %v4792_v25, %v4876_v53 }
 0x2d9   : > { %1999 = vrot.lane.b32.xlu0 %v1995_v29, %s5577_s12  ;;  %2053 = vrot.lane.b32.xlu1 %v2049_v30, %s3601_s10  ;;  %v1691_v29 = vadd.f32 %v4844_v7, %v4809_v22 }
 0x2da   : > { %2013 = vrot.lane.b32.xlu2 %v2009_v48, %s5577_s12 }
 0x2db   : > { %v4884_v26 = vpop.permute.xlu0 %1699  ;;  %v4886_v46 = vpop.permute.xlu1 %1729 }
 0x2dc   : > { %v4888_v39 = vpop.permute.xlu2 %1773 }
 0x2e1   : > { %2015 = vrot.lane.b32.xlu0 %v2010_v16, %s5577_s12  ;;  %2069 = vrot.lane.b32.xlu1 %v2064_v10, %s3601_s10  ;;  %v2162_v16 = vstv %s4933_s11  ;;  %v2149_v10 = vmul.f32 %v2148_v37, %v2089_v58  ;;  %s5012_s11 = sld [smem:[#allocation4 + $0x90]] }
 0x2e2   : > { %2055 = vrot.lane.b32.xlu2 %v2050_v62, %s3601_s10  ;;  %v2177_v62 = vmul.f32 %v2176_v31, %v2089_v58  ;;  %v2163_v17 = vmul.f32 %v2162_v16, %v2089_v58  ;;  %v4966_v58 = vld [vmem:[#allocation2 + $0x3e] sm:$0xff] }
 0x2e3   : > { %v4900_v36 = vpop.permute.xlu0 %1715  ;;  %v1746_v28 = vpop.permute.xlu1 %1745 }
 0x2e4   : > { %v4902_v11 = vpop.permute.xlu2 %1799  ;;  %v1750_v44 = vadd.f32 %v1746_v28, %v1692_v50  ;;  %v1719_v28 = vadd.f32 %v4824_v3, %v4800_v21  ;;  %v1720_v50 = vadd.f32 %v4900_v36, %v4820_v38  ;;  %v2222_v38 = vmul.f32 %v2220_v12, %v4966_v58 }
 0x2e9   : > { %2067 = vrot.lane.b32.xlu0 %v2063_v8, %s3601_s10  ;;  %2097 = vrot.lane.b32.xlu1 %v2093_v27, %s3599_s22  ;;  %v1706_v27 = vadd.f32 %v4865_v54, %v4832_v4  ;;  %v1736_v4 = vadd.f32 %v4847_v61, %v4828_v35  ;;  %v2178_v54 = vmul.f32 %v2176_v31, %v4912_v1 }
 0x2ea   : > { %2081 = vrot.lane.b32.xlu2 %v2077_v5, %s3601_s10  ;;  %v1735_v35 = vadd.f32 %v4886_v46, %v4855_v41 }
 0x2eb   : > { %v1744_v43 = vpop.permute.xlu0 %1743  ;;  %v1772_v32 = vpop.permute.xlu1 %1771 }
 0x2ec   : > { %v4910_v52 = vpop.permute.xlu2 %1815  ;;  %v1749_v25 = vadd.f32 %v1744_v43, %v1691_v29  ;;  %v1777_v22 = vadd.f32 %v1772_v32, %v1719_v28  ;;  %v2192_v32 = vstv %s4950_s27  ;;  %s5025_s27 = sld [smem:[#allocation4 + $0x7e]] }
 0x2ee   : > { %v1805_v7 = vadd.f32 %v4902_v11, %v1749_v25  ;;  %v2164_v11 = vmul.f32 %v2162_v16, %v4912_v1 }
 0x2f1   : > { %2083 = vrot.lane.b32.xlu0 %v2078_v40, %s3601_s10  ;;  %2113 = vrot.lane.b32.xlu1 %v2108_v20, %s3602_s0  ;;  %v2194_v40 = vmul.f32 %v2192_v32, %v4966_v58 }
 0x2f2   : > { %2099 = vrot.lane.b32.xlu2 %v2094_v18, %s3599_s22 }
 0x2f3   : > { %v1760_v14 = vpop.permute.xlu0 %1759  ;;  %v1788_v60 = vpop.permute.xlu1 %1787 }
 0x2f4   : > { %v4920_v49 = vpop.permute.xlu2 %1843  ;;  %v1764_v43 = vadd.f32 %v1760_v14, %v1706_v27  ;;  %v1792_v20 = vadd.f32 %v1788_v60, %v1736_v4  ;;  %v2206_v60 = vstv %s4968_s9  ;;  %s5042_s9 = sld [smem:[#allocation4 + $0x98]] }
 0x2f6   : > { %v1820_v18 = vadd.f32 %v4910_v52, %v1764_v43  ;;  %v2276_v43 = vstv %s5032_s24  ;;  %s5085_s24 = sld [smem:[#allocation4 + $0x80]] }
 0x2f9   : > { %2111 = vrot.lane.b32.xlu0 %v2107_v57, %s3602_s0  ;;  %2139 = vrot.lane.b32.xlu1 %v2135_v9, %s3602_s0  ;;  %v1705_v57 = vadd.f32 %v4884_v26, %v4782_v56 }
 0x2fa   : > { %2125 = vrot.lane.b32.xlu2 %v2121_v45, %s3602_s0  ;;  %v4989_v45 = vld [vmem:[#allocation2 + $0x36] sm:$0xff] }
 0x2fb   : > { %v4927_v19 = vpop.permute.xlu0 %1785  ;;  %v4929_v55 = vpop.permute.xlu1 %1813  ;;  %v2193_v37 = vmul.f32 %v2192_v32, %v4989_v45  ;;  %v2221_v56 = vmul.f32 %v2220_v12, %v4989_v45  ;;  %v1763_v41 = vadd.f32 %v4870_v6, %v1705_v57  ;;  %v2207_v26 = vmul.f32 %v2206_v60, %v4989_v45 }
 0x2fc   : > { %v1860_v51 = vpop.permute.xlu2 %1859 }
 0x2fd   : > { %v1819_v46 = vadd.f32 %v4929_v55, %v1763_v41 }
 0x301   : > { %2127 = vrot.lane.b32.xlu0 %v2122_v23, %s3602_s0  ;;  %2155 = vrot.lane.b32.xlu1 %v2150_v2, %s3602_s0 }
 0x302   : > { %2141 = vrot.lane.b32.xlu2 %v2136_v24, %s3602_s0 }
 0x303   : > { %v1802_v42 = vpop.permute.xlu0 %1801  ;;  %v4944_v13 = vpop.permute.xlu1 %1831 }
 0x304   : > { %v1806_v30 = vadd.f32 %v1802_v42, %v1750_v44  ;;  %v1886_v48 = vpop.permute.xlu2 %1885  ;;  %v2234_v42 = vstv %s4993_s20  ;;  %s5049_s20 = sld [smem:[#allocation4 + $0x97]] }
 0x305   : > { %v2236_v29 = vmul.f32 %v2234_v42, %v4966_v58 }
 0x306   : > { %v4952_v53 = vadd.f32 %v1860_v51, %v1806_v30  ;;  %v1791_v51 = vadd.f32 %v4927_v19, %v1735_v35  ;;  %v1778_v30 = vadd.f32 %v4888_v39, %v1720_v50 }
 0x308   : > { %v1849_v19 = vadd.f32 %v4920_v49, %v1791_v51  ;;  %v2208_v49 = vmul.f32 %v2206_v60, %v4966_v58  ;;  %v1836_v36 = vadd.f32 %v4944_v13, %v1778_v30  ;;  %v2235_v13 = vmul.f32 %v2234_v42, %v4989_v45 }
 0x309   : > { %2153 = vrot.lane.b32.xlu0 %v2149_v10, %s3602_s0  ;;  %2181 = vrot.lane.b32.xlu1 %v2177_v62, %s3603_s8  ;;  %v2262_v10 = vstv %s5010_s28  ;;  %v2248_v62 = vstv %s5012_s11  ;;  %s5051_s28 = sld [smem:[#allocation4 + $0x7f]] }
 0x30a   : > { %2167 = vrot.lane.b32.xlu2 %v2163_v17, %s3603_s8  ;;  %v2263_v17 = vmul.f32 %v2262_v10, %v4989_v45  ;;  %s5063_s11 = sld [smem:[#allocation4 + $0x81]]  ;;  %v2317_v12 = vstv %s5049_s20 }
 0x30b   : > { %v1830_v34 = vpop.permute.xlu0 %1829  ;;  %v1858_v8 = vpop.permute.xlu1 %1857  ;;  %s5096_s20 = sld [smem:[#allocation4 + $0x9a]] }
 0x30c   : > { %v1835_v5 = vadd.f32 %v1830_v34, %v1777_v22  ;;  %v4964_v21 = vadd.f32 %v1858_v8, %v1805_v7  ;;  %v1902_v3 = vpop.permute.xlu2 %1901  ;;  %v2249_v22 = vmul.f32 %v2248_v62, %v4989_v45  ;;  %v2024_v34 = vstv %s5025_s27  ;;  %s5072_s27 = sld [smem:[#allocation4 + $0x99]] }
 0x30d   : > { %v2025_v32 = vmul.f32 %v2024_v34, %v4872_v15 }
 0x30e   : > { %v4971_v59 = vadd.f32 %v1886_v48, %v1835_v5 }
 0x30f   : > { %v2030_v57 = vstv %s5051_s28  ;;  %s5116_s28 = sld [smem:[#allocation4 + $0x9c]] }
 0x311   : > { %2169 = vrot.lane.b32.xlu0 %v2164_v11, %s3603_s8  ;;  %2199 = vrot.lane.b32.xlu1 %v2194_v40, %s3604_s30  ;;  %v2250_v11 = vmul.f32 %v2248_v62, %v4966_v58  ;;  %v2278_v40 = vmul.f32 %v2276_v43, %v4966_v58  ;;  %v2361_v62 = vstv %s5096_s20  ;;  %s5162_s20 = sld [smem:[#allocation4 + $0xa0]] }
 0x312   : > { %2183 = vrot.lane.b32.xlu2 %v2178_v54, %s3603_s8 }
 0x313   : > { %v1846_v14 = vpop.permute.xlu0 %1845  ;;  %v1874_v47 = vpop.permute.xlu1 %1873 }
 0x314   : > { %v1850_v61 = vadd.f32 %v1846_v14, %v1792_v20  ;;  %v4987_v1 = vadd.f32 %v1874_v47, %v1820_v18  ;;  %v1930_v9 = vpop.permute.xlu2 %1929  ;;  %v5069_v47 = vld [vmem:[#allocation2 + $0x48] sm:$0xff] }
 0x315   : > { %v2318_v60 = vmul.f32 %v2317_v12, %v5069_v47 }
 0x316   : > { %v4995_v52 = vadd.f32 %v1902_v3, %v1850_v61  ;;  %v2032_v61 = vmul.f32 %v2030_v57, %v4890_v63 }
 0x319   : > { %2197 = vrot.lane.b32.xlu0 %v2193_v37, %s3604_s30  ;;  %2225 = vrot.lane.b32.xlu1 %v2221_v56, %s3605_s13  ;;  %v2042_v56 = vstv %s5063_s11  ;;  %s5134_s11 = sld [smem:[#allocation4 + $0x9e]] }
 0x31a   : > { %2211 = vrot.lane.b32.xlu2 %v2207_v26, %s3604_s30 }
 0x31b   : > { %v1872_v23 = vpop.permute.xlu0 %1871  ;;  %v1900_v2 = vpop.permute.xlu1 %1899 }
 0x31c   : > { %v1877_v24 = vadd.f32 %v1872_v23, %v1819_v46  ;;  %v5008_v44 = vadd.f32 %v1900_v2, %v1849_v19  ;;  %v1946_v6 = vpop.permute.xlu2 %1945  ;;  %v5090_v46 = vld [vmem:[#allocation2 + $0x50] sm:$0xff]  ;;  %v2345_v19 = vstv %s5072_s27  ;;  %v2031_v23 = vmul.f32 %v2030_v57, %v4872_v15  ;;  %s5136_s27 = sld [smem:[#allocation4 + $0x9d]] }
 0x31e   : > { %v5015_v55 = vadd.f32 %v1930_v9, %v1877_v24  ;;  %v2277_v9 = vmul.f32 %v2276_v43, %v4989_v45  ;;  %v2043_v24 = vmul.f32 %v2042_v56, %v4872_v15 }
 0x31f   : > { %v2417_v57 = vstv %s5134_s11  ;;  %s5184_s11 = sld [smem:[#allocation4 + $0xa4]] }
 0x321   : > { %2213 = vrot.lane.b32.xlu0 %v2208_v49, %s3604_s30  ;;  %2241 = vrot.lane.b32.xlu1 %v2236_v29, %s3605_s13  ;;  %v2026_v49 = vmul.f32 %v2024_v34, %v4890_v63 }
 0x322   : > { %2227 = vrot.lane.b32.xlu2 %v2222_v38, %s3605_s13  ;;  %v2036_v38 = vstv %s5085_s24  ;;  %s5148_s24 = sld [smem:[#allocation4 + $0x9f]] }
 0x323   : > { %v1888_v48 = vpop.permute.xlu0 %1887  ;;  %v1916_v31 = vpop.permute.xlu1 %1915 }
 0x324   : > { %v1892_v16 = vadd.f32 %v1888_v48, %v1836_v36  ;;  %v5028_v25 = vadd.f32 %v1916_v31, %v4952_v53  ;;  %v1972_v39 = vpop.permute.xlu2 %1971 }
 0x326   : > { %v5034_v28 = vadd.f32 %v1946_v6, %v1892_v16  ;;  %v2347_v6 = vmul.f32 %v2345_v19, %v5090_v46  ;;  %v5113_v16 = vld [vmem:[#allocation2 + $0x49] sm:$0xff] }
 0x329   : > { %2239 = vrot.lane.b32.xlu0 %v2235_v13, %s3605_s13  ;;  %2267 = vrot.lane.b32.xlu1 %v2263_v17, %s3605_s13 }
 0x32a   : > { %2253 = vrot.lane.b32.xlu2 %v2249_v22, %s3605_s13  ;;  %v2346_v22 = vmul.f32 %v2345_v19, %v5069_v47 }
 0x32b   : > { %v1914_v53 = vpop.permute.xlu0 %1913  ;;  %v1944_v7 = vpop.permute.xlu1 %1943 }
 0x32c   : > { %v1919_v8 = vadd.f32 %v1914_v53, %v4964_v21  ;;  %v5047_v27 = vadd.f32 %v1944_v7, %v4971_v59  ;;  %v1988_v5 = vpop.permute.xlu2 %1987  ;;  %v2264_v21 = vmul.f32 %v2262_v10, %v4966_v58  ;;  %v2331_v58 = vstv %s5042_s9  ;;  %s5093_s9 = sld [smem:[#allocation4 + $0x9b]] }
 0x32d   : > { %v2333_v42 = vmul.f32 %v2331_v58, %v5090_v46  ;;  %v2038_v10 = vmul.f32 %v2036_v38, %v4890_v63 }
 0x32e   : > { %v1977_v3 = vadd.f32 %v1972_v39, %v1919_v8  ;;  %v2037_v8 = vmul.f32 %v2036_v38, %v4872_v15 }
 0x330   : > { %v5058_v59 = vadd.f32 %v2025_v32, %v1977_v3  ;;  %v5131_v32 = vld [vmem:[#allocation2 + $0x51] sm:$0xff] }
 0x331   : > { %2255 = vrot.lane.b32.xlu0 %v2250_v11, %s3605_s13  ;;  %2283 = vrot.lane.b32.xlu1 %v2278_v40, %s3606_s29  ;;  %v2389_v11 = vstv %s5116_s28  ;;  %s5173_s28 = sld [smem:[#allocation4 + $0xa2]] }
 0x332   : > { %2269 = vrot.lane.b32.xlu2 %v2264_v21, %s3605_s13  ;;  %v2375_v39 = vstv %s5093_s9  ;;  %v2363_v21 = vmul.f32 %v2361_v62, %v5131_v32  ;;  %v2391_v15 = vmul.f32 %v2389_v11, %v5131_v32  ;;  %s5160_s9 = sld [smem:[#allocation4 + $0xa1]] }
 0x333   : > { %v1932_v4 = vpop.permute.xlu0 %1931  ;;  %v1960_v54 = vpop.permute.xlu1 %1959  ;;  %v2376_v53 = vmul.f32 %v2375_v39, %v5113_v16 }
 0x334   : > { %v1936_v20 = vadd.f32 %v1932_v4, %v4987_v1  ;;  %v5067_v18 = vadd.f32 %v1960_v54, %v4995_v52  ;;  %v2014_v14 = vpop.permute.xlu2 %2013  ;;  %v2332_v1 = vmul.f32 %v2331_v58, %v5069_v47 }
 0x336   : > { %v1992_v35 = vadd.f32 %v1988_v5, %v1936_v20  ;;  %v2044_v20 = vmul.f32 %v2042_v56, %v4890_v63 }
 0x338   : > { %v5080_v51 = vadd.f32 %v2032_v61, %v1992_v35  ;;  %v2403_v35 = vstv %s5136_s27  ;;  %s5186_s27 = sld [smem:[#allocation4 + $0xa3]] }
 0x339   : > { %2281 = vrot.lane.b32.xlu0 %v2277_v9, %s3606_s29  ;;  %2336 = vrot.lane.b32.xlu1 %v2332_v1, %s3601_s10  ;;  %v2390_v9 = vmul.f32 %v2389_v11, %v5113_v16  ;;  %v2418_v1 = vmul.f32 %v2417_v57, %v5113_v16 }
 0x33a   : > { %2322 = vrot.lane.b32.xlu2 %v2318_v60, %s3601_s10  ;;  %v2404_v60 = vmul.f32 %v2403_v35, %v5113_v16 }
 0x33b   : > { %v1958_v52 = vpop.permute.xlu0 %1957  ;;  %v1986_v37 = vpop.permute.xlu1 %1985 }
 0x33c   : > { %v1963_v41 = vadd.f32 %v1958_v52, %v5008_v44  ;;  %v1991_v45 = vadd.f32 %v1986_v37, %v5015_v55  ;;  %v2056_v26 = vpop.permute.xlu2 %2055  ;;  %v2319_v44 = vmul.f32 %v2317_v12, %v5090_v46 }
 0x33e   : > { %v2019_v2 = vadd.f32 %v2014_v14, %v1963_v41  ;;  %v5098_v50 = vadd.f32 %v2031_v23, %v1991_v45  ;;  %v2431_v41 = vstv %s5148_s24  ;;  %v2419_v23 = vmul.f32 %v2417_v57, %v5131_v32  ;;  %s5199_s24 = sld [smem:[#allocation4 + $0xa5]] }
 0x33f   : > { %v2433_v19 = vmul.f32 %v2431_v41, %v5131_v32 }
 0x340   : > { %v5104_v55 = vadd.f32 %v2043_v24, %v2019_v2 }
 0x341   : > { %2324 = vrot.lane.b32.xlu0 %v2319_v44, %s3601_s10  ;;  %2352 = vrot.lane.b32.xlu1 %v2347_v6, %s3601_s10 }
 0x342   : > { %2338 = vrot.lane.b32.xlu2 %v2333_v42, %s3601_s10  ;;  %v5170_v42 = vld [vmem:[#allocation2 + $0x4a] sm:$0xff] }
 0x343   : > { %v1974_v29 = vpop.permute.xlu0 %1973  ;;  %v2002_v30 = vpop.permute.xlu1 %2001 }
 0x344   : > { %v1978_v36 = vadd.f32 %v1974_v29, %v5028_v25  ;;  %v2006_v48 = vadd.f32 %v2002_v30, %v5034_v28  ;;  %v2082_v31 = vpop.permute.xlu2 %2081  ;;  %v2362_v25 = vmul.f32 %v2361_v62, %v5113_v16  ;;  %v2432_v30 = vmul.f32 %v2431_v41, %v5113_v16 }
 0x346   : > { %v2028_v13 = vadd.f32 %v2026_v49, %v1978_v36  ;;  %v2040_v17 = vadd.f32 %v2038_v10, %v2006_v48  ;;  %v2445_v49 = vstv %s5162_s20  ;;  %s5213_s20 = sld [smem:[#allocation4 + $0xa6]] }
 0x347   : > { %v2446_v36 = vmul.f32 %v2445_v49, %v5113_v16 }
 0x348   : > { %v2060_v7 = vadd.f32 %v2056_v26, %v2028_v13  ;;  %v2405_v26 = vmul.f32 %v2403_v35, %v5131_v32  ;;  %v2475_v13 = vstv %s5173_s28  ;;  %s5229_s28 = sld [smem:[#allocation4 + $0xae]] }
 0x349   : > { %2350 = vrot.lane.b32.xlu0 %v2346_v22, %s3601_s10  ;;  %2380 = vrot.lane.b32.xlu1 %v2376_v53, %s3602_s0  ;;  %v5189_v22 = vld [vmem:[#allocation2 + $0x52] sm:$0xff]  ;;  %v2476_v11 = vmul.f32 %v2475_v13, %v5170_v42 }
 0x34a   : > { %2366 = vrot.lane.b32.xlu2 %v2362_v25, %s3599_s22  ;;  %v2477_v53 = vmul.f32 %v5189_v22, %v2475_v13 }
 0x34b   : > { %v2000_v28 = vpop.permute.xlu0 %1999  ;;  %v2054_v34 = vpop.permute.xlu1 %2053 }
 0x34c   : > { %v2005_v5 = vadd.f32 %v2000_v28, %v5047_v27  ;;  %v5129_v3 = vadd.f32 %v2054_v34, %v5058_v59  ;;  %v2100_v43 = vpop.permute.xlu2 %2099  ;;  %v2377_v27 = vmul.f32 %v2375_v39, %v5131_v32 }
 0x34e   : > { %v2039_v40 = vadd.f32 %v2037_v8, %v2005_v5 }
 0x350   : > { %v2087_v4 = vadd.f32 %v2082_v31, %v2039_v40 }
 0x351   : > { %2368 = vrot.lane.b32.xlu0 %v2363_v21, %s3599_s22  ;;  %2396 = vrot.lane.b32.xlu1 %v2391_v15, %s3602_s0 }
 0x352   : > { %2382 = vrot.lane.b32.xlu2 %v2377_v27, %s3602_s0 }
 0x353   : > { %v2016_v59 = vpop.permute.xlu0 %2015  ;;  %v2070_v54 = vpop.permute.xlu1 %2069 }
 0x354   : > { %v2020_v14 = vadd.f32 %v2016_v59, %v5067_v18  ;;  %v2074_v58 = vadd.f32 %v2070_v54, %v5080_v51  ;;  %v2126_v12 = vpop.permute.xlu2 %2125 }
 0x356   : > { %v2046_v61 = vadd.f32 %v2044_v20, %v2020_v14  ;;  %v2517_v20 = vstv %s5199_s24  ;;  %s5247_s24 = sld [smem:[#allocation4 + $0xb6]] }
 0x358   : > { %v2104_v52 = vadd.f32 %v2100_v43, %v2046_v61  ;;  %v2489_v43 = vstv %s5186_s27  ;;  %s5245_s27 = sld [smem:[#allocation4 + $0xba]] }
 0x359   : > { %2394 = vrot.lane.b32.xlu0 %v2390_v9, %s3602_s0  ;;  %2422 = vrot.lane.b32.xlu1 %v2418_v1, %s3602_s0  ;;  %v2490_v21 = vmul.f32 %v2489_v43, %v5170_v42 }
 0x35a   : > { %2408 = vrot.lane.b32.xlu2 %v2404_v60, %s3602_s0 }
 0x35b   : > { %v2068_v63 = vpop.permute.xlu0 %2067  ;;  %v2098_v18 = vpop.permute.xlu1 %2097 }
 0x35c   : > { %v2073_v51 = vadd.f32 %v2068_v63, %v5098_v50  ;;  %v2103_v37 = vadd.f32 %v2098_v18, %v5104_v55  ;;  %v2142_v56 = vpop.permute.xlu2 %2141  ;;  %v2461_v55 = vstv %s5160_s9  ;;  %s5211_s9 = sld [smem:[#allocation4 + $0xaa]]  ;;  %v2531_v18 = vstv %s5213_s20 }
 0x35d   : > { %v2462_v38 = vmul.f32 %v2461_v55, %v5170_v42  ;;  %v2463_v25 = vmul.f32 %v5189_v22, %v2461_v55  ;;  %v2532_v41 = vmul.f32 %v2531_v18, %v5170_v42  ;;  %s5258_s20 = sld [smem:[#allocation4 + $0x96]]  ;;  %v2729_v13 = vstv %s5247_s24 }
 0x35e   : > { %v2131_v45 = vadd.f32 %v2126_v12, %v2073_v51  ;;  %v2519_v12 = vmul.f32 %v5189_v22, %v2517_v20  ;;  %s5318_s24 = sld [smem:[#allocation4 + $0xa8]] }
 0x361   : > { %2410 = vrot.lane.b32.xlu0 %v2405_v26, %s3602_s0  ;;  %2438 = vrot.lane.b32.xlu1 %v2433_v19, %s3603_s8 }
 0x362   : > { %2424 = vrot.lane.b32.xlu2 %v2419_v23, %s3602_s0  ;;  %v2589_v63 = vstv %s5211_s9  ;;  %s5250_s9 = sld [smem:[#allocation4 + $0x95]] }
 0x363   : > { %v2084_v2 = vpop.permute.xlu0 %2083  ;;  %v2114_v50 = vpop.permute.xlu1 %2113 }
 0x364   : > { %v2088_v24 = vadd.f32 %v2084_v2, %v2040_v17  ;;  %v2118_v44 = vadd.f32 %v2114_v50, %v2060_v7  ;;  %v2168_v6 = vpop.permute.xlu2 %2167  ;;  %v2447_v17 = vmul.f32 %v2445_v49, %v5131_v32  ;;  %v5243_v50 = vld [vmem:[#allocation2 + $0x53] sm:$0xff] }
 0x365   : > { %v2591_v49 = vmul.f32 %v2589_v63, %v5243_v50 }
 0x366   : > { %v2146_v29 = vadd.f32 %v2142_v56, %v2088_v24 }
 0x369   : > { %2436 = vrot.lane.b32.xlu0 %v2432_v30, %s3603_s8  ;;  %2466 = vrot.lane.b32.xlu1 %v2462_v38, %s3604_s30 }
 0x36a   : > { %2450 = vrot.lane.b32.xlu2 %v2446_v36, %s3603_s8 }
 0x36b   : > { %v2112_v48 = vpop.permute.xlu0 %2111  ;;  %v2140_v31 = vpop.permute.xlu1 %2139 }
 0x36c   : > { %v2117_v39 = vadd.f32 %v2112_v48, %v5129_v3  ;;  %v2145_v10 = vadd.f32 %v2140_v31, %v2087_v4  ;;  %v2184_v62 = vpop.permute.xlu2 %2183  ;;  %v2503_v3 = vstv %s5184_s11  ;;  %s5238_s11 = sld [smem:[#allocation4 + $0x94]] }
 0x36d   : > { %v2504_v40 = vmul.f32 %v2503_v3, %v5170_v42  ;;  %v2505_v57 = vmul.f32 %v5189_v22, %v2503_v3 }
 0x36e   : > { %v2173_v16 = vadd.f32 %v2168_v6, %v2117_v39  ;;  %v2533_v6 = vmul.f32 %v5189_v22, %v2531_v18  ;;  %v5264_v39 = vld [vmem:[#allocation2 + $0x4d] sm:$0xff] }
 0x371   : > { %2452 = vrot.lane.b32.xlu0 %v2447_v17, %s3603_s8  ;;  %2482 = vrot.lane.b32.xlu1 %v2477_v53, %s3604_s30 }
 0x372   : > { %2468 = vrot.lane.b32.xlu2 %v2463_v25, %s3604_s30 }
 0x373   : > { %v2128_v7 = vpop.permute.xlu0 %2127  ;;  %v2156_v28 = vpop.permute.xlu1 %2155 }
 0x374   : > { %v2132_v34 = vadd.f32 %v2128_v7, %v2074_v58  ;;  %v5196_v8 = vadd.f32 %v2156_v28, %v2104_v52  ;;  %v2212_v5 = vpop.permute.xlu2 %2211  ;;  %v2491_v58 = vmul.f32 %v5189_v22, %v2489_v43  ;;  %v5225_v52 = vld [vmem:[#allocation2 + $0x4b] sm:$0xff]  ;;  %v2305_v22 = vstv %s5250_s9  ;;  %s5341_s9 = sld [smem:[#allocation4 + $0xb4]] }
 0x375   : > { %v2590_v56 = vmul.f32 %v2589_v63, %v5225_v52  ;;  %v2730_v7 = vmul.f32 %v2729_v13, %v5264_v39  ;;  %v2311_v28 = vstv %s5258_s20  ;;  %s5343_s20 = sld [smem:[#allocation4 + $0xad]] }
 0x376   : > { %v2188_v32 = vadd.f32 %v2184_v62, %v2132_v34  ;;  %v2306_v34 = vmul.f32 %v2305_v22, %v5069_v47 }
 0x379   : > { %2480 = vrot.lane.b32.xlu0 %v2476_v11, %s3604_s30  ;;  %2508 = vrot.lane.b32.xlu1 %v2504_v40, %s3605_s13  ;;  %v5286_v40 = vld [vmem:[#allocation2 + $0x55] sm:$0xff] }
 0x37a   : > { %2494 = vrot.lane.b32.xlu2 %v2490_v21, %s3605_s13  ;;  %v5288_v21 = vld [vmem:[#allocation2 + $0x56] sm:$0xff] }
 0x37b   : > { %v2154_v15 = vpop.permute.xlu0 %2153  ;;  %v2182_v27 = vpop.permute.xlu1 %2181 }
 0x37c   : > { %v2159_v4 = vadd.f32 %v2154_v15, %v2103_v37  ;;  %v5208_v59 = vadd.f32 %v2182_v27, %v2131_v45  ;;  %v2228_v54 = vpop.permute.xlu2 %2227  ;;  %v2518_v37 = vmul.f32 %v2517_v20, %v5170_v42  ;;  %v2312_v15 = vmul.f32 %v2311_v28, %v5069_v47 }
 0x37e   : > { %v5215_v14 = vadd.f32 %v2212_v5, %v2159_v4 }
 0x381   : > { %2496 = vrot.lane.b32.xlu0 %v2491_v58, %s3605_s13  ;;  %2524 = vrot.lane.b32.xlu1 %v2519_v12, %s3605_s13 }
 0x382   : > { %2510 = vrot.lane.b32.xlu2 %v2505_v57, %s3605_s13 }
 0x383   : > { %v2170_v35 = vpop.permute.xlu0 %2169  ;;  %v2200_v61 = vpop.permute.xlu1 %2199 }
 0x384   : > { %v2174_v9 = vadd.f32 %v2170_v35, %v2118_v44  ;;  %v5223_v1 = vadd.f32 %v2200_v61, %v2146_v29  ;;  %v2254_v60 = vpop.permute.xlu2 %2253  ;;  %v2645_v44 = vstv %s5229_s28  ;;  %v2299_v29 = vstv %s5238_s11  ;;  %s5269_s28 = sld [smem:[#allocation4 + $0xbe]] }
 0x385   : > { %v2647_v55 = vmul.f32 %v2645_v44, %v5243_v50  ;;  %v2301_v62 = vmul.f32 %v2299_v29, %v5090_v46  ;;  %v2646_v53 = vmul.f32 %v2645_v44, %v5225_v52  ;;  %s5278_s11 = sld [smem:[#allocation4 + $0x93]]  ;;  %v2300_v27 = vmul.f32 %v2299_v29, %v5069_v47 }
 0x386   : > { %v5231_v51 = vadd.f32 %v2228_v54, %v2174_v9  ;;  %v2313_v35 = vmul.f32 %v2311_v28, %v5090_v46 }
 0x389   : > { %2522 = vrot.lane.b32.xlu0 %v2518_v37, %s3605_s13  ;;  %2594 = vrot.lane.b32.xlu1 %v2590_v56, %s5576_s6  ;;  %v5309_v56 = vld [vmem:[#allocation2 + $0x4e] sm:$0xff] }
 0x38a   : > { %2536 = vrot.lane.b32.xlu2 %v2532_v41, %s3605_s13  ;;  %v2843_v54 = vstv %s5269_s28  ;;  %s5357_s28 = sld [smem:[#allocation4 + $0xb5]] }
 0x38b   : > { %v2198_v45 = vpop.permute.xlu0 %2197  ;;  %v2226_v26 = vpop.permute.xlu1 %2225  ;;  %v2293_v57 = vstv %s5278_s11  ;;  %s5371_s11 = sld [smem:[#allocation4 + $0xb8]] }
 0x38c   : > { %v2203_v19 = vadd.f32 %v2198_v45, %v2145_v10  ;;  %v5241_v23 = vadd.f32 %v2226_v26, %v2173_v16  ;;  %v2270_v2 = vpop.permute.xlu2 %2269  ;;  %v2785_v10 = vstv %s5245_s27  ;;  %s5294_s27 = sld [smem:[#allocation4 + $0xc2]]  ;;  %v2295_v41 = vmul.f32 %v2293_v57, %v5090_v46 }
 0x38d   : > { %v2786_v25 = vmul.f32 %v2785_v10, %v5264_v39  ;;  %v2787_v12 = vmul.f32 %v2785_v10, %v5286_v40  ;;  %v2307_v45 = vmul.f32 %v2305_v22, %v5090_v46  ;;  %v2617_v22 = vstv %s5332_s7  ;;  %s3355_s7 = sld [smem:[#allocation4 + $0xc1]] }
 0x38e   : > { %v2259_v24 = vadd.f32 %v2254_v60, %v2203_v19 }
 0x390   : > { %v5282_v3 = vadd.f32 %v2306_v34, %v2259_v24  ;;  %v2546_v24 = vmul.f32 %v2545_v33, %v5170_v42 }
 0x391   : > { %2538 = vrot.lane.b32.xlu0 %v2533_v6, %s3605_s13  ;;  %2652 = vrot.lane.b32.xlu1 %v2647_v55, %s5577_s12  ;;  %v2294_v55 = vmul.f32 %v2293_v57, %v5069_v47 }
 0x392   : > { %2596 = vrot.lane.b32.xlu2 %v2591_v49, %s5576_s6  ;;  %v2899_v19 = vstv %s5294_s27  ;;  %s5386_s27 = sld [smem:[#allocation4 + $0xbc]] }
 0x393   : > { %v2214_v30 = vpop.permute.xlu0 %2213  ;;  %v2242_v38 = vpop.permute.xlu1 %2241  ;;  %v2900_v44 = vmul.f32 %v2899_v19, %v5309_v56  ;;  %v2901_v33 = vmul.f32 %v2899_v19, %v5288_v21 }
 0x394   : > { %v2218_v36 = vadd.f32 %v2214_v30, %v5196_v8  ;;  %v2246_v48 = vadd.f32 %v2242_v38, %v2188_v32  ;;  %v5262_v31 = vpop.permute.xlu2 %2322 }
 0x396   : > { %v2274_v16 = vadd.f32 %v2270_v2, %v2218_v36  ;;  %v2303_v17 = vadd.f32 %v2301_v62, %v2246_v48  ;;  %v2561_v36 = vstv %s5318_s24  ;;  %s3351_s24 = sld [smem:[#allocation4 + $0xbd]] }
 0x397   : > { %v2562_v10 = vmul.f32 %v2561_v36, %v5225_v52 }
 0x398   : > { %v5305_v60 = vadd.f32 %v2313_v35, %v2274_v16  ;;  %v5367_v35 = vld [vmem:[#allocation2 + $0x54] sm:$0xff] }
 0x399   : > { %2650 = vrot.lane.b32.xlu0 %v2646_v53, %s5577_s12  ;;  %2790 = vrot.lane.b32.xlu1 %v2786_v25, %s3602_s0  ;;  %v2619_v25 = vmul.f32 %v2617_v22, %v5243_v50 }
 0x39a   : > { %2734 = vrot.lane.b32.xlu2 %v2730_v7, %s3599_s22 }
 0x39b   : > { %v2240_v8 = vpop.permute.xlu0 %2239  ;;  %v2268_v5 = vpop.permute.xlu1 %2267 }
 0x39c   : > { %v2245_v43 = vadd.f32 %v2240_v8, %v5208_v59  ;;  %v2273_v32 = vadd.f32 %v2268_v5, %v5215_v14  ;;  %v2339_v11 = vpop.permute.xlu2 %2338  ;;  %v2731_v59 = vmul.f32 %v2729_v13, %v5286_v40  ;;  %v2845_v14 = vmul.f32 %v2843_v54, %v5288_v21 }
 0x39d   : > { %v5292_v4 = vadd.f32 %v2339_v11, %v2303_v17  ;;  %v2699_v11 = vstv %s5341_s9  ;;  %s5420_s9 = sld [smem:[#allocation4 + $0xb3]] }
 0x39e   : > { %v2314_v20 = vadd.f32 %v2312_v15, %v2273_v32  ;;  %v2302_v58 = vadd.f32 %v2300_v27, %v2245_v43  ;;  %v5353_v32 = vld [vmem:[#allocation2 + $0x4c] sm:$0xff]  ;;  %v2631_v15 = vstv %s5343_s20  ;;  %s5435_s20 = sld [smem:[#allocation4 + $0xbf]] }
 0x3a1   : > { %2736 = vrot.lane.b32.xlu0 %v2731_v59, %s3599_s22  ;;  %2850 = vrot.lane.b32.xlu1 %v2845_v14, %s3604_s30  ;;  %s5311_s22 = sld [smem:[#allocation4 + $0xa9]] }
 0x3a2   : > { %2792 = vrot.lane.b32.xlu2 %v2787_v12, %s3602_s0 }
 0x3a3   : > { %v2256_v61 = vpop.permute.xlu0 %2255  ;;  %v2284_v9 = vpop.permute.xlu1 %2283 }
 0x3a4   : > { %v2260_v63 = vadd.f32 %v2256_v61, %v5223_v1  ;;  %v2288_v18 = vadd.f32 %v2284_v9, %v5231_v51  ;;  %v2367_v37 = vpop.permute.xlu2 %2366  ;;  %v2844_v51 = vmul.f32 %v2843_v54, %v5309_v56  ;;  %v2618_v54 = vmul.f32 %v2617_v22, %v5225_v52 }
 0x3a5   : > { %v5315_v26 = vadd.f32 %v2367_v37, %v2314_v20  ;;  %v2700_v20 = vmul.f32 %v2699_v11, %v5353_v32  ;;  %v2713_v61 = vstv %s5357_s28  ;;  %s3340_s28 = sld [smem:[#allocation4 + $0xb2]] }
 0x3a6   : > { %v2297_v2 = vadd.f32 %v2295_v41, %v2288_v18  ;;  %v2309_v1 = vadd.f32 %v2307_v45, %v2260_v63  ;;  %v2633_v63 = vmul.f32 %v2631_v15, %v5243_v50  ;;  %v2715_v18 = vmul.f32 %v2713_v61, %v5367_v35 }
 0x3a7   : > { %v2575_v38 = vstv %s5311_s22  ;;  %s5394_s22 = sld [smem:[#allocation4 + $0xc0]] }
 0x3a8   : > { %v2576_v42 = vmul.f32 %v2575_v38, %v5225_v52  ;;  %v2577_v7 = vmul.f32 %v2575_v38, %v5243_v50 }
 0x3a9   : > { %2848 = vrot.lane.b32.xlu0 %v2844_v51, %s3604_s30  ;;  %2550 = vrot.lane.b32.xlu1 %v2546_v24, %s3606_s29  ;;  %v2714_v51 = vmul.f32 %v2713_v61, %v5353_v32 }
 0x3aa   : > { %2904 = vrot.lane.b32.xlu2 %v2900_v44, %s3605_s13 }
 0x3ab   : > { %v2282_v46 = vpop.permute.xlu0 %2281  ;;  %v2337_v6 = vpop.permute.xlu1 %2336 }
 0x3ac   : > { %v2287_v49 = vadd.f32 %v2282_v46, %v5241_v23  ;;  %v2342_v29 = vadd.f32 %v2337_v6, %v2302_v58  ;;  %v2383_v30 = vpop.permute.xlu2 %2382  ;;  %v2632_v58 = vmul.f32 %v2631_v15, %v5225_v52 }
 0x3ae   : > { %v2296_v48 = vadd.f32 %v2294_v55, %v2287_v49 }
 0x3b0   : > { %v2328_v62 = vadd.f32 %v5262_v31, %v2296_v48  ;;  %v2563_v31 = vmul.f32 %v2561_v36, %v5243_v50 }
 0x3b1   : > { %2906 = vrot.lane.b32.xlu0 %v2901_v33, %s3605_s13  ;;  %2580 = vrot.lane.b32.xlu1 %v2576_v42, %s5576_s6 }
 0x3b2   : > { %2566 = vrot.lane.b32.xlu2 %v2562_v10, %s5576_s6 }
 0x3b3   : > { %v2325_v47 = vpop.permute.xlu0 %2324  ;;  %v2353_v23 = vpop.permute.xlu1 %2352 }
 0x3b4   : > { %v2329_v13 = vadd.f32 %v2325_v47, %v2297_v2  ;;  %v2357_v16 = vadd.f32 %v2353_v23, %v2309_v1  ;;  %v2409_v17 = vpop.permute.xlu2 %2408  ;;  %v2757_v2 = vstv %s5371_s11  ;;  %s3333_s11 = sld [smem:[#allocation4 + $0xab]] }
 0x3b5   : > { %v2758_v44 = vmul.f32 %v2757_v2, %v5264_v39  ;;  %v2759_v36 = vmul.f32 %v2757_v2, %v5286_v40 }
 0x3b6   : > { %v2387_v53 = vadd.f32 %v2383_v30, %v2329_v13  ;;  %v2813_v30 = vstv %s5386_s27  ;;  %v2871_v13 = vstv %s5394_s22  ;;  %s5460_s27 = sld [smem:[#allocation4 + $0xb1]] }
 0x3b7   : > { %v2815_v48 = vmul.f32 %v2813_v30, %v5286_v40  ;;  %v2872_v22 = vmul.f32 %v2871_v13, %v5309_v56  ;;  %s3338_s22 = sld [smem:[#allocation4 + $0xb0]] }
 0x3b9   : > { %2568 = vrot.lane.b32.xlu0 %v2563_v31, %s5576_s6  ;;  %2624 = vrot.lane.b32.xlu1 %v2619_v25, %s5577_s12 }
 0x3ba   : > { %2582 = vrot.lane.b32.xlu2 %v2577_v7, %s5576_s6  ;;  %s5369_s6 = sld [smem:[#allocation4 + $0xb9]] }
 0x3bb   : > { %v2351_v28 = vpop.permute.xlu0 %2350  ;;  %v2381_v34 = vpop.permute.xlu1 %2380 }
 0x3bc   : > { %v2356_v8 = vadd.f32 %v2351_v28, %v5282_v3  ;;  %v2386_v5 = vadd.f32 %v2381_v34, %v2328_v62  ;;  %v2425_v43 = vpop.permute.xlu2 %2424  ;;  %v2885_v34 = vstv %s3355_s7 }
 0x3be   : > { %v2414_v27 = vadd.f32 %v2409_v17, %v2356_v8  ;;  %v2814_v17 = vmul.f32 %v2813_v30, %v5264_v39 }
 0x3c0   : > { %v2771_v19 = vstv %s5369_s6  ;;  %s5446_s6 = sld [smem:[#allocation4 + $0xc3]] }
 0x3c1   : > { %2622 = vrot.lane.b32.xlu0 %v2618_v54, %s5577_s12  ;;  %2704 = vrot.lane.b32.xlu1 %v2700_v20, %s3601_s10  ;;  %v2772_v24 = vmul.f32 %v2771_v19, %v5264_v39  ;;  %v2773_v33 = vmul.f32 %v2771_v19, %v5286_v40  ;;  %v2886_v20 = vmul.f32 %v2885_v34, %v5309_v56 }
 0x3c2   : > { %2636 = vrot.lane.b32.xlu2 %v2632_v58, %s5577_s12 }
 0x3c3   : > { %v2369_v3 = vpop.permute.xlu0 %2368  ;;  %v2397_v59 = vpop.permute.xlu1 %2396 }
 0x3c4   : > { %v2373_v14 = vadd.f32 %v2369_v3, %v5305_v60  ;;  %v2401_v12 = vadd.f32 %v2397_v59, %v5292_v4  ;;  %v2451_v57 = vpop.permute.xlu2 %2450  ;;  %v2701_v60 = vmul.f32 %v2699_v11, %v5367_v35 }
 0x3c6   : > { %v5374_v9 = vadd.f32 %v2425_v43, %v2373_v14  ;;  %v2873_v43 = vmul.f32 %v2871_v13, %v5288_v21  ;;  %v2913_v13 = vstv %s5446_s6 }
 0x3c9   : > { %2638 = vrot.lane.b32.xlu0 %v2633_v63, %s5577_s12  ;;  %2720 = vrot.lane.b32.xlu1 %v2715_v18, %s3601_s10 }
 0x3ca   : > { %2706 = vrot.lane.b32.xlu2 %v2701_v60, %s3601_s10 }
 0x3cb   : > { %v2395_v4 = vpop.permute.xlu0 %2394  ;;  %v5382_v37 = vpop.permute.xlu1 %2422 }
 0x3cc   : > { %v2400_v41 = vadd.f32 %v2395_v4, %v2342_v29  ;;  %v2469_v45 = vpop.permute.xlu2 %2468  ;;  %v2428_v19 = vadd.f32 %v5382_v37, %v5315_v26 }
 0x3ce   : > { %v2456_v1 = vadd.f32 %v2451_v57, %v2400_v41  ;;  %v2685_v57 = vstv %s5420_s9 }
 0x3cf   : > { %v2686_v61 = vmul.f32 %v2685_v57, %v5353_v32 }
 0x3d1   : > { %2718 = vrot.lane.b32.xlu0 %v2714_v51, %s3601_s10  ;;  %2776 = vrot.lane.b32.xlu1 %v2772_v24, %s3602_s0 }
 0x3d2   : > { %2762 = vrot.lane.b32.xlu2 %v2758_v44, %s3602_s0 }
 0x3d3   : > { %v2411_v46 = vpop.permute.xlu0 %2410  ;;  %v2439_v6 = vpop.permute.xlu1 %2438 }
 0x3d4   : > { %v2415_v55 = vadd.f32 %v2411_v46, %v2357_v16  ;;  %v2443_v49 = vadd.f32 %v2439_v6, %v2387_v53  ;;  %v2495_v29 = vpop.permute.xlu2 %2494  ;;  %v2829_v16 = vstv %s3351_s24  ;;  %v2857_v6 = vstv %s5435_s20  ;;  %s3349_s24 = sld [smem:[#allocation4 + $0xbb]] }
 0x3d5   : > { %v2830_v53 = vmul.f32 %v2829_v16, %v5309_v56  ;;  %v2831_v8 = vmul.f32 %v2829_v16, %v5288_v21  ;;  %v2915_v16 = vmul.f32 %v2913_v13, %v5288_v21 }
 0x3d6   : > { %v2473_v38 = vadd.f32 %v2469_v45, %v2415_v55 }
 0x3d9   : > { %2764 = vrot.lane.b32.xlu0 %v2759_v36, %s3602_s0  ;;  %2820 = vrot.lane.b32.xlu1 %v2815_v48, %s3603_s8 }
 0x3da   : > { %2778 = vrot.lane.b32.xlu2 %v2773_v33, %s3602_s0 }
 0x3db   : > { %v2437_v42 = vpop.permute.xlu0 %2436  ;;  %v2467_v10 = vpop.permute.xlu1 %2466 }
 0x3dc   : > { %v2442_v62 = vadd.f32 %v2437_v42, %v2386_v5  ;;  %v2472_v47 = vadd.f32 %v2467_v10, %v2414_v27  ;;  %v5403_v23 = vpop.permute.xlu2 %2510  ;;  %v2887_v5 = vmul.f32 %v2885_v34, %v5288_v21 }
 0x3de   : > { %v2500_v41 = vadd.f32 %v2495_v29, %v2442_v62  ;;  %v2679_v29 = vstv %s3340_s28 }
 0x3df   : > { %v2681_v26 = vmul.f32 %v2679_v29, %v5367_v35  ;;  %v2680_v42 = vmul.f32 %v2679_v29, %v5353_v32 }
 0x3e1   : > { %2818 = vrot.lane.b32.xlu0 %v2814_v17, %s3603_s8  ;;  %2876 = vrot.lane.b32.xlu1 %v2872_v22, %s3605_s13 }
 0x3e2   : > { %2834 = vrot.lane.b32.xlu2 %v2830_v53, %s3604_s30 }
 0x3e3   : > { %v2453_v31 = vpop.permute.xlu0 %2452  ;;  %v2483_v25 = vpop.permute.xlu1 %2482 }
 0x3e4   : > { %v2457_v7 = vadd.f32 %v2453_v31, %v2401_v12  ;;  %v2537_v28 = vpop.permute.xlu2 %2536  ;;  %v2487_v2 = vadd.f32 %v2483_v25, %v5374_v9 }
 0x3e6   : > { %v2515_v33 = vadd.f32 %v5403_v23, %v2457_v7 }
 0x3e9   : > { %2836 = vrot.lane.b32.xlu0 %v2831_v8, %s3604_s30  ;;  %2892 = vrot.lane.b32.xlu1 %v2887_v5, %s3605_s13  ;;  %s5429_s30 = sld [smem:[#allocation4 + $0xb7]] }
 0x3ea   : > { %2878 = vrot.lane.b32.xlu2 %v2873_v43, %s3605_s13 }
 0x3eb   : > { %v2481_v11 = vpop.permute.xlu0 %2480  ;;  %v2509_v15 = vpop.permute.xlu1 %2508 }
 0x3ec   : > { %v5418_v27 = vadd.f32 %v2509_v15, %v2456_v1  ;;  %v2597_v54 = vpop.permute.xlu2 %2596  ;;  %v2486_v24 = vadd.f32 %v2481_v11, %v2428_v19 }
 0x3ee   : > { %v2542_v30 = vadd.f32 %v2537_v28, %v2486_v24 }
 0x3ef   : > { %v2743_v4 = vstv %s5429_s30 }
 0x3f0   : > { %v2745_v45 = vmul.f32 %v2743_v4, %v5286_v40 }
 0x3f1   : > { %2890 = vrot.lane.b32.xlu0 %v2886_v20, %s3605_s13  ;;  %2552 = vrot.lane.b32.xlu1 %v4030_v0, %s3606_s29 }
 0x3f3   : > { %v2497_v58 = vpop.permute.xlu0 %2496  ;;  %v2525_v3 = vpop.permute.xlu1 %2524 }
 0x3f4   : > { %v5426_v59 = vadd.f32 %v2497_v58, %v2443_v49  ;;  %v2529_v14 = vadd.f32 %v2525_v3, %v2473_v38  ;;  %v2735_v12 = vpop.permute.xlu2 %2734  ;;  %v2858_v49 = vmul.f32 %v2857_v6, %v5309_v56  ;;  %v2603_v3 = vstv %s3333_s11 }
 0x3f9   : > { %2690 = vrot.lane.b32.xlu1 %v2686_v61, %s3601_s10 }
 0x3fb   : > { %v2523_v63 = vpop.permute.xlu0 %2522  ;;  %v2595_v18 = vpop.permute.xlu1 %2594 }
 0x3fc   : > { %v2528_v60 = vadd.f32 %v2523_v63, %v2472_v47  ;;  %v2793_v0 = vpop.permute.xlu2 %2792  ;;  %v2600_v9 = vadd.f32 %v2595_v18, %v2542_v30 }
 0x401   : > { %2750 = vrot.lane.b32.xlu1 %v2745_v45, %s3602_s0 }
 0x403   : > { %v2539_v1 = vpop.permute.xlu0 %2538  ;;  %v2653_v51 = vpop.permute.xlu1 %2652 }
 0x404   : > { %v2543_v44 = vadd.f32 %v2539_v1, %v2487_v2  ;;  %v2905_v46 = vpop.permute.xlu2 %2904 }
 0x406   : > { %v2601_v55 = vadd.f32 %v2597_v54, %v2543_v44 }
 0x408   : > { %v2657_v38 = vadd.f32 %v2653_v51, %v2601_v55  ;;  %v2667_v51 = vstv %s3338_s22 }
 0x409   : > { %2862 = vrot.lane.b32.xlu1 %v2858_v49, %s3605_s13  ;;  %v2669_v24 = vmul.f32 %v2667_v51, %v5367_v35 }
 0x40a   : > { %v2683_v37 = vadd.f32 %v2681_v26, %v2657_v38  ;;  %v2799_v38 = vstv %s3349_s24  ;;  %v2668_v26 = vmul.f32 %v2667_v51, %v5353_v32 }
 0x40b   : > { %v2651_v36 = vpop.permute.xlu0 %2650  ;;  %v2791_v48 = vpop.permute.xlu1 %2790 }
 0x40c   : > { %v2656_v10 = vadd.f32 %v2651_v36, %v2600_v9  ;;  %v2567_v62 = vpop.permute.xlu2 %2566  ;;  %v2744_v9 = vmul.f32 %v2743_v4, %v5264_v39  ;;  %v2859_v4 = vmul.f32 %v2857_v6, %v5288_v21 }
 0x40d   : > { %v2572_v49 = vadd.f32 %v2567_v62, %v5418_v27 }
 0x40e   : > { %v2682_v47 = vadd.f32 %v2680_v42, %v2656_v10  ;;  %v2801_v10 = vmul.f32 %v2799_v38, %v5286_v40 }
 0x410   : > { %v2740_v25 = vadd.f32 %v2735_v12, %v2682_v47 }
 0x411   : > { %2920 = vrot.lane.b32.xlu1 %v2915_v16, %s3606_s29 }
 0x412   : > { %v2796_v28 = vadd.f32 %v2791_v48, %v2740_v25 }
 0x413   : > { %v2737_v17 = vpop.permute.xlu0 %2736  ;;  %v2851_v22 = vpop.permute.xlu1 %2850 }
 0x414   : > { %v2583_v53 = vpop.permute.xlu2 %2582  ;;  %v2741_v34 = vadd.f32 %v2737_v17, %v2683_v37 }
 0x415   : > { %v2587_v31 = vadd.f32 %v2583_v53, %v2529_v14  ;;  %v2673_v14 = vstv %s5460_s27  ;;  %s3528_s27 = scalar_lea.hbm %s5563_s3, 128 }
 0x416   : > { %v2797_v11 = vadd.f32 %v2793_v0, %v2741_v34  ;;  %v2674_v0 = vmul.f32 %v2673_v14, %v5353_v32  ;;  %v2675_v42 = vmul.f32 %v2673_v14, %v5367_v35 }
 0x418   : > { %v2855_v54 = vadd.f32 %v2851_v22, %v2797_v11  ;;  %v2914_v22 = vmul.f32 %v2913_v13, %v5309_v56 }
 0x41b   : > { %v2849_v23 = vpop.permute.xlu0 %2848  ;;  %v2551_v7 = vpop.permute.xlu1 %2550 }
 0x41c   : > { %v2854_v8 = vadd.f32 %v2849_v23, %v2796_v28  ;;  %v5462_v5 = vadd.f32 %v2551_v7, %v2500_v41  ;;  %v2637_v43 = vpop.permute.xlu2 %2636  ;;  %v2604_v41 = vmul.f32 %v2603_v3, %v5225_v52  ;;  %v2687_v52 = vmul.f32 %v2685_v57, %v5367_v35 }
 0x41d   : > { %v2800_v57 = vmul.f32 %v2799_v38, %v5264_v39 }
 0x41e   : > { %v2910_v15 = vadd.f32 %v2905_v46, %v2854_v8 }
 0x420   : > { %2938 = vrot.lane.b32.xlu2 %v2910_v15, %s3602_s0 }
 0x423   : > { %v2907_v20 = vpop.permute.xlu0 %2906  ;;  %v2581_v58 = vpop.permute.xlu1 %2580 }
 0x424   : > { %v2911_v12 = vadd.f32 %v2907_v20, %v2855_v54  ;;  %v2586_v61 = vadd.f32 %v2581_v58, %v2528_v60  ;;  %v2707_v18 = vpop.permute.xlu2 %2706  ;;  %v2605_v60 = vmul.f32 %v2603_v3, %v5243_v50 }
 0x426   : > { %v2642_v63 = vadd.f32 %v2637_v43, %v2586_v61  ;;  %2940 = vrot.lane.b32.xlu0 %v2911_v12, %s3602_s0 }
 0x428   : > { %2608 = vrot.lane.b32.xlu2 %v2604_v41, %s5577_s12  ;;  %v2676_v45 = vadd.f32 %v2674_v0, %v2642_v63 }
 0x42b   : > { %v2569_v19 = vpop.permute.xlu0 %2568  ;;  %v2625_v2 = vpop.permute.xlu1 %2624 }
 0x42c   : > { %v2573_v1 = vadd.f32 %v2569_v19, %v2515_v33  ;;  %v2763_v55 = vpop.permute.xlu2 %2762 }
 0x42e   : > { %v2629_v44 = vadd.f32 %v2625_v2, %v2573_v1  ;;  %2610 = vrot.lane.b32.xlu0 %v2605_v60, %s5577_s12 }
 0x430   : > { %v2671_v46 = vadd.f32 %v2669_v24, %v2629_v44  ;;  %2692 = vrot.lane.b32.xlu2 %v2687_v52, %s3601_s10  ;;  %s3337_s10 = sld [smem:[#allocation4 + $0xaf]] }
 0x433   : > { %v2623_v29 = vpop.permute.xlu0 %2622  ;;  %v2705_v30 = vpop.permute.xlu1 %2704 }
 0x434   : > { %v2628_v50 = vadd.f32 %v2623_v29, %v2572_v49  ;;  %v2779_v36 = vpop.permute.xlu2 %2778 }
 0x436   : > { %v2670_v37 = vadd.f32 %v2668_v26, %v2628_v50  ;;  %2748 = vrot.lane.b32.xlu0 %v2744_v9, %s3602_s0  ;;  %v2661_v61 = vstv %s3337_s10 }
 0x437   : > { %v2663_v52 = vmul.f32 %v2661_v61, %v5367_v35 }
 0x438   : > { %2804 = vrot.lane.b32.xlu2 %v2800_v57, %s3603_s8  ;;  %v2710_v34 = vadd.f32 %v2705_v30, %v2670_v37 }
 0x43a   : > { %v2768_v6 = vadd.f32 %v2763_v55, %v2710_v34 }
 0x43b   : > { %v2639_v27 = vpop.permute.xlu0 %2638  ;;  %v2721_v48 = vpop.permute.xlu1 %2720 }
 0x43c   : > { %v2643_v33 = vadd.f32 %v2639_v27, %v2587_v31  ;;  %v2835_v53 = vpop.permute.xlu2 %2834  ;;  %v2711_v31 = vadd.f32 %v2707_v18, %v2671_v46  ;;  %v2662_v18 = vmul.f32 %v2661_v61, %v5353_v32  ;;  %v3002_v61 = vld [vmem:[%s3745_s4 + $0x20] sm:$0xff] }
 0x43e   : > { %v2677_v62 = vadd.f32 %v2675_v42, %v2643_v33  ;;  %2806 = vrot.lane.b32.xlu0 %v2801_v10, %s3603_s8  ;;  %s3366_s8 = sshll.u32 %s3586_s17, 6 }
 0x43f   : > { %s3037_s9 = scalar_lea.hbm %s5563_s3, %s3366_s8 }
 0x440   : > { %v2725_v47 = vadd.f32 %v2721_v48, %v2677_v62  ;;  %2864 = vrot.lane.b32.xlu2 %v2859_v4, %s3605_s13  ;;  %s3040_s30 = sshll.u32 %s3037_s9, 4  ;;  %s3041_s30 = int_to_ptr.hbm [resolvable:$true] %s3040_s30 }
 0x441   : > { %s3522_s20 = sshra.s32 %s3041_s30, 4  ;;  %s3523_s20 = int_to_ptr.hbm [resolvable:$true] %s3522_s20 }
 0x442   : > { %v2783_v39 = vadd.f32 %v2779_v36, %v2725_v47  ;;  %s3524_s28 = scalar_lea.hbm %s3523_s20, 64  ;;  %p3529_p11 = scmp.lt.s32.totalorder %s3523_s20, %s5563_s3 }
 0x443   : > { %v2719_v16 = vpop.permute.xlu0 %2718  ;;  %v2777_v17 = vpop.permute.xlu1 %2776  ;;  %p3525_p3 = scmp.ne.s32.totalorder %s3523_s20, %s3524_s28  ;;  %p3530_p12 = scmp.lt.s32.totalorder %s3528_s27, %s3524_s28 }
 0x444   : > { %v2879_v7 = vpop.permute.xlu2 %2878  ;;  %v2724_v13 = vadd.f32 %v2719_v16, %v2676_v45 }
 0x445   : > { %p3526_p5 = pnand %p3525_p3, %p3686_p8  ;;  %p3531_p0 = por %p3530_p12, %p3529_p11 }
 0x446   : > { %2918 = vrot.lane.b32.xlu0 %v2914_v22, %s3606_s29  ;;  %v2782_v54 = vadd.f32 %v2777_v17, %v2724_v13 }
 0x447   : > { %p3527_p7 = pneg %p3526_p5 }
 0x448   : > { %v2840_v58 = vadd.f32 %v2835_v53, %v2782_v54 }
 0x449   : > { %p3532_p1 = pnand %p3531_p0, %p3527_p7 }
 0x44b   : > { %v2765_v40 = vpop.permute.xlu0 %2764  ;;  %v2821_v25 = vpop.permute.xlu1 %2820 }
 0x44c   : > { %v2769_v28 = vadd.f32 %v2765_v40, %v2711_v31 }
 0x44e   : > { %v2825_v23 = vadd.f32 %v2821_v25, %v2769_v28 }
 0x450   : > { %v2883_v21 = vadd.f32 %v2879_v7, %v2825_v23 }
 0x452   : > { %2930 = vrot.lane.b32.xlu0 %v2883_v21, %s3602_s0 }
 0x453   : > { %v2819_v8 = vpop.permute.xlu0 %2818  ;;  %v2877_v11 = vpop.permute.xlu1 %2876 }
 0x454   : > { %v2824_v43 = vadd.f32 %v2819_v8, %v2768_v6 }
 0x456   : > { %v2882_v15 = vadd.f32 %v2877_v11, %v2824_v43 }
 0x458   : > { %2928 = vrot.lane.b32.xlu2 %v2882_v15, %s3602_s0  ;;  %s2956_s0 = sld [smem:[#allocation3]] }
 0x45b   : > { %v2837_v56 = vpop.permute.xlu0 %2836  ;;  %v2893_v19 = vpop.permute.xlu1 %2892 }
 0x45c   : > { %v2841_v2 = vadd.f32 %v2837_v56, %v2783_v39 }
 0x45e   : > { %v2897_v1 = vadd.f32 %v2893_v19, %v2841_v2  ;;  %v2957_v47 = vstv %s2956_s0 }
 0x463   : > { %v2891_v20 = vpop.permute.xlu0 %2890  ;;  %v2553_v51 = vpop.permute.xlu1 %2552 }
 0x464   : > { %v2896_v3 = vadd.f32 %v2891_v20, %v2840_v58  ;;  %v2557_v24 = vadd.f32 %v2553_v51, %v5426_v59  ;;  %v2998_v58 = vld [vmem:[%s3745_s4] sm:$0xff] }
 0x46b   : > { %v2691_v49 = vpop.permute.xlu1 %2690 }
 0x473   : > { %v2751_v29 = vpop.permute.xlu1 %2750 }
 0x47a   : > { %v2939_v14 = vpop.permute.xlu2 %2938 }
 0x47b   : > { %v2944_v12 = vadd.f32 %v2939_v14, %v2896_v3  ;;  %v2863_v38 = vpop.permute.xlu1 %2862 }
 0x47d   : > { %2948 = vrot.lane.b32.xlu1 %v2944_v12, %s3605_s13  ;;  %v3000_v12 = vld [vmem:[%s3745_s4 + $0x10] sm:$0xff] }
 0x482   : > { %v2609_v63 = vpop.permute.xlu2 %2608 }
 0x483   : > { %v2614_v41 = vadd.f32 %v2609_v63, %v5462_v5  ;;  %v2921_v27 = vpop.permute.xlu1 %2920 }
 0x485   : > { %v2664_v0 = vadd.f32 %v2662_v18, %v2614_v41  ;;  %v3004_v18 = vld [vmem:[%s3745_s4 + $0x30] sm:$0xff] }
 0x487   : > { %v2696_v26 = vadd.f32 %v2691_v49, %v2664_v0  ;;  %v3003_v49 = vld [vmem:[%s3745_s4 + $0x28] sm:$0xff] }
 0x48a   : > { %v2693_v32 = vpop.permute.xlu2 %2692 }
 0x492   : > { %v2805_v30 = vpop.permute.xlu2 %2804 }
 0x498   : > { %v2941_v45 = vpop.permute.xlu0 %2940 }
 0x499   : > { %v2945_v60 = vadd.f32 %v2941_v45, %v2897_v1 }
 0x49a   : > { %v2865_v36 = vpop.permute.xlu2 %2864 }
 0x49b   : > { %2950 = vrot.lane.b32.xlu2 %v2945_v60, %s3605_s13  ;;  %s5578_s13 = sshll.u32 %s3739_s21, 6 }
 0x49c   : > { %s219_s29 = scalar_lea.vmem [#allocation9], %s5578_s13 }
 0x49d   : > { %s3038_s17 = sshll.u32 %s219_s29, 4  ;;  %s3039_s17 = int_to_ptr.vmem [resolvable:$true] %s3038_s17 }
 0x4a0   : > { %v2611_v44 = vpop.permute.xlu0 %2610 }
 0x4a1   : > { %v2615_v46 = vadd.f32 %v2611_v44, %v2557_v24 }
 0x4a3   : > { %v2665_v55 = vadd.f32 %v2663_v52, %v2615_v46  ;;  %v2999_v52 = vld [vmem:[%s3745_s4 + $0x8] sm:$0xff] }
 0x4a5   : > { %v2697_v57 = vadd.f32 %v2693_v32, %v2665_v55  ;;  %v3001_v55 = vld [vmem:[%s3745_s4 + $0x18] sm:$0xff] }
 0x4a7   : > { %v2755_v59 = vadd.f32 %v2751_v29, %v2697_v57  ;;  %v3005_v29 = vld [vmem:[%s3745_s4 + $0x38] sm:$0xff]  ;;  %s3024_s4 = scalar_lea.sflag [#allocation6], %s3739_s21 }
 0x4a8   : > { %v2749_v5 = vpop.permute.xlu0 %2748 }
 0x4a9   : > { %v2754_v9 = vadd.f32 %v2749_v5, %v2696_v26 }
 0x4ab   : > { %v2810_v37 = vadd.f32 %v2805_v30, %v2754_v9 }
 0x4ad   : > { %v2868_v33 = vadd.f32 %v2863_v38, %v2810_v37 }
 0x4b0   : > { %v2807_v50 = vpop.permute.xlu0 %2806 }
 0x4b1   : > { %v2811_v35 = vadd.f32 %v2807_v50, %v2755_v59 }
 0x4b2   : > { %v2929_v10 = vpop.permute.xlu2 %2928 }
 0x4b3   : > { %v2869_v62 = vadd.f32 %v2865_v36, %v2811_v35 }
 0x4b5   : > { %v2925_v22 = vadd.f32 %v2921_v27, %v2869_v62 }
 0x4b8   : > { %v2919_v48 = vpop.permute.xlu0 %2918 }
 0x4b9   : > { %v2924_v42 = vadd.f32 %v2919_v48, %v2868_v33 }
 0x4bb   : > { %v2934_v4 = vadd.f32 %v2929_v10, %v2924_v42 }
 0x4c4   : > { %v2931_v17 = vpop.permute.xlu0 %2930 }
 0x4c5   : > { %v2935_v31 = vadd.f32 %v2931_v17, %v2925_v22 }
 0x4ef   : > { %v2949_v39 = vpop.permute.xlu1 %2948 }
 0x4f0   : > { %v2954_v16 = vadd.f32 %v2949_v39, %v2934_v4 }
 0x4f2   : > { %v2958_v53 = vadd.f32 %v2957_v47, %v2954_v16 }
 0x4f4   : > { %v3358_v40 = vmul.f32 -1.442695, %v2958_v53 }
 0x4f5   : > { %v2951_v25 = vpop.permute.xlu2 %2950 }
 0x4f6   : > { %3454 = vpow2.f32 %v3358_v40  ;;  %v2955_v28 = vadd.f32 %v2951_v25, %v2935_v31 }
 0x4f8   : > { %v2959_v34 = vadd.f32 %v2957_v47, %v2955_v28 }
 0x4fa   : > { %v3359_v23 = vmul.f32 -1.442695, %v2959_v34 }
 0x4fc   : > { %v3455_v7 = vpop.eup %3454  ;;  %3456 = vpow2.f32 %v3359_v23 }
 0x4fd   : > { %v2966_v21 = vadd.f32 1.0, %v3455_v7 }
 0x4ff   : > { %3458 = vrcp.f32 %v2966_v21  ;;  %v2979_v56 = vand.u32 2147483648, %v2966_v21  ;;  %v2977_v54 = vand.u32 2147483647, %v2966_v21  ;;  %vm2973_vm7 = vweird.f32 %v2966_v21 }
 0x501   : > { %v2980_v63 = vor.u32 1.1754944e-38, %v2979_v56  ;;  %vm2978_vm9 = vcmp.eq.f32.partialorder %v2977_v54, 8.507059e+37 }
 0x502   : > { %v3457_v6 = vpop.eup %3456 }
 0x503   : > { %v2967_v8 = vadd.f32 1.0, %v3457_v6 }
 0x505   : > { %v3459_v43 = vpop.eup %3458  ;;  %3460 = vrcp.f32 %v2967_v8  ;;  %v2994_v60 = vand.u32 2147483648, %v2967_v8  ;;  %v2992_v44 = vand.u32 2147483647, %v2967_v8  ;;  %vm2988_vm12 = vweird.f32 %v2967_v8 }
 0x506   : > { %v2969_v11 = vmul.f32 %v3459_v43, %v2966_v21  ;;  %vm2974_vm6 = vweird.f32 %v3459_v43 }
 0x507   : > { %vm2975_vm8 = vmor %vm2973_vm7, %vm2974_vm6  ;;  %v2995_v32 = vor.u32 1.1754944e-38, %v2994_v60  ;;  %vm2993_vm14 = vcmp.eq.f32.partialorder %v2992_v44, 8.507059e+37 }
 0x508   : > { %v2970_v15 = vsub.f32 1.0, %v2969_v11 }
 0x50a   : > { %v2971_v13 = vmul.f32 %v3459_v43, %v2970_v15 }
 0x50b   : > { %v3461_v20 = vpop.eup %3460 }
 0x50c   : > { %v2972_v3 = vadd.f32 %v3459_v43, %v2971_v13  ;;  %v2984_v14 = vmul.f32 %v3461_v20, %v2967_v8  ;;  %vm2989_vm11 = vweird.f32 %v3461_v20 }
 0x50d   : > { %vm2990_vm13 = vmor %vm2988_vm12, %vm2989_vm11 }
 0x50e   : > { %v2976_v41 = vsel %vm2975_vm8, %v3459_v43, %v2972_v3  ;;  %v2985_v0 = vsub.f32 1.0, %v2984_v14 }
 0x50f   : > { %v2981_v19 = vsel %vm2978_vm9, %v2980_v63, %v2976_v41 }
 0x510   : > { %v3006_v2 = vmul.f32 %v2998_v58, %v2981_v19  ;;  %v3008_v1 = vmul.f32 %v3000_v12, %v2981_v19  ;;  %v3010_v45 = vmul.f32 %v3002_v61, %v2981_v19  ;;  %v3012_v51 = vmul.f32 %v3004_v18, %v2981_v19 }
 0x511   : > { %v2986_v24 = vmul.f32 %v3461_v20, %v2985_v0 }
 0x512   : > { %3015 = vst.msk [vmem:[%s219_s29] sm:$0xff] %vm3014_vm10, %v3006_v2 }
 0x513   : > { %3017 = vst.msk [vmem:[%s219_s29 + $0x10] sm:$0xff] %vm3014_vm10, %v3008_v1  ;;  %v2987_v46 = vadd.f32 %v3461_v20, %v2986_v24 }
 0x514   : > { %3019 = vst.msk [vmem:[%s219_s29 + $0x20] sm:$0xff] %vm3014_vm10, %v3010_v45 }
 0x515   : > { %3021 = vst.msk [vmem:[%s219_s29 + $0x30] sm:$0xff] %vm3014_vm10, %v3012_v51  ;;  %v2991_v5 = vsel %vm2990_vm13, %v3461_v20, %v2987_v46 }
 0x516   : > { %v2996_v30 = vsel %vm2993_vm14, %v2995_v32, %v2991_v5 }
 0x517   : > { %v3007_v38 = vmul.f32 %v2999_v52, %v2996_v30  ;;  %v3009_v50 = vmul.f32 %v3001_v55, %v2996_v30  ;;  %v3011_v26 = vmul.f32 %v3003_v49, %v2996_v30  ;;  %v3013_v9 = vmul.f32 %v3005_v29, %v2996_v30 }
 0x519   : > { %3016 = vst.msk [vmem:[%s219_s29 + $0x8] sm:$0xff] %vm3014_vm10, %v3007_v38 }
 0x51a   : > { %3018 = vst.msk [vmem:[%s219_s29 + $0x18] sm:$0xff] %vm3014_vm10, %v3009_v50 }
 0x51b   : > { %3020 = vst.msk [vmem:[%s219_s29 + $0x28] sm:$0xff] %vm3014_vm10, %v3011_v26 }
 0x51c   : > { %3022 = vst.msk [vmem:[%s219_s29 + $0x38] sm:$0xff] %vm3014_vm10, %v3013_v9 }
 0x51d   : > { %3535 = shalt.err (!%p3532_p1)
}
 0x51e   : > { %s3609_s21 = smov 128   ;;  %s3610_s10 = smov 8  }
 0x51f   : > { %3373 = dma.vmem_to_hbm [thread:$0]  (%p3686_p8), %s3039_s17, 1024, %s3041_s30, %s3024_s4, %s3609_s21, %s3609_s21, %s3610_s10  }
 0x520 PF: > { %s3055_s0 = sand.u32 1, %s3574_s14   ;;  %p3384_p2 = pnand %p3147_p13, %p3690_p9 }
 0x521   : > { %s3056_s8 = scalar_lea.sflag [#allocation6], %s3055_s0 }
 0x522   : > { %p3385_p4 = pneg %p3384_p2 }
 0x524   : > { %3569 = dma.done.wait (%p3385_p4), %s3056_s8, 1024  }
 0x525   : > { %3571 = vsyncadd (%p3385_p4), %s3056_s8, 4294966272  ;;  %s21_s19 = sadd.s32 1, %s3594_s19   ;;  %s5579_s14 = smov %s3578_s15 }
 0x526   : > { %p18_p6 = scmp.ge.s32.totalorder %s21_s19, 4   ;;  %s5580_s15 = smov %s3582_s16 }
 0x527   : > { %s5581_s16 = smov %s3728_s23  ;;  %s5582_s17 = smov %s3590_s18 }
 0x528   : > { %s5583_s18 = smov %s5585_s5  ;;  %20 = sbr.rel (!%p18_p6) target bundleno = 9 (0x9), region = 104 }
 0x52d   :  { %3062 = vsyncpa [#allocation5], 1 }
 0x52e   :  { %3064 = vsyncpa [#allocation5 + $0x1], 1 }
 0x52f   :  { %3065 = vsyncpa [#allocation6], 1 }
 0x530   :  { %3067 = vsyncpa [#allocation6 + $0x1], 1 }
 0x531   :  { %3068 = vsyncpa [#allocation7], 1 }
 0x532   :  { %3070 = vsyncpa [#allocation7 + $0x1], 1 }

</bundles_post_ra>
